<compile_context>
chip_gen: v5e
topology: v5e:2x2
jax: 0.10.0
libtpu: 0.0.40
codegen_flags: <defaults>
</compile_context>

<pallas_src>
import math

import jax
import jax.numpy as jnp
from jax.experimental import pallas as pl
from jax.experimental.pallas import tpu as pltpu

# ----------------------------- hyper-parameters -----------------------------
IMG = 32            # ViT input resolution (orig 384)
P = 8               # patch size == trans-conv kernel/stride (orig 16)
GRID = IMG // P
N_TOK = GRID * GRID
SEQ = N_TOK + 1     # + cls token
SEQ_P = 24          # sequence padded to a multiple of 8 (pad keys are masked)
D_VIT = 32          # ViT embed dim (orig 768)
VIT_HEADS = 4
VIT_DEPTH = 10      # orig 12
VIT_MLP = 4 * D_VIT
COND_DIM = 16       # orig 512
RD = 16             # reduce_dim (orig 128)
DEC_HEADS = 4
DEC_FF = 32         # orig 2048
EXTRACT_LAYERS = (3, 6, 9)
N_DEC = len(EXTRACT_LAYERS)
COND_LAYER = 0

assert SEQ_P % 8 == 0 and SEQ_P >= SEQ


# --------------------------- in-kernel math helpers --------------------------
def _gelu(x):
    # tanh-approximate GELU (transcendental goes to the EUP slot).
    return 0.5 * x * (1.0 + jnp.tanh(0.7978845608028654 *
                                     (x + 0.044715 * x * x * x)))


def _ln(x, g, b, eps):
    mu = jnp.mean(x, axis=-1, keepdims=True)
    xc = x - mu
    var = jnp.mean(xc * xc, axis=-1, keepdims=True)
    return xc * jax.lax.rsqrt(var + eps) * g + b


def _attention(x, w_qkv, b_qkv, w_proj, b_proj, heads, valid_len):
    """Fused multi-head self-attention on a (S_pad, E) tile.

    Padded key columns (>= valid_len) are masked out of the softmax.  The
    output projection is accumulated per head (avoids lane concatenation)."""
    S, E = x.shape
    hd = E // heads
    scale = 1.0 / math.sqrt(hd)
    qkv = jnp.dot(x, w_qkv, preferred_element_type=jnp.float32) + b_qkv  # (S, 3E)
    col = jax.lax.broadcasted_iota(jnp.int32, (S, S), 1)
    kmask = col < valid_len
    acc = None
    for h in range(heads):
        qh = qkv[:, h * hd:(h + 1) * hd]
        kh = qkv[:, E + h * hd:E + (h + 1) * hd]
        vh = qkv[:, 2 * E + h * hd:2 * E + (h + 1) * hd]
        s = jnp.dot(qh, kh.T, preferred_element_type=jnp.float32) * scale
        s = jnp.where(kmask, s, -1e30)
        m = jnp.max(s, axis=-1, keepdims=True)
        e = jnp.exp(s - m)
        p = e * pl.reciprocal(jnp.sum(e, axis=-1, keepdims=True), approx=True)
        oh = jnp.dot(p, vh, preferred_element_type=jnp.float32)          # (S, hd)
        ch = jnp.dot(oh, w_proj[h * hd:(h + 1) * hd, :],
                     preferred_element_type=jnp.float32)                 # (S, E)
        acc = ch if acc is None else acc + ch
    return acc + b_proj


# --------------------------- fused ViT backbone kernel -----------------------
def _vit_backbone_kernel(patches_ref, base_ref, pw_ref,
                         ln1g_ref, ln1b_ref, qkvw_ref, qkvb_ref,
                         projw_ref, projb_ref, ln2g_ref, ln2b_ref,
                         fc1w_ref, fc1b_ref, fc2w_ref, fc2b_ref,
                         acts_ref, x_ref):
    l = pl.program_id(1)

    # patch embed + cls token + pos embed (pad rows stay zero), once per batch
    @pl.when(l == 0)
    def _embed():
        x_ref[...] = (jnp.dot(patches_ref[0], pw_ref[...],
                              preferred_element_type=jnp.float32)
                      + base_ref[...])

    x = x_ref[...]                                              # (SEQ_P, D)

    # --- timm ViT block l (pre-norm) ---
    h = _ln(x, ln1g_ref[0], ln1b_ref[0], 1e-6)
    x = x + _attention(h, qkvw_ref[0], qkvb_ref[0],
                       projw_ref[0], projb_ref[0], VIT_HEADS, SEQ)
    h = _ln(x, ln2g_ref[0], ln2b_ref[0], 1e-6)
    h = _gelu(jnp.dot(h, fc1w_ref[0], preferred_element_type=jnp.float32)
              + fc1b_ref[0])
    h = jnp.dot(h, fc2w_ref[0], preferred_element_type=jnp.float32) + fc2b_ref[0]
    x = x + h

    x_ref[...] = x

    # extract activations after layers 3 / 6 / 9 (layer-0 extract is dead code)
    for idx, lyr in enumerate(EXTRACT_LAYERS):
        @pl.when(l == lyr)
        def _store(idx=idx):
            acts_ref[idx, 0] = x


def _vit_backbone_call(patches_p, base, params):
    B = patches_p.shape[0]
    v = params["vit"]

    def full(arr):
        return pl.BlockSpec(arr.shape, lambda b, l: (0,) * arr.ndim)

    def stacked(arr):
        return pl.BlockSpec((1,) + arr.shape[1:], lambda b, l: (l, 0, 0))

    return pl.pallas_call(
        _vit_backbone_kernel,
        out_shape=jax.ShapeDtypeStruct((N_DEC, B, SEQ_P, D_VIT), jnp.float32),
        grid=(B, VIT_DEPTH),
        in_specs=[
            pl.BlockSpec((1, SEQ_P, 3 * P * P), lambda b, l: (b, 0, 0)),
            full(base),
            full(params["patch_w"]),
            stacked(v["ln1_g"]), stacked(v["ln1_b"]),
            stacked(v["qkv_w"]), stacked(v["qkv_b"]),
            stacked(v["proj_w"]), stacked(v["proj_b"]),
            stacked(v["ln2_g"]), stacked(v["ln2_b"]),
            stacked(v["fc1_w"]), stacked(v["fc1_b"]),
            stacked(v["fc2_w"]), stacked(v["fc2_b"]),
        ],
        out_specs=pl.BlockSpec((N_DEC, 1, SEQ_P, D_VIT),
                               lambda b, l: (0, b, 0, 0)),
        scratch_shapes=[pltpu.VMEM((SEQ_P, D_VIT), jnp.float32)],
        compiler_params=pltpu.CompilerParams(
            dimension_semantics=("parallel", "arbitrary")),
    )(patches_p, base, params["patch_w"],
      v["ln1_g"], v["ln1_b"], v["qkv_w"], v["qkv_b"],
      v["proj_w"], v["proj_b"], v["ln2_g"], v["ln2_b"],
      v["fc1_w"], v["fc1_b"], v["fc2_w"], v["fc2_b"])


# ------------------------------ fused decoder kernel -------------------------
def _decoder_kernel(acts_ref, cond_ref,
                    fmw_ref, fmb_ref, faw_ref, fab_ref,
                    redw_ref, redb_ref,
                    inpw_ref, inpb_ref, outw_ref, outb_ref,
                    ln1g_ref, ln1b_ref, ff1w_ref, ff1b_ref,
                    ff2w_ref, ff2b_ref, ln2g_ref, ln2b_ref,
                    tcw_ref, tcb_ref,
                    y_ref, a_ref):
    i = pl.program_id(1)

    act = acts_ref[0, 0]                                        # (SEQ_P, D_VIT)
    r = jnp.dot(act, redw_ref[0], preferred_element_type=jnp.float32) + redb_ref[0]

    @pl.when(i == COND_LAYER)
    def _film():
        # FiLM: per-batch (1, RD) mul/add broadcast in-register over the sequence
        fm = jnp.dot(cond_ref[0], fmw_ref[...],
                     preferred_element_type=jnp.float32) + fmb_ref[...]
        fa = jnp.dot(cond_ref[0], faw_ref[...],
                     preferred_element_type=jnp.float32) + fab_ref[...]
        a_ref[...] = fm * r + fa

    @pl.when(i > 0)
    def _accum():
        a_ref[...] = r + a_ref[...]

    a = a_ref[...]                                              # (SEQ_P, RD)

    # nn.TransformerEncoderLayer (post-norm, ReLU, dropout = identity)
    sa = _attention(a, inpw_ref[0], inpb_ref[0],
                    outw_ref[0], outb_ref[0], DEC_HEADS, SEQ)
    a = _ln(a + sa, ln1g_ref[0], ln1b_ref[0], 1e-5)
    h = jnp.maximum(jnp.dot(a, ff1w_ref[0],
                            preferred_element_type=jnp.float32) + ff1b_ref[0], 0.0)
    h = jnp.dot(h, ff2w_ref[0], preferred_element_type=jnp.float32) + ff2b_ref[0]
    a = _ln(a + h, ln2g_ref[0], ln2b_ref[0], 1e-5)
    a_ref[...] = a

    # trans_conv (ConvTranspose2d(RD,1,(P,P),stride=P)) as a per-token matmul,
    # fused into the last decoder step; cls + pad rows are dropped here.
    @pl.when(i == N_DEC - 1)
    def _head():
        tok = a[1:SEQ, :]                                       # (N_TOK, RD)
        y_ref[0] = jnp.dot(tok, tcw_ref[...],
                           preferred_element_type=jnp.float32) + tcb_ref[...]


def _decoder_call(acts, cond3, params):
    B = cond3.shape[0]
    d = params["dec"]
    tcb = jnp.broadcast_to(params["tconv_b"], (1, P * P))

    def full(arr):
        return pl.BlockSpec(arr.shape, lambda b, i: (0,) * arr.ndim)

    def stacked(arr):
        return pl.BlockSpec((1,) + arr.shape[1:], lambda b, i: (i, 0, 0))

    return pl.pallas_call(
        _decoder_kernel,
        out_shape=jax.ShapeDtypeStruct((B, N_TOK, P * P), jnp.float32),
        grid=(B, N_DEC),
        in_specs=[
            # activations consumed in reverse extraction order (layer 9, 6, 3)
            pl.BlockSpec((1, 1, SEQ_P, D_VIT),
                         lambda b, i: (N_DEC - 1 - i, b, 0, 0)),
            pl.BlockSpec((1, 1, COND_DIM), lambda b, i: (b, 0, 0)),
            full(params["film_mul_w"]), full(params["film_mul_b"]),
            full(params["film_add_w"]), full(params["film_add_b"]),
            stacked(d["red_w"]), stacked(d["red_b"]),
            stacked(d["inp_w"]), stacked(d["inp_b"]),
            stacked(d["out_w"]), stacked(d["out_b"]),
            stacked(d["ln1_g"]), stacked(d["ln1_b"]),
            stacked(d["ff1_w"]), stacked(d["ff1_b"]),
            stacked(d["ff2_w"]), stacked(d["ff2_b"]),
            stacked(d["ln2_g"]), stacked(d["ln2_b"]),
            full(params["tconv_w"]), full(tcb),
        ],
        out_specs=pl.BlockSpec((1, N_TOK, P * P), lambda b, i: (b, 0, 0)),
        scratch_shapes=[pltpu.VMEM((SEQ_P, RD), jnp.float32)],
        compiler_params=pltpu.CompilerParams(
            dimension_semantics=("parallel", "arbitrary")),
    )(acts, cond3,
      params["film_mul_w"], params["film_mul_b"],
      params["film_add_w"], params["film_add_b"],
      d["red_w"], d["red_b"], d["inp_w"], d["inp_b"], d["out_w"], d["out_b"],
      d["ln1_g"], d["ln1_b"], d["ff1_w"], d["ff1_b"],
      d["ff2_w"], d["ff2_b"], d["ln2_g"], d["ln2_b"],
      params["tconv_w"], tcb)


# ------------------------------ model glue / forward -------------------------
def nearest_resize(x, size):
    """PyTorch F.interpolate(mode='nearest') on NCHW (identity when sizes match)."""
    B, C, H, W = x.shape
    Ho, Wo = size
    if (H, W) == (Ho, Wo):
        return x
    ri = (jnp.arange(Ho) * H // Ho).astype(jnp.int32)
    ci = (jnp.arange(Wo) * W // Wo).astype(jnp.int32)
    return x[:, :, ri][:, :, :, ci]


def forward(params, inp_image, cond):
    bs = inp_image.shape[0]
    inp_size = inp_image.shape[2:]

    # ---------------- visual_forward (ViT backbone) ----------------
    x = nearest_resize(inp_image, (IMG, IMG))
    # patch_embed: Conv2d(3, D_VIT, P, stride=P) as patch-flatten (layout glue)
    patches = x.reshape(bs, 3, GRID, P, GRID, P).transpose(0, 2, 4, 1, 3, 5)
    patches = patches.reshape(bs, N_TOK, 3 * P * P)
    # pad to SEQ_P rows: row 0 = cls slot, rows 1..16 = patches, rest = pad
    patches_p = jnp.pad(patches, ((0, 0), (1, SEQ_P - SEQ), (0, 0)))
    pos = params["pos_embed"]                                   # (SEQ, D)
    base = jnp.concatenate(
        [params["cls_token"] + pos[:1],                         # cls + pos[0]
         pos[1:] + params["patch_b"],                           # pos + conv bias
         jnp.zeros((SEQ_P - SEQ, D_VIT), jnp.float32)], axis=0)  # zero pad rows

    acts = _vit_backbone_call(patches_p, base, params)          # (3, B, SEQ_P, D)

    # ---------------- decoder + trans_conv ----------------
    y = _decoder_call(acts, cond.reshape(bs, 1, COND_DIM), params)  # (B, N_TOK, P*P)

    y = y.reshape(bs, GRID, GRID, P, P).transpose(0, 1, 3, 2, 4)
    y = y.reshape(bs, 1, GRID * P, GRID * P)
    return nearest_resize(y, inp_size)                          # nnf.interpolate


# ------------------------------ parameter init ------------------------------
def init_params(key):
    def split():
        nonlocal key
        key, sub = jax.random.split(key)
        return sub

    def w(shape, scale=0.02):
        return jax.random.normal(split(), shape, jnp.float32) * scale

    p = {}
    p["patch_w"] = w((3 * P * P, D_VIT))
    p["patch_b"] = w((1, D_VIT))
    p["cls_token"] = w((1, D_VIT))
    p["pos_embed"] = w((SEQ, D_VIT))
    p["vit"] = {
        "ln1_g": jnp.ones((VIT_DEPTH, 1, D_VIT), jnp.float32),
        "ln1_b": jnp.zeros((VIT_DEPTH, 1, D_VIT), jnp.float32),
        "qkv_w": w((VIT_DEPTH, D_VIT, 3 * D_VIT)),
        "qkv_b": w((VIT_DEPTH, 1, 3 * D_VIT)),
        "proj_w": w((VIT_DEPTH, D_VIT, D_VIT)),
        "proj_b": w((VIT_DEPTH, 1, D_VIT)),
        "ln2_g": jnp.ones((VIT_DEPTH, 1, D_VIT), jnp.float32),
        "ln2_b": jnp.zeros((VIT_DEPTH, 1, D_VIT), jnp.float32),
        "fc1_w": w((VIT_DEPTH, D_VIT, VIT_MLP)),
        "fc1_b": w((VIT_DEPTH, 1, VIT_MLP)),
        "fc2_w": w((VIT_DEPTH, VIT_MLP, D_VIT)),
        "fc2_b": w((VIT_DEPTH, 1, D_VIT)),
    }
    p["film_mul_w"] = w((COND_DIM, RD)); p["film_mul_b"] = w((1, RD))
    p["film_add_w"] = w((COND_DIM, RD)); p["film_add_b"] = w((1, RD))
    p["dec"] = {
        "red_w": w((N_DEC, D_VIT, RD)), "red_b": w((N_DEC, 1, RD)),
        "inp_w": w((N_DEC, RD, 3 * RD)), "inp_b": w((N_DEC, 1, 3 * RD)),
        "out_w": w((N_DEC, RD, RD)), "out_b": w((N_DEC, 1, RD)),
        "ln1_g": jnp.ones((N_DEC, 1, RD), jnp.float32),
        "ln1_b": jnp.zeros((N_DEC, 1, RD), jnp.float32),
        "ff1_w": w((N_DEC, RD, DEC_FF)), "ff1_b": w((N_DEC, 1, DEC_FF)),
        "ff2_w": w((N_DEC, DEC_FF, RD)), "ff2_b": w((N_DEC, 1, RD)),
        "ln2_g": jnp.ones((N_DEC, 1, RD), jnp.float32),
        "ln2_b": jnp.zeros((N_DEC, 1, RD), jnp.float32),
    }
    # ConvTranspose2d(RD, 1, (P, P), stride=P): weight (RD, 1, P, P) -> (RD, P*P)
    p["tconv_w"] = w((RD, P * P))
    p["tconv_b"] = w((1, 1))
    return p


# ------------------------------------ main -----------------------------------
if __name__ == "__main__":
    root = jax.random.PRNGKey(0)
    kp, ki, kc = jax.random.split(root, 3)
    params = init_params(kp)
    inp_image = jax.random.normal(ki, (2, 3, 32, 32), jnp.float32)   # NCHW
    cond = jax.random.normal(kc, (2, COND_DIM), jnp.float32)         # (B, cond_dim)

    fwd = jax.jit(forward)
    out = jax.block_until_ready(fwd(params, inp_image, cond))
    assert out.shape == (2, 1, 32, 32), out.shape
    assert bool(jnp.all(jnp.isfinite(out)))
    print("KERNEL_OK")
</pallas_src>

<mosaic_0001>
module attributes {stable_mosaic.version = 11 : i64} {
  func.func @_vit_backbone_kernel(%arg0: i32, %arg1: i32, %arg2: memref<1x24x192xf32, #tpu.memory_space<vmem>>, %arg3: memref<24x32xf32, #tpu.memory_space<vmem>>, %arg4: memref<192x32xf32, #tpu.memory_space<vmem>>, %arg5: memref<1x1x32xf32, #tpu.memory_space<vmem>>, %arg6: memref<1x1x32xf32, #tpu.memory_space<vmem>>, %arg7: memref<1x32x96xf32, #tpu.memory_space<vmem>>, %arg8: memref<1x1x96xf32, #tpu.memory_space<vmem>>, %arg9: memref<1x32x32xf32, #tpu.memory_space<vmem>>, %arg10: memref<1x1x32xf32, #tpu.memory_space<vmem>>, %arg11: memref<1x1x32xf32, #tpu.memory_space<vmem>>, %arg12: memref<1x1x32xf32, #tpu.memory_space<vmem>>, %arg13: memref<1x32x128xf32, #tpu.memory_space<vmem>>, %arg14: memref<1x1x128xf32, #tpu.memory_space<vmem>>, %arg15: memref<1x128x32xf32, #tpu.memory_space<vmem>>, %arg16: memref<1x1x32xf32, #tpu.memory_space<vmem>>, %arg17: memref<3x1x24x32xf32, #tpu.memory_space<vmem>>, %arg18: memref<24x32xf32, #tpu.memory_space<vmem>>) attributes {dimension_semantics = [#tpu.dimension_semantics<parallel>, #tpu.dimension_semantics<arbitrary>], iteration_bounds = array<i64: 2, 10>, scalar_prefetch = 0 : i64, scratch_operands = 1 : i64, tpu.core_type = #tpu.core_type<tc>, window_params = [{transform_indices = @transform_0, window_bounds = array<i64: 1, 24, 192>}, {pipeline_mode = #tpu.pipeline_mode<synchronous>, transform_indices = @transform_1, window_bounds = array<i64: 24, 32>}, {pipeline_mode = #tpu.pipeline_mode<synchronous>, transform_indices = @transform_2, window_bounds = array<i64: 192, 32>}, {transform_indices = @transform_3, window_bounds = array<i64: 1, 1, 32>}, {transform_indices = @transform_4, window_bounds = array<i64: 1, 1, 32>}, {transform_indices = @transform_5, window_bounds = array<i64: 1, 32, 96>}, {transform_indices = @transform_6, window_bounds = array<i64: 1, 1, 96>}, {transform_indices = @transform_7, window_bounds = array<i64: 1, 32, 32>}, {transform_indices = @transform_8, window_bounds = array<i64: 1, 1, 32>}, {transform_indices = @transform_9, window_bounds = array<i64: 1, 1, 32>}, {transform_indices = @transform_10, window_bounds = array<i64: 1, 1, 32>}, {transform_indices = @transform_11, window_bounds = array<i64: 1, 32, 128>}, {transform_indices = @transform_12, window_bounds = array<i64: 1, 1, 128>}, {transform_indices = @transform_13, window_bounds = array<i64: 1, 128, 32>}, {transform_indices = @transform_14, window_bounds = array<i64: 1, 1, 32>}, {transform_indices = @transform_15, window_bounds = array<i64: 3, 1, 24, 32>}]} {
    %c0_i32 = arith.constant 0 : i32
    %0 = arith.cmpi eq, %arg1, %c0_i32 : i32
    %1 = arith.extui %0 : i1 to i32
    %c0_i32_0 = arith.constant 0 : i32
    %2 = arith.cmpi ne, %1, %c0_i32_0 : i32
    scf.if %2 {
      %c0_87 = arith.constant 0 : index
      %c0_88 = arith.constant 0 : index
      %c0_89 = arith.constant 0 : index
      %198 = vector.load %arg2[%c0_87, %c0_88, %c0_89] : memref<1x24x192xf32, #tpu.memory_space<vmem>>, vector<1x24x192xf32>
      %199 = vector.shape_cast %198 : vector<1x24x192xf32> to vector<24x192xf32>
      %c0_90 = arith.constant 0 : index
      %c0_91 = arith.constant 0 : index
      %200 = vector.load %arg4[%c0_90, %c0_91] : memref<192x32xf32, #tpu.memory_space<vmem>>, vector<192x32xf32>
      %cst_92 = arith.constant dense<0.000000e+00> : vector<24x32xf32>
      %201 = tpu.matmul %199, %200, %cst_92 {dimension_numbers = #tpu.dot_dimension_numbers<[1], [0], [0], [1], [0, 0, 1, 1], [], []>} : vector<24x192xf32>, vector<192x32xf32>, vector<24x32xf32> -> vector<24x32xf32>
      %c0_93 = arith.constant 0 : index
      %c0_94 = arith.constant 0 : index
      %202 = vector.load %arg3[%c0_93, %c0_94] : memref<24x32xf32, #tpu.memory_space<vmem>>, vector<24x32xf32>
      %203 = arith.addf %201, %202 : vector<24x32xf32>
      %c0_95 = arith.constant 0 : index
      %c0_96 = arith.constant 0 : index
      %204 = vector.load %arg18[%c0_95, %c0_96] : memref<24x32xf32, #tpu.memory_space<vmem>>, vector<24x32xf32>
      tpu.vector_store %arg18[%c0_95, %c0_96], %203 {strides = array<i32>} : memref<24x32xf32, #tpu.memory_space<vmem>>, vector<24x32xf32>,
    } else {
    }
    %c0 = arith.constant 0 : index
    %c0_1 = arith.constant 0 : index
    %3 = vector.load %arg18[%c0, %c0_1] : memref<24x32xf32, #tpu.memory_space<vmem>>, vector<24x32xf32>
    %c0_2 = arith.constant 0 : index
    %c0_3 = arith.constant 0 : index
    %c0_4 = arith.constant 0 : index
    %4 = vector.load %arg5[%c0_2, %c0_3, %c0_4] : memref<1x1x32xf32, #tpu.memory_space<vmem>>, vector<1x1x32xf32>
    %5 = vector.shape_cast %4 : vector<1x1x32xf32> to vector<1x32xf32>
    %c0_5 = arith.constant 0 : index
    %c0_6 = arith.constant 0 : index
    %c0_7 = arith.constant 0 : index
    %6 = vector.load %arg6[%c0_5, %c0_6, %c0_7] : memref<1x1x32xf32, #tpu.memory_space<vmem>>, vector<1x1x32xf32>
    %7 = vector.shape_cast %6 : vector<1x1x32xf32> to vector<1x32xf32>
    %cst = arith.constant dense<0.000000e+00> : vector<24xf32>
    %8 = vector.multi_reduction <add>, %3, %cst [1] : vector<24x32xf32> to vector<24xf32>
    %9 = vector.shape_cast %8 : vector<24xf32> to vector<24x1xf32>
    %cst_8 = arith.constant 3.200000e+01 : f32
    %10 = vector.broadcast %cst_8 : f32 to vector<24x1xf32>
    %11 = arith.divf %9, %10 : vector<24x1xf32>
    %12 = vector.broadcast %11 : vector<24x1xf32> to vector<24x32xf32>
    %13 = arith.subf %3, %12 : vector<24x32xf32>
    %14 = arith.mulf %13, %13 : vector<24x32xf32>
    %cst_9 = arith.constant dense<0.000000e+00> : vector<24xf32>
    %15 = vector.multi_reduction <add>, %14, %cst_9 [1] : vector<24x32xf32> to vector<24xf32>
    %16 = vector.shape_cast %15 : vector<24xf32> to vector<24x1xf32>
    %cst_10 = arith.constant 3.200000e+01 : f32
    %17 = vector.broadcast %cst_10 : f32 to vector<24x1xf32>
    %18 = arith.divf %16, %17 : vector<24x1xf32>
    %cst_11 = arith.constant 9.99999997E-7 : f32
    %19 = vector.broadcast %cst_11 : f32 to vector<24x1xf32>
    %20 = arith.addf %18, %19 : vector<24x1xf32>
    %21 = math.rsqrt %20 : vector<24x1xf32>
    %22 = vector.broadcast %21 : vector<24x1xf32> to vector<24x32xf32>
    %23 = arith.mulf %13, %22 : vector<24x32xf32>
    %24 = vector.broadcast %5 : vector<1x32xf32> to vector<24x32xf32>
    %25 = arith.mulf %23, %24 : vector<24x32xf32>
    %26 = vector.broadcast %7 : vector<1x32xf32> to vector<24x32xf32>
    %27 = arith.addf %25, %26 : vector<24x32xf32>
    %c0_12 = arith.constant 0 : index
    %c0_13 = arith.constant 0 : index
    %c0_14 = arith.constant 0 : index
    %28 = vector.load %arg7[%c0_12, %c0_13, %c0_14] : memref<1x32x96xf32, #tpu.memory_space<vmem>>, vector<1x32x96xf32>
    %29 = vector.shape_cast %28 : vector<1x32x96xf32> to vector<32x96xf32>
    %c0_15 = arith.constant 0 : index
    %c0_16 = arith.constant 0 : index
    %c0_17 = arith.constant 0 : index
    %30 = vector.load %arg8[%c0_15, %c0_16, %c0_17] : memref<1x1x96xf32, #tpu.memory_space<vmem>>, vector<1x1x96xf32>
    %31 = vector.shape_cast %30 : vector<1x1x96xf32> to vector<1x96xf32>
    %c0_18 = arith.constant 0 : index
    %c0_19 = arith.constant 0 : index
    %c0_20 = arith.constant 0 : index
    %32 = vector.load %arg9[%c0_18, %c0_19, %c0_20] : memref<1x32x32xf32, #tpu.memory_space<vmem>>, vector<1x32x32xf32>
    %33 = vector.shape_cast %32 : vector<1x32x32xf32> to vector<32x32xf32>
    %c0_21 = arith.constant 0 : index
    %c0_22 = arith.constant 0 : index
    %c0_23 = arith.constant 0 : index
    %34 = vector.load %arg10[%c0_21, %c0_22, %c0_23] : memref<1x1x32xf32, #tpu.memory_space<vmem>>, vector<1x1x32xf32>
    %35 = vector.shape_cast %34 : vector<1x1x32xf32> to vector<1x32xf32>
    %cst_24 = arith.constant dense<0.000000e+00> : vector<24x96xf32>
    %36 = tpu.matmul %27, %29, %cst_24 {dimension_numbers = #tpu.dot_dimension_numbers<[1], [0], [0], [1], [0, 0, 1, 1], [], []>} : vector<24x32xf32>, vector<32x96xf32>, vector<24x96xf32> -> vector<24x96xf32>
    %37 = vector.broadcast %31 : vector<1x96xf32> to vector<24x96xf32>
    %38 = arith.addf %36, %37 : vector<24x96xf32>
    %39 = tpu.iota {dimensions = array<i32: 1>} : vector<24x24xi32>
    %c17_i32 = arith.constant 17 : i32
    %40 = vector.broadcast %c17_i32 : i32 to vector<24x24xi32>
    %41 = arith.cmpi slt, %39, %40 : vector<24x24xi32>
    %42 = vector.extract_strided_slice %38 {offsets = [0, 0], sizes = [24, 8], strides = [1, 1]} : vector<24x96xf32> to vector<24x8xf32>
    %43 = vector.extract_strided_slice %38 {offsets = [0, 32], sizes = [24, 8], strides = [1, 1]} : vector<24x96xf32> to vector<24x8xf32>
    %44 = vector.extract_strided_slice %38 {offsets = [0, 64], sizes = [24, 8], strides = [1, 1]} : vector<24x96xf32> to vector<24x8xf32>
    %45 = tpu.transpose %43, [1, 0] : vector<24x8xf32> -> vector<8x24xf32>
    %cst_25 = arith.constant dense<0.000000e+00> : vector<24x24xf32>
    %46 = tpu.matmul %42, %45, %cst_25 {dimension_numbers = #tpu.dot_dimension_numbers<[1], [0], [0], [1], [0, 0, 1, 1], [], []>} : vector<24x8xf32>, vector<8x24xf32>, vector<24x24xf32> -> vector<24x24xf32>
    %cst_26 = arith.constant 0.353553385 : f32
    %47 = vector.broadcast %cst_26 : f32 to vector<24x24xf32>
    %48 = arith.mulf %46, %47 : vector<24x24xf32>
    %cst_27 = arith.constant -1.000000e+30 : f32
    %49 = vector.broadcast %cst_27 : f32 to vector<24x24xf32>
    %50 = arith.select %41, %48, %49 : vector<24x24xi1>, vector<24x24xf32>
    %cst_28 = arith.constant dense<0xFF800000> : vector<24xf32>
    %51 = vector.multi_reduction <maximumf>, %50, %cst_28 [1] : vector<24x24xf32> to vector<24xf32>
    %52 = vector.shape_cast %51 : vector<24xf32> to vector<24x1xf32>
    %53 = vector.broadcast %52 : vector<24x1xf32> to vector<24x24xf32>
    %54 = arith.subf %50, %53 : vector<24x24xf32>
    %55 = math.exp %54 : vector<24x24xf32>
    %cst_29 = arith.constant dense<0.000000e+00> : vector<24xf32>
    %56 = vector.multi_reduction <add>, %55, %cst_29 [1] : vector<24x24xf32> to vector<24xf32>
    %57 = vector.shape_cast %56 : vector<24xf32> to vector<24x1xf32>
    %58 = tpu.reciprocal %57 {approx = true} : vector<24x1xf32> -> vector<24x1xf32>
    %59 = vector.broadcast %58 : vector<24x1xf32> to vector<24x24xf32>
    %60 = arith.mulf %55, %59 : vector<24x24xf32>
    %cst_30 = arith.constant dense<0.000000e+00> : vector<24x8xf32>
    %61 = tpu.matmul %60, %44, %cst_30 {dimension_numbers = #tpu.dot_dimension_numbers<[1], [0], [0], [1], [0, 0, 1, 1], [], []>} : vector<24x24xf32>, vector<24x8xf32>, vector<24x8xf32> -> vector<24x8xf32>
    %62 = vector.extract_strided_slice %33 {offsets = [0, 0], sizes = [8, 32], strides = [1, 1]} : vector<32x32xf32> to vector<8x32xf32>
    %cst_31 = arith.constant dense<0.000000e+00> : vector<24x32xf32>
    %63 = tpu.matmul %61, %62, %cst_31 {dimension_numbers = #tpu.dot_dimension_numbers<[1], [0], [0], [1], [0, 0, 1, 1], [], []>} : vector<24x8xf32>, vector<8x32xf32>, vector<24x32xf32> -> vector<24x32xf32>
    %64 = vector.extract_strided_slice %38 {offsets = [0, 8], sizes = [24, 8], strides = [1, 1]} : vector<24x96xf32> to vector<24x8xf32>
    %65 = vector.extract_strided_slice %38 {offsets = [0, 40], sizes = [24, 8], strides = [1, 1]} : vector<24x96xf32> to vector<24x8xf32>
    %66 = vector.extract_strided_slice %38 {offsets = [0, 72], sizes = [24, 8], strides = [1, 1]} : vector<24x96xf32> to vector<24x8xf32>
    %67 = tpu.transpose %65, [1, 0] : vector<24x8xf32> -> vector<8x24xf32>
    %cst_32 = arith.constant dense<0.000000e+00> : vector<24x24xf32>
    %68 = tpu.matmul %64, %67, %cst_32 {dimension_numbers = #tpu.dot_dimension_numbers<[1], [0], [0], [1], [0, 0, 1, 1], [], []>} : vector<24x8xf32>, vector<8x24xf32>, vector<24x24xf32> -> vector<24x24xf32>
    %cst_33 = arith.constant 0.353553385 : f32
    %69 = vector.broadcast %cst_33 : f32 to vector<24x24xf32>
    %70 = arith.mulf %68, %69 : vector<24x24xf32>
    %cst_34 = arith.constant -1.000000e+30 : f32
    %71 = vector.broadcast %cst_34 : f32 to vector<24x24xf32>
    %72 = arith.select %41, %70, %71 : vector<24x24xi1>, vector<24x24xf32>
    %cst_35 = arith.constant dense<0xFF800000> : vector<24xf32>
    %73 = vector.multi_reduction <maximumf>, %72, %cst_35 [1] : vector<24x24xf32> to vector<24xf32>
    %74 = vector.shape_cast %73 : vector<24xf32> to vector<24x1xf32>
    %75 = vector.broadcast %74 : vector<24x1xf32> to vector<24x24xf32>
    %76 = arith.subf %72, %75 : vector<24x24xf32>
    %77 = math.exp %76 : vector<24x24xf32>
    %cst_36 = arith.constant dense<0.000000e+00> : vector<24xf32>
    %78 = vector.multi_reduction <add>, %77, %cst_36 [1] : vector<24x24xf32> to vector<24xf32>
    %79 = vector.shape_cast %78 : vector<24xf32> to vector<24x1xf32>
    %80 = tpu.reciprocal %79 {approx = true} : vector<24x1xf32> -> vector<24x1xf32>
    %81 = vector.broadcast %80 : vector<24x1xf32> to vector<24x24xf32>
    %82 = arith.mulf %77, %81 : vector<24x24xf32>
    %cst_37 = arith.constant dense<0.000000e+00> : vector<24x8xf32>
    %83 = tpu.matmul %82, %66, %cst_37 {dimension_numbers = #tpu.dot_dimension_numbers<[1], [0], [0], [1], [0, 0, 1, 1], [], []>} : vector<24x24xf32>, vector<24x8xf32>, vector<24x8xf32> -> vector<24x8xf32>
    %84 = vector.extract_strided_slice %33 {offsets = [8, 0], sizes = [8, 32], strides = [1, 1]} : vector<32x32xf32> to vector<8x32xf32>
    %cst_38 = arith.constant dense<0.000000e+00> : vector<24x32xf32>
    %85 = tpu.matmul %83, %84, %cst_38 {dimension_numbers = #tpu.dot_dimension_numbers<[1], [0], [0], [1], [0, 0, 1, 1], [], []>} : vector<24x8xf32>, vector<8x32xf32>, vector<24x32xf32> -> vector<24x32xf32>
    %86 = arith.addf %63, %85 : vector<24x32xf32>
    %87 = vector.extract_strided_slice %38 {offsets = [0, 16], sizes = [24, 8], strides = [1, 1]} : vector<24x96xf32> to vector<24x8xf32>
    %88 = vector.extract_strided_slice %38 {offsets = [0, 48], sizes = [24, 8], strides = [1, 1]} : vector<24x96xf32> to vector<24x8xf32>
    %89 = vector.extract_strided_slice %38 {offsets = [0, 80], sizes = [24, 8], strides = [1, 1]} : vector<24x96xf32> to vector<24x8xf32>
    %90 = tpu.transpose %88, [1, 0] : vector<24x8xf32> -> vector<8x24xf32>
    %cst_39 = arith.constant dense<0.000000e+00> : vector<24x24xf32>
    %91 = tpu.matmul %87, %90, %cst_39 {dimension_numbers = #tpu.dot_dimension_numbers<[1], [0], [0], [1], [0, 0, 1, 1], [], []>} : vector<24x8xf32>, vector<8x24xf32>, vector<24x24xf32> -> vector<24x24xf32>
    %cst_40 = arith.constant 0.353553385 : f32
    %92 = vector.broadcast %cst_40 : f32 to vector<24x24xf32>
    %93 = arith.mulf %91, %92 : vector<24x24xf32>
    %cst_41 = arith.constant -1.000000e+30 : f32
    %94 = vector.broadcast %cst_41 : f32 to vector<24x24xf32>
    %95 = arith.select %41, %93, %94 : vector<24x24xi1>, vector<24x24xf32>
    %cst_42 = arith.constant dense<0xFF800000> : vector<24xf32>
    %96 = vector.multi_reduction <maximumf>, %95, %cst_42 [1] : vector<24x24xf32> to vector<24xf32>
    %97 = vector.shape_cast %96 : vector<24xf32> to vector<24x1xf32>
    %98 = vector.broadcast %97 : vector<24x1xf32> to vector<24x24xf32>
    %99 = arith.subf %95, %98 : vector<24x24xf32>
    %100 = math.exp %99 : vector<24x24xf32>
    %cst_43 = arith.constant dense<0.000000e+00> : vector<24xf32>
    %101 = vector.multi_reduction <add>, %100, %cst_43 [1] : vector<24x24xf32> to vector<24xf32>
    %102 = vector.shape_cast %101 : vector<24xf32> to vector<24x1xf32>
    %103 = tpu.reciprocal %102 {approx = true} : vector<24x1xf32> -> vector<24x1xf32>
    %104 = vector.broadcast %103 : vector<24x1xf32> to vector<24x24xf32>
    %105 = arith.mulf %100, %104 : vector<24x24xf32>
    %cst_44 = arith.constant dense<0.000000e+00> : vector<24x8xf32>
    %106 = tpu.matmul %105, %89, %cst_44 {dimension_numbers = #tpu.dot_dimension_numbers<[1], [0], [0], [1], [0, 0, 1, 1], [], []>} : vector<24x24xf32>, vector<24x8xf32>, vector<24x8xf32> -> vector<24x8xf32>
    %107 = vector.extract_strided_slice %33 {offsets = [16, 0], sizes = [8, 32], strides = [1, 1]} : vector<32x32xf32> to vector<8x32xf32>
    %cst_45 = arith.constant dense<0.000000e+00> : vector<24x32xf32>
    %108 = tpu.matmul %106, %107, %cst_45 {dimension_numbers = #tpu.dot_dimension_numbers<[1], [0], [0], [1], [0, 0, 1, 1], [], []>} : vector<24x8xf32>, vector<8x32xf32>, vector<24x32xf32> -> vector<24x32xf32>
    %109 = arith.addf %86, %108 : vector<24x32xf32>
    %110 = vector.extract_strided_slice %38 {offsets = [0, 24], sizes = [24, 8], strides = [1, 1]} : vector<24x96xf32> to vector<24x8xf32>
    %111 = vector.extract_strided_slice %38 {offsets = [0, 56], sizes = [24, 8], strides = [1, 1]} : vector<24x96xf32> to vector<24x8xf32>
    %112 = vector.extract_strided_slice %38 {offsets = [0, 88], sizes = [24, 8], strides = [1, 1]} : vector<24x96xf32> to vector<24x8xf32>
    %113 = tpu.transpose %111, [1, 0] : vector<24x8xf32> -> vector<8x24xf32>
    %cst_46 = arith.constant dense<0.000000e+00> : vector<24x24xf32>
    %114 = tpu.matmul %110, %113, %cst_46 {dimension_numbers = #tpu.dot_dimension_numbers<[1], [0], [0], [1], [0, 0, 1, 1], [], []>} : vector<24x8xf32>, vector<8x24xf32>, vector<24x24xf32> -> vector<24x24xf32>
    %cst_47 = arith.constant 0.353553385 : f32
    %115 = vector.broadcast %cst_47 : f32 to vector<24x24xf32>
    %116 = arith.mulf %114, %115 : vector<24x24xf32>
    %cst_48 = arith.constant -1.000000e+30 : f32
    %117 = vector.broadcast %cst_48 : f32 to vector<24x24xf32>
    %118 = arith.select %41, %116, %117 : vector<24x24xi1>, vector<24x24xf32>
    %cst_49 = arith.constant dense<0xFF800000> : vector<24xf32>
    %119 = vector.multi_reduction <maximumf>, %118, %cst_49 [1] : vector<24x24xf32> to vector<24xf32>
    %120 = vector.shape_cast %119 : vector<24xf32> to vector<24x1xf32>
    %121 = vector.broadcast %120 : vector<24x1xf32> to vector<24x24xf32>
    %122 = arith.subf %118, %121 : vector<24x24xf32>
    %123 = math.exp %122 : vector<24x24xf32>
    %cst_50 = arith.constant dense<0.000000e+00> : vector<24xf32>
    %124 = vector.multi_reduction <add>, %123, %cst_50 [1] : vector<24x24xf32> to vector<24xf32>
    %125 = vector.shape_cast %124 : vector<24xf32> to vector<24x1xf32>
    %126 = tpu.reciprocal %125 {approx = true} : vector<24x1xf32> -> vector<24x1xf32>
    %127 = vector.broadcast %126 : vector<24x1xf32> to vector<24x24xf32>
    %128 = arith.mulf %123, %127 : vector<24x24xf32>
    %cst_51 = arith.constant dense<0.000000e+00> : vector<24x8xf32>
    %129 = tpu.matmul %128, %112, %cst_51 {dimension_numbers = #tpu.dot_dimension_numbers<[1], [0], [0], [1], [0, 0, 1, 1], [], []>} : vector<24x24xf32>, vector<24x8xf32>, vector<24x8xf32> -> vector<24x8xf32>
    %130 = vector.extract_strided_slice %33 {offsets = [24, 0], sizes = [8, 32], strides = [1, 1]} : vector<32x32xf32> to vector<8x32xf32>
    %cst_52 = arith.constant dense<0.000000e+00> : vector<24x32xf32>
    %131 = tpu.matmul %129, %130, %cst_52 {dimension_numbers = #tpu.dot_dimension_numbers<[1], [0], [0], [1], [0, 0, 1, 1], [], []>} : vector<24x8xf32>, vector<8x32xf32>, vector<24x32xf32> -> vector<24x32xf32>
    %132 = arith.addf %109, %131 : vector<24x32xf32>
    %133 = vector.broadcast %35 : vector<1x32xf32> to vector<24x32xf32>
    %134 = arith.addf %132, %133 : vector<24x32xf32>
    %135 = arith.addf %3, %134 : vector<24x32xf32>
    %c0_53 = arith.constant 0 : index
    %c0_54 = arith.constant 0 : index
    %c0_55 = arith.constant 0 : index
    %136 = vector.load %arg11[%c0_53, %c0_54, %c0_55] : memref<1x1x32xf32, #tpu.memory_space<vmem>>, vector<1x1x32xf32>
    %137 = vector.shape_cast %136 : vector<1x1x32xf32> to vector<1x32xf32>
    %c0_56 = arith.constant 0 : index
    %c0_57 = arith.constant 0 : index
    %c0_58 = arith.constant 0 : index
    %138 = vector.load %arg12[%c0_56, %c0_57, %c0_58] : memref<1x1x32xf32, #tpu.memory_space<vmem>>, vector<1x1x32xf32>
    %139 = vector.shape_cast %138 : vector<1x1x32xf32> to vector<1x32xf32>
    %cst_59 = arith.constant dense<0.000000e+00> : vector<24xf32>
    %140 = vector.multi_reduction <add>, %135, %cst_59 [1] : vector<24x32xf32> to vector<24xf32>
    %141 = vector.shape_cast %140 : vector<24xf32> to vector<24x1xf32>
    %cst_60 = arith.constant 3.200000e+01 : f32
    %142 = vector.broadcast %cst_60 : f32 to vector<24x1xf32>
    %143 = arith.divf %141, %142 : vector<24x1xf32>
    %144 = vector.broadcast %143 : vector<24x1xf32> to vector<24x32xf32>
    %145 = arith.subf %135, %144 : vector<24x32xf32>
    %146 = arith.mulf %145, %145 : vector<24x32xf32>
    %cst_61 = arith.constant dense<0.000000e+00> : vector<24xf32>
    %147 = vector.multi_reduction <add>, %146, %cst_61 [1] : vector<24x32xf32> to vector<24xf32>
    %148 = vector.shape_cast %147 : vector<24xf32> to vector<24x1xf32>
    %cst_62 = arith.constant 3.200000e+01 : f32
    %149 = vector.broadcast %cst_62 : f32 to vector<24x1xf32>
    %150 = arith.divf %148, %149 : vector<24x1xf32>
    %cst_63 = arith.constant 9.99999997E-7 : f32
    %151 = vector.broadcast %cst_63 : f32 to vector<24x1xf32>
    %152 = arith.addf %150, %151 : vector<24x1xf32>
    %153 = math.rsqrt %152 : vector<24x1xf32>
    %154 = vector.broadcast %153 : vector<24x1xf32> to vector<24x32xf32>
    %155 = arith.mulf %145, %154 : vector<24x32xf32>
    %156 = vector.broadcast %137 : vector<1x32xf32> to vector<24x32xf32>
    %157 = arith.mulf %155, %156 : vector<24x32xf32>
    %158 = vector.broadcast %139 : vector<1x32xf32> to vector<24x32xf32>
    %159 = arith.addf %157, %158 : vector<24x32xf32>
    %c0_64 = arith.constant 0 : index
    %c0_65 = arith.constant 0 : index
    %c0_66 = arith.constant 0 : index
    %160 = vector.load %arg13[%c0_64, %c0_65, %c0_66] : memref<1x32x128xf32, #tpu.memory_space<vmem>>, vector<1x32x128xf32>
    %161 = vector.shape_cast %160 : vector<1x32x128xf32> to vector<32x128xf32>
    %cst_67 = arith.constant dense<0.000000e+00> : vector<24x128xf32>
    %162 = tpu.matmul %159, %161, %cst_67 {dimension_numbers = #tpu.dot_dimension_numbers<[1], [0], [0], [1], [0, 0, 1, 1], [], []>} : vector<24x32xf32>, vector<32x128xf32>, vector<24x128xf32> -> vector<24x128xf32>
    %c0_68 = arith.constant 0 : index
    %c0_69 = arith.constant 0 : index
    %c0_70 = arith.constant 0 : index
    %163 = vector.load %arg14[%c0_68, %c0_69, %c0_70] : memref<1x1x128xf32, #tpu.memory_space<vmem>>, vector<1x1x128xf32>
    %164 = vector.shape_cast %163 : vector<1x1x128xf32> to vector<1x128xf32>
    %165 = vector.broadcast %164 : vector<1x128xf32> to vector<24x128xf32>
    %166 = arith.addf %162, %165 : vector<24x128xf32>
    %cst_71 = arith.constant 5.000000e-01 : f32
    %167 = vector.broadcast %cst_71 : f32 to vector<24x128xf32>
    %168 = arith.mulf %167, %166 : vector<24x128xf32>
    %cst_72 = arith.constant 4.471500e-02 : f32
    %169 = vector.broadcast %cst_72 : f32 to vector<24x128xf32>
    %170 = arith.mulf %169, %166 : vector<24x128xf32>
    %171 = arith.mulf %170, %166 : vector<24x128xf32>
    %172 = arith.mulf %171, %166 : vector<24x128xf32>
    %173 = arith.addf %166, %172 : vector<24x128xf32>
    %cst_73 = arith.constant 0.797884583 : f32
    %174 = vector.broadcast %cst_73 : f32 to vector<24x128xf32>
    %175 = arith.mulf %174, %173 : vector<24x128xf32>
    %176 = math.tanh %175 : vector<24x128xf32>
    %cst_74 = arith.constant 1.000000e+00 : f32
    %177 = vector.broadcast %cst_74 : f32 to vector<24x128xf32>
    %178 = arith.addf %177, %176 : vector<24x128xf32>
    %179 = arith.mulf %168, %178 : vector<24x128xf32>
    %c0_75 = arith.constant 0 : index
    %c0_76 = arith.constant 0 : index
    %c0_77 = arith.constant 0 : index
    %180 = vector.load %arg15[%c0_75, %c0_76, %c0_77] : memref<1x128x32xf32, #tpu.memory_space<vmem>>, vector<1x128x32xf32>
    %181 = vector.shape_cast %180 : vector<1x128x32xf32> to vector<128x32xf32>
    %cst_78 = arith.constant dense<0.000000e+00> : vector<24x32xf32>
    %182 = tpu.matmul %179, %181, %cst_78 {dimension_numbers = #tpu.dot_dimension_numbers<[1], [0], [0], [1], [0, 0, 1, 1], [], []>} : vector<24x128xf32>, vector<128x32xf32>, vector<24x32xf32> -> vector<24x32xf32>
    %c0_79 = arith.constant 0 : index
    %c0_80 = arith.constant 0 : index
    %c0_81 = arith.constant 0 : index
    %183 = vector.load %arg16[%c0_79, %c0_80, %c0_81] : memref<1x1x32xf32, #tpu.memory_space<vmem>>, vector<1x1x32xf32>
    %184 = vector.shape_cast %183 : vector<1x1x32xf32> to vector<1x32xf32>
    %185 = vector.broadcast %184 : vector<1x32xf32> to vector<24x32xf32>
    %186 = arith.addf %182, %185 : vector<24x32xf32>
    %187 = arith.addf %135, %186 : vector<24x32xf32>
    %c0_82 = arith.constant 0 : index
    %c0_83 = arith.constant 0 : index
    %188 = vector.load %arg18[%c0_82, %c0_83] : memref<24x32xf32, #tpu.memory_space<vmem>>, vector<24x32xf32>
    tpu.vector_store %arg18[%c0_82, %c0_83], %187 {strides = array<i32>} : memref<24x32xf32, #tpu.memory_space<vmem>>, vector<24x32xf32>,
    %c3_i32 = arith.constant 3 : i32
    %189 = arith.cmpi eq, %arg1, %c3_i32 : i32
    %190 = arith.extui %189 : i1 to i32
    %c0_i32_84 = arith.constant 0 : i32
    %191 = arith.cmpi ne, %190, %c0_i32_84 : i32
    scf.if %191 {
      %c0_87 = arith.constant 0 : index
      %c0_88 = arith.constant 0 : index
      %c0_89 = arith.constant 0 : index
      %c0_90 = arith.constant 0 : index
      %198 = vector.load %arg17[%c0_87, %c0_88, %c0_89, %c0_90] : memref<3x1x24x32xf32, #tpu.memory_space<vmem>>, vector<1x1x24x32xf32>
      %199 = vector.shape_cast %198 : vector<1x1x24x32xf32> to vector<24x32xf32>
      %200 = vector.shape_cast %187 : vector<24x32xf32> to vector<1x1x24x32xf32>
      tpu.vector_store %arg17[%c0_87, %c0_88, %c0_89, %c0_90], %200 {strides = array<i32>} : memref<3x1x24x32xf32, #tpu.memory_space<vmem>>, vector<1x1x24x32xf32>,
    } else {
    }
    %c6_i32 = arith.constant 6 : i32
    %192 = arith.cmpi eq, %arg1, %c6_i32 : i32
    %193 = arith.extui %192 : i1 to i32
    %c0_i32_85 = arith.constant 0 : i32
    %194 = arith.cmpi ne, %193, %c0_i32_85 : i32
    scf.if %194 {
      %c1 = arith.constant 1 : index
      %c0_87 = arith.constant 0 : index
      %c0_88 = arith.constant 0 : index
      %c0_89 = arith.constant 0 : index
      %198 = vector.load %arg17[%c1, %c0_87, %c0_88, %c0_89] : memref<3x1x24x32xf32, #tpu.memory_space<vmem>>, vector<1x1x24x32xf32>
      %199 = vector.shape_cast %198 : vector<1x1x24x32xf32> to vector<24x32xf32>
      %200 = vector.shape_cast %187 : vector<24x32xf32> to vector<1x1x24x32xf32>
      tpu.vector_store %arg17[%c1, %c0_87, %c0_88, %c0_89], %200 {strides = array<i32>} : memref<3x1x24x32xf32, #tpu.memory_space<vmem>>, vector<1x1x24x32xf32>,
    } else {
    }
    %c9_i32 = arith.constant 9 : i32
    %195 = arith.cmpi eq, %arg1, %c9_i32 : i32
    %196 = arith.extui %195 : i1 to i32
    %c0_i32_86 = arith.constant 0 : i32
    %197 = arith.cmpi ne, %196, %c0_i32_86 : i32
    scf.if %197 {
      %c2 = arith.constant 2 : index
      %c0_87 = arith.constant 0 : index
      %c0_88 = arith.constant 0 : index
      %c0_89 = arith.constant 0 : index
      %198 = vector.load %arg17[%c2, %c0_87, %c0_88, %c0_89] : memref<3x1x24x32xf32, #tpu.memory_space<vmem>>, vector<1x1x24x32xf32>
      %199 = vector.shape_cast %198 : vector<1x1x24x32xf32> to vector<24x32xf32>
      %200 = vector.shape_cast %187 : vector<24x32xf32> to vector<1x1x24x32xf32>
      tpu.vector_store %arg17[%c2, %c0_87, %c0_88, %c0_89], %200 {strides = array<i32>} : memref<3x1x24x32xf32, #tpu.memory_space<vmem>>, vector<1x1x24x32xf32>,
    } else {
    }
    return
  }
  func.func @transform_0(%arg0: i32, %arg1: i32) -> (i32, i32, i32) {
    %c0_i32 = arith.constant 0 : i32
    %c0_i32_0 = arith.constant 0 : i32
    %c0_i32_1 = arith.constant 0 : i32
    return %arg0, %c0_i32, %c0_i32_0 : i32, i32, i32
  }
  func.func @transform_1(%arg0: i32, %arg1: i32) -> (i32, i32) {
    %c0_i32 = arith.constant 0 : i32
    %c0_i32_0 = arith.constant 0 : i32
    %c0_i32_1 = arith.constant 0 : i32
    return %c0_i32, %c0_i32_0 : i32, i32
  }
  func.func @transform_2(%arg0: i32, %arg1: i32) -> (i32, i32) {
    %c0_i32 = arith.constant 0 : i32
    %c0_i32_0 = arith.constant 0 : i32
    %c0_i32_1 = arith.constant 0 : i32
    return %c0_i32, %c0_i32_0 : i32, i32
  }
  func.func @transform_3(%arg0: i32, %arg1: i32) -> (i32, i32, i32) {
    %c0_i32 = arith.constant 0 : i32
    %c0_i32_0 = arith.constant 0 : i32
    %c0_i32_1 = arith.constant 0 : i32
    return %arg1, %c0_i32, %c0_i32_0 : i32, i32, i32
  }
  func.func @transform_4(%arg0: i32, %arg1: i32) -> (i32, i32, i32) {
    %c0_i32 = arith.constant 0 : i32
    %c0_i32_0 = arith.constant 0 : i32
    %c0_i32_1 = arith.constant 0 : i32
    return %arg1, %c0_i32, %c0_i32_0 : i32, i32, i32
  }
  func.func @transform_5(%arg0: i32, %arg1: i32) -> (i32, i32, i32) {
    %c0_i32 = arith.constant 0 : i32
    %c0_i32_0 = arith.constant 0 : i32
    %c0_i32_1 = arith.constant 0 : i32
    return %arg1, %c0_i32, %c0_i32_0 : i32, i32, i32
  }
  func.func @transform_6(%arg0: i32, %arg1: i32) -> (i32, i32, i32) {
    %c0_i32 = arith.constant 0 : i32
    %c0_i32_0 = arith.constant 0 : i32
    %c0_i32_1 = arith.constant 0 : i32
    return %arg1, %c0_i32, %c0_i32_0 : i32, i32, i32
  }
  func.func @transform_7(%arg0: i32, %arg1: i32) -> (i32, i32, i32) {
    %c0_i32 = arith.constant 0 : i32
    %c0_i32_0 = arith.constant 0 : i32
    %c0_i32_1 = arith.constant 0 : i32
    return %arg1, %c0_i32, %c0_i32_0 : i32, i32, i32
  }
  func.func @transform_8(%arg0: i32, %arg1: i32) -> (i32, i32, i32) {
    %c0_i32 = arith.constant 0 : i32
    %c0_i32_0 = arith.constant 0 : i32
    %c0_i32_1 = arith.constant 0 : i32
    return %arg1, %c0_i32, %c0_i32_0 : i32, i32, i32
  }
  func.func @transform_9(%arg0: i32, %arg1: i32) -> (i32, i32, i32) {
    %c0_i32 = arith.constant 0 : i32
    %c0_i32_0 = arith.constant 0 : i32
    %c0_i32_1 = arith.constant 0 : i32
    return %arg1, %c0_i32, %c0_i32_0 : i32, i32, i32
  }
  func.func @transform_10(%arg0: i32, %arg1: i32) -> (i32, i32, i32) {
    %c0_i32 = arith.constant 0 : i32
    %c0_i32_0 = arith.constant 0 : i32
    %c0_i32_1 = arith.constant 0 : i32
    return %arg1, %c0_i32, %c0_i32_0 : i32, i32, i32
  }
  func.func @transform_11(%arg0: i32, %arg1: i32) -> (i32, i32, i32) {
    %c0_i32 = arith.constant 0 : i32
    %c0_i32_0 = arith.constant 0 : i32
    %c0_i32_1 = arith.constant 0 : i32
    return %arg1, %c0_i32, %c0_i32_0 : i32, i32, i32
  }
  func.func @transform_12(%arg0: i32, %arg1: i32) -> (i32, i32, i32) {
    %c0_i32 = arith.constant 0 : i32
    %c0_i32_0 = arith.constant 0 : i32
    %c0_i32_1 = arith.constant 0 : i32
    return %arg1, %c0_i32, %c0_i32_0 : i32, i32, i32
  }
  func.func @transform_13(%arg0: i32, %arg1: i32) -> (i32, i32, i32) {
    %c0_i32 = arith.constant 0 : i32
    %c0_i32_0 = arith.constant 0 : i32
    %c0_i32_1 = arith.constant 0 : i32
    return %arg1, %c0_i32, %c0_i32_0 : i32, i32, i32
  }
  func.func @transform_14(%arg0: i32, %arg1: i32) -> (i32, i32, i32) {
    %c0_i32 = arith.constant 0 : i32
    %c0_i32_0 = arith.constant 0 : i32
    %c0_i32_1 = arith.constant 0 : i32
    return %arg1, %c0_i32, %c0_i32_0 : i32, i32, i32
  }
  func.func @transform_15(%arg0: i32, %arg1: i32) -> (i32, i32, i32, i32) {
    %c0_i32 = arith.constant 0 : i32
    %c0_i32_0 = arith.constant 0 : i32
    %c0_i32_1 = arith.constant 0 : i32
    %c0_i32_2 = arith.constant 0 : i32
    return %c0_i32, %arg0, %c0_i32_0, %c0_i32_1 : i32, i32, i32, i32
  }
}

module attributes {stable_mosaic.version = 11 : i64} {
  func.func @_decoder_kernel(%arg0: i32, %arg1: i32, %arg2: memref<1x1x24x32xf32, #tpu.memory_space<vmem>>, %arg3: memref<1x1x16xf32, #tpu.memory_space<vmem>>, %arg4: memref<16x16xf32, #tpu.memory_space<vmem>>, %arg5: memref<1x16xf32, #tpu.memory_space<vmem>>, %arg6: memref<16x16xf32, #tpu.memory_space<vmem>>, %arg7: memref<1x16xf32, #tpu.memory_space<vmem>>, %arg8: memref<1x32x16xf32, #tpu.memory_space<vmem>>, %arg9: memref<1x1x16xf32, #tpu.memory_space<vmem>>, %arg10: memref<1x16x48xf32, #tpu.memory_space<vmem>>, %arg11: memref<1x1x48xf32, #tpu.memory_space<vmem>>, %arg12: memref<1x16x16xf32, #tpu.memory_space<vmem>>, %arg13: memref<1x1x16xf32, #tpu.memory_space<vmem>>, %arg14: memref<1x1x16xf32, #tpu.memory_space<vmem>>, %arg15: memref<1x1x16xf32, #tpu.memory_space<vmem>>, %arg16: memref<1x16x32xf32, #tpu.memory_space<vmem>>, %arg17: memref<1x1x32xf32, #tpu.memory_space<vmem>>, %arg18: memref<1x32x16xf32, #tpu.memory_space<vmem>>, %arg19: memref<1x1x16xf32, #tpu.memory_space<vmem>>, %arg20: memref<1x1x16xf32, #tpu.memory_space<vmem>>, %arg21: memref<1x1x16xf32, #tpu.memory_space<vmem>>, %arg22: memref<16x64xf32, #tpu.memory_space<vmem>>, %arg23: memref<1x64xf32, #tpu.memory_space<vmem>>, %arg24: memref<1x16x64xf32, #tpu.memory_space<vmem>>, %arg25: memref<24x16xf32, #tpu.memory_space<vmem>>) attributes {dimension_semantics = [#tpu.dimension_semantics<parallel>, #tpu.dimension_semantics<arbitrary>], iteration_bounds = array<i64: 2, 3>, scalar_prefetch = 0 : i64, scratch_operands = 1 : i64, tpu.core_type = #tpu.core_type<tc>, window_params = [{transform_indices = @transform_0, window_bounds = array<i64: 1, 1, 24, 32>}, {transform_indices = @transform_1, window_bounds = array<i64: 1, 1, 16>}, {pipeline_mode = #tpu.pipeline_mode<synchronous>, transform_indices = @transform_2, window_bounds = array<i64: 16, 16>}, {pipeline_mode = #tpu.pipeline_mode<synchronous>, transform_indices = @transform_3, window_bounds = array<i64: 1, 16>}, {pipeline_mode = #tpu.pipeline_mode<synchronous>, transform_indices = @transform_4, window_bounds = array<i64: 16, 16>}, {pipeline_mode = #tpu.pipeline_mode<synchronous>, transform_indices = @transform_5, window_bounds = array<i64: 1, 16>}, {transform_indices = @transform_6, window_bounds = array<i64: 1, 32, 16>}, {transform_indices = @transform_7, window_bounds = array<i64: 1, 1, 16>}, {transform_indices = @transform_8, window_bounds = array<i64: 1, 16, 48>}, {transform_indices = @transform_9, window_bounds = array<i64: 1, 1, 48>}, {transform_indices = @transform_10, window_bounds = array<i64: 1, 16, 16>}, {transform_indices = @transform_11, window_bounds = array<i64: 1, 1, 16>}, {transform_indices = @transform_12, window_bounds = array<i64: 1, 1, 16>}, {transform_indices = @transform_13, window_bounds = array<i64: 1, 1, 16>}, {transform_indices = @transform_14, window_bounds = array<i64: 1, 16, 32>}, {transform_indices = @transform_15, window_bounds = array<i64: 1, 1, 32>}, {transform_indices = @transform_16, window_bounds = array<i64: 1, 32, 16>}, {transform_indices = @transform_17, window_bounds = array<i64: 1, 1, 16>}, {transform_indices = @transform_18, window_bounds = array<i64: 1, 1, 16>}, {transform_indices = @transform_19, window_bounds = array<i64: 1, 1, 16>}, {pipeline_mode = #tpu.pipeline_mode<synchronous>, transform_indices = @transform_20, window_bounds = array<i64: 16, 64>}, {pipeline_mode = #tpu.pipeline_mode<synchronous>, transform_indices = @transform_21, window_bounds = array<i64: 1, 64>}, {transform_indices = @transform_22, window_bounds = array<i64: 1, 16, 64>}]} {
    %c0 = arith.constant 0 : index
    %c0_0 = arith.constant 0 : index
    %c0_1 = arith.constant 0 : index
    %c0_2 = arith.constant 0 : index
    %0 = vector.load %arg2[%c0, %c0_0, %c0_1, %c0_2] : memref<1x1x24x32xf32, #tpu.memory_space<vmem>>, vector<1x1x24x32xf32>
    %1 = vector.shape_cast %0 : vector<1x1x24x32xf32> to vector<24x32xf32>
    %c0_3 = arith.constant 0 : index
    %c0_4 = arith.constant 0 : index
    %c0_5 = arith.constant 0 : index
    %2 = vector.load %arg8[%c0_3, %c0_4, %c0_5] : memref<1x32x16xf32, #tpu.memory_space<vmem>>, vector<1x32x16xf32>
    %3 = vector.shape_cast %2 : vector<1x32x16xf32> to vector<32x16xf32>
    %cst = arith.constant dense<0.000000e+00> : vector<24x16xf32>
    %4 = tpu.matmul %1, %3, %cst {dimension_numbers = #tpu.dot_dimension_numbers<[1], [0], [0], [1], [0, 0, 1, 1], [], []>} : vector<24x32xf32>, vector<32x16xf32>, vector<24x16xf32> -> vector<24x16xf32>
    %c0_6 = arith.constant 0 : index
    %c0_7 = arith.constant 0 : index
    %c0_8 = arith.constant 0 : index
    %5 = vector.load %arg9[%c0_6, %c0_7, %c0_8] : memref<1x1x16xf32, #tpu.memory_space<vmem>>, vector<1x1x16xf32>
    %6 = vector.shape_cast %5 : vector<1x1x16xf32> to vector<1x16xf32>
    %7 = vector.broadcast %6 : vector<1x16xf32> to vector<24x16xf32>
    %8 = arith.addf %4, %7 : vector<24x16xf32>
    %c0_i32 = arith.constant 0 : i32
    %9 = arith.cmpi eq, %arg1, %c0_i32 : i32
    %10 = arith.extui %9 : i1 to i32
    %c0_i32_9 = arith.constant 0 : i32
    %11 = arith.cmpi ne, %10, %c0_i32_9 : i32
    scf.if %11 {
      %c0_95 = arith.constant 0 : index
      %c0_96 = arith.constant 0 : index
      %c0_97 = arith.constant 0 : index
      %193 = vector.load %arg3[%c0_95, %c0_96, %c0_97] : memref<1x1x16xf32, #tpu.memory_space<vmem>>, vector<1x1x16xf32>
      %194 = vector.shape_cast %193 : vector<1x1x16xf32> to vector<1x16xf32>
      %c0_98 = arith.constant 0 : index
      %c0_99 = arith.constant 0 : index
      %195 = vector.load %arg4[%c0_98, %c0_99] : memref<16x16xf32, #tpu.memory_space<vmem>>, vector<16x16xf32>
      %cst_100 = arith.constant dense<0.000000e+00> : vector<1x16xf32>
      %196 = tpu.matmul %194, %195, %cst_100 {dimension_numbers = #tpu.dot_dimension_numbers<[1], [0], [0], [1], [0, 0, 1, 1], [], []>} : vector<1x16xf32>, vector<16x16xf32>, vector<1x16xf32> -> vector<1x16xf32>
      %c0_101 = arith.constant 0 : index
      %c0_102 = arith.constant 0 : index
      %197 = vector.load %arg5[%c0_101, %c0_102] : memref<1x16xf32, #tpu.memory_space<vmem>>, vector<1x16xf32>
      %198 = arith.addf %196, %197 : vector<1x16xf32>
      %c0_103 = arith.constant 0 : index
      %c0_104 = arith.constant 0 : index
      %c0_105 = arith.constant 0 : index
      %199 = vector.load %arg3[%c0_103, %c0_104, %c0_105] : memref<1x1x16xf32, #tpu.memory_space<vmem>>, vector<1x1x16xf32>
      %200 = vector.shape_cast %199 : vector<1x1x16xf32> to vector<1x16xf32>
      %c0_106 = arith.constant 0 : index
      %c0_107 = arith.constant 0 : index
      %201 = vector.load %arg6[%c0_106, %c0_107] : memref<16x16xf32, #tpu.memory_space<vmem>>, vector<16x16xf32>
      %cst_108 = arith.constant dense<0.000000e+00> : vector<1x16xf32>
      %202 = tpu.matmul %200, %201, %cst_108 {dimension_numbers = #tpu.dot_dimension_numbers<[1], [0], [0], [1], [0, 0, 1, 1], [], []>} : vector<1x16xf32>, vector<16x16xf32>, vector<1x16xf32> -> vector<1x16xf32>
      %c0_109 = arith.constant 0 : index
      %c0_110 = arith.constant 0 : index
      %203 = vector.load %arg7[%c0_109, %c0_110] : memref<1x16xf32, #tpu.memory_space<vmem>>, vector<1x16xf32>
      %204 = arith.addf %202, %203 : vector<1x16xf32>
      %205 = vector.broadcast %198 : vector<1x16xf32> to vector<24x16xf32>
      %206 = arith.mulf %205, %8 : vector<24x16xf32>
      %207 = vector.broadcast %204 : vector<1x16xf32> to vector<24x16xf32>
      %208 = arith.addf %206, %207 : vector<24x16xf32>
      %c0_111 = arith.constant 0 : index
      %c0_112 = arith.constant 0 : index
      %209 = vector.load %arg25[%c0_111, %c0_112] : memref<24x16xf32, #tpu.memory_space<vmem>>, vector<24x16xf32>
      tpu.vector_store %arg25[%c0_111, %c0_112], %208 {strides = array<i32>} : memref<24x16xf32, #tpu.memory_space<vmem>>, vector<24x16xf32>,
    } else {
    }
    %c0_i32_10 = arith.constant 0 : i32
    %12 = arith.cmpi sgt, %arg1, %c0_i32_10 : i32
    %13 = arith.extui %12 : i1 to i32
    %c0_i32_11 = arith.constant 0 : i32
    %14 = arith.cmpi ne, %13, %c0_i32_11 : i32
    scf.if %14 {
      %c0_95 = arith.constant 0 : index
      %c0_96 = arith.constant 0 : index
      %193 = vector.load %arg25[%c0_95, %c0_96] : memref<24x16xf32, #tpu.memory_space<vmem>>, vector<24x16xf32>
      %194 = arith.addf %8, %193 : vector<24x16xf32>
      %c0_97 = arith.constant 0 : index
      %c0_98 = arith.constant 0 : index
      %195 = vector.load %arg25[%c0_97, %c0_98] : memref<24x16xf32, #tpu.memory_space<vmem>>, vector<24x16xf32>
      tpu.vector_store %arg25[%c0_97, %c0_98], %194 {strides = array<i32>} : memref<24x16xf32, #tpu.memory_space<vmem>>, vector<24x16xf32>,
    } else {
    }
    %c0_12 = arith.constant 0 : index
    %c0_13 = arith.constant 0 : index
    %15 = vector.load %arg25[%c0_12, %c0_13] : memref<24x16xf32, #tpu.memory_space<vmem>>, vector<24x16xf32>
    %c0_14 = arith.constant 0 : index
    %c0_15 = arith.constant 0 : index
    %c0_16 = arith.constant 0 : index
    %16 = vector.load %arg10[%c0_14, %c0_15, %c0_16] : memref<1x16x48xf32, #tpu.memory_space<vmem>>, vector<1x16x48xf32>
    %17 = vector.shape_cast %16 : vector<1x16x48xf32> to vector<16x48xf32>
    %c0_17 = arith.constant 0 : index
    %c0_18 = arith.constant 0 : index
    %c0_19 = arith.constant 0 : index
    %18 = vector.load %arg11[%c0_17, %c0_18, %c0_19] : memref<1x1x48xf32, #tpu.memory_space<vmem>>, vector<1x1x48xf32>
    %19 = vector.shape_cast %18 : vector<1x1x48xf32> to vector<1x48xf32>
    %c0_20 = arith.constant 0 : index
    %c0_21 = arith.constant 0 : index
    %c0_22 = arith.constant 0 : index
    %20 = vector.load %arg12[%c0_20, %c0_21, %c0_22] : memref<1x16x16xf32, #tpu.memory_space<vmem>>, vector<1x16x16xf32>
    %21 = vector.shape_cast %20 : vector<1x16x16xf32> to vector<16x16xf32>
    %c0_23 = arith.constant 0 : index
    %c0_24 = arith.constant 0 : index
    %c0_25 = arith.constant 0 : index
    %22 = vector.load %arg13[%c0_23, %c0_24, %c0_25] : memref<1x1x16xf32, #tpu.memory_space<vmem>>, vector<1x1x16xf32>
    %23 = vector.shape_cast %22 : vector<1x1x16xf32> to vector<1x16xf32>
    %cst_26 = arith.constant dense<0.000000e+00> : vector<24x48xf32>
    %24 = tpu.matmul %15, %17, %cst_26 {dimension_numbers = #tpu.dot_dimension_numbers<[1], [0], [0], [1], [0, 0, 1, 1], [], []>} : vector<24x16xf32>, vector<16x48xf32>, vector<24x48xf32> -> vector<24x48xf32>
    %25 = vector.broadcast %19 : vector<1x48xf32> to vector<24x48xf32>
    %26 = arith.addf %24, %25 : vector<24x48xf32>
    %27 = tpu.iota {dimensions = array<i32: 1>} : vector<24x24xi32>
    %c17_i32 = arith.constant 17 : i32
    %28 = vector.broadcast %c17_i32 : i32 to vector<24x24xi32>
    %29 = arith.cmpi slt, %27, %28 : vector<24x24xi32>
    %30 = vector.extract_strided_slice %26 {offsets = [0, 0], sizes = [24, 4], strides = [1, 1]} : vector<24x48xf32> to vector<24x4xf32>
    %31 = vector.extract_strided_slice %26 {offsets = [0, 16], sizes = [24, 4], strides = [1, 1]} : vector<24x48xf32> to vector<24x4xf32>
    %32 = vector.extract_strided_slice %26 {offsets = [0, 32], sizes = [24, 4], strides = [1, 1]} : vector<24x48xf32> to vector<24x4xf32>
    %33 = tpu.transpose %31, [1, 0] : vector<24x4xf32> -> vector<4x24xf32>
    %cst_27 = arith.constant dense<0.000000e+00> : vector<24x24xf32>
    %34 = tpu.matmul %30, %33, %cst_27 {dimension_numbers = #tpu.dot_dimension_numbers<[1], [0], [0], [1], [0, 0, 1, 1], [], []>} : vector<24x4xf32>, vector<4x24xf32>, vector<24x24xf32> -> vector<24x24xf32>
    %cst_28 = arith.constant 5.000000e-01 : f32
    %35 = vector.broadcast %cst_28 : f32 to vector<24x24xf32>
    %36 = arith.mulf %34, %35 : vector<24x24xf32>
    %cst_29 = arith.constant -1.000000e+30 : f32
    %37 = vector.broadcast %cst_29 : f32 to vector<24x24xf32>
    %38 = arith.select %29, %36, %37 : vector<24x24xi1>, vector<24x24xf32>
    %cst_30 = arith.constant dense<0xFF800000> : vector<24xf32>
    %39 = vector.multi_reduction <maximumf>, %38, %cst_30 [1] : vector<24x24xf32> to vector<24xf32>
    %40 = vector.shape_cast %39 : vector<24xf32> to vector<24x1xf32>
    %41 = vector.broadcast %40 : vector<24x1xf32> to vector<24x24xf32>
    %42 = arith.subf %38, %41 : vector<24x24xf32>
    %43 = math.exp %42 : vector<24x24xf32>
    %cst_31 = arith.constant dense<0.000000e+00> : vector<24xf32>
    %44 = vector.multi_reduction <add>, %43, %cst_31 [1] : vector<24x24xf32> to vector<24xf32>
    %45 = vector.shape_cast %44 : vector<24xf32> to vector<24x1xf32>
    %46 = tpu.reciprocal %45 {approx = true} : vector<24x1xf32> -> vector<24x1xf32>
    %47 = vector.broadcast %46 : vector<24x1xf32> to vector<24x24xf32>
    %48 = arith.mulf %43, %47 : vector<24x24xf32>
    %cst_32 = arith.constant dense<0.000000e+00> : vector<24x4xf32>
    %49 = tpu.matmul %48, %32, %cst_32 {dimension_numbers = #tpu.dot_dimension_numbers<[1], [0], [0], [1], [0, 0, 1, 1], [], []>} : vector<24x24xf32>, vector<24x4xf32>, vector<24x4xf32> -> vector<24x4xf32>
    %50 = vector.extract_strided_slice %21 {offsets = [0, 0], sizes = [4, 16], strides = [1, 1]} : vector<16x16xf32> to vector<4x16xf32>
    %cst_33 = arith.constant dense<0.000000e+00> : vector<24x16xf32>
    %51 = tpu.matmul %49, %50, %cst_33 {dimension_numbers = #tpu.dot_dimension_numbers<[1], [0], [0], [1], [0, 0, 1, 1], [], []>} : vector<24x4xf32>, vector<4x16xf32>, vector<24x16xf32> -> vector<24x16xf32>
    %52 = vector.extract_strided_slice %26 {offsets = [0, 4], sizes = [24, 4], strides = [1, 1]} : vector<24x48xf32> to vector<24x4xf32>
    %53 = vector.extract_strided_slice %26 {offsets = [0, 20], sizes = [24, 4], strides = [1, 1]} : vector<24x48xf32> to vector<24x4xf32>
    %54 = vector.extract_strided_slice %26 {offsets = [0, 36], sizes = [24, 4], strides = [1, 1]} : vector<24x48xf32> to vector<24x4xf32>
    %55 = tpu.transpose %53, [1, 0] : vector<24x4xf32> -> vector<4x24xf32>
    %cst_34 = arith.constant dense<0.000000e+00> : vector<24x24xf32>
    %56 = tpu.matmul %52, %55, %cst_34 {dimension_numbers = #tpu.dot_dimension_numbers<[1], [0], [0], [1], [0, 0, 1, 1], [], []>} : vector<24x4xf32>, vector<4x24xf32>, vector<24x24xf32> -> vector<24x24xf32>
    %cst_35 = arith.constant 5.000000e-01 : f32
    %57 = vector.broadcast %cst_35 : f32 to vector<24x24xf32>
    %58 = arith.mulf %56, %57 : vector<24x24xf32>
    %cst_36 = arith.constant -1.000000e+30 : f32
    %59 = vector.broadcast %cst_36 : f32 to vector<24x24xf32>
    %60 = arith.select %29, %58, %59 : vector<24x24xi1>, vector<24x24xf32>
    %cst_37 = arith.constant dense<0xFF800000> : vector<24xf32>
    %61 = vector.multi_reduction <maximumf>, %60, %cst_37 [1] : vector<24x24xf32> to vector<24xf32>
    %62 = vector.shape_cast %61 : vector<24xf32> to vector<24x1xf32>
    %63 = vector.broadcast %62 : vector<24x1xf32> to vector<24x24xf32>
    %64 = arith.subf %60, %63 : vector<24x24xf32>
    %65 = math.exp %64 : vector<24x24xf32>
    %cst_38 = arith.constant dense<0.000000e+00> : vector<24xf32>
    %66 = vector.multi_reduction <add>, %65, %cst_38 [1] : vector<24x24xf32> to vector<24xf32>
    %67 = vector.shape_cast %66 : vector<24xf32> to vector<24x1xf32>
    %68 = tpu.reciprocal %67 {approx = true} : vector<24x1xf32> -> vector<24x1xf32>
    %69 = vector.broadcast %68 : vector<24x1xf32> to vector<24x24xf32>
    %70 = arith.mulf %65, %69 : vector<24x24xf32>
    %cst_39 = arith.constant dense<0.000000e+00> : vector<24x4xf32>
    %71 = tpu.matmul %70, %54, %cst_39 {dimension_numbers = #tpu.dot_dimension_numbers<[1], [0], [0], [1], [0, 0, 1, 1], [], []>} : vector<24x24xf32>, vector<24x4xf32>, vector<24x4xf32> -> vector<24x4xf32>
    %72 = vector.extract_strided_slice %21 {offsets = [4, 0], sizes = [4, 16], strides = [1, 1]} : vector<16x16xf32> to vector<4x16xf32>
    %cst_40 = arith.constant dense<0.000000e+00> : vector<24x16xf32>
    %73 = tpu.matmul %71, %72, %cst_40 {dimension_numbers = #tpu.dot_dimension_numbers<[1], [0], [0], [1], [0, 0, 1, 1], [], []>} : vector<24x4xf32>, vector<4x16xf32>, vector<24x16xf32> -> vector<24x16xf32>
    %74 = arith.addf %51, %73 : vector<24x16xf32>
    %75 = vector.extract_strided_slice %26 {offsets = [0, 8], sizes = [24, 4], strides = [1, 1]} : vector<24x48xf32> to vector<24x4xf32>
    %76 = vector.extract_strided_slice %26 {offsets = [0, 24], sizes = [24, 4], strides = [1, 1]} : vector<24x48xf32> to vector<24x4xf32>
    %77 = vector.extract_strided_slice %26 {offsets = [0, 40], sizes = [24, 4], strides = [1, 1]} : vector<24x48xf32> to vector<24x4xf32>
    %78 = tpu.transpose %76, [1, 0] : vector<24x4xf32> -> vector<4x24xf32>
    %cst_41 = arith.constant dense<0.000000e+00> : vector<24x24xf32>
    %79 = tpu.matmul %75, %78, %cst_41 {dimension_numbers = #tpu.dot_dimension_numbers<[1], [0], [0], [1], [0, 0, 1, 1], [], []>} : vector<24x4xf32>, vector<4x24xf32>, vector<24x24xf32> -> vector<24x24xf32>
    %cst_42 = arith.constant 5.000000e-01 : f32
    %80 = vector.broadcast %cst_42 : f32 to vector<24x24xf32>
    %81 = arith.mulf %79, %80 : vector<24x24xf32>
    %cst_43 = arith.constant -1.000000e+30 : f32
    %82 = vector.broadcast %cst_43 : f32 to vector<24x24xf32>
    %83 = arith.select %29, %81, %82 : vector<24x24xi1>, vector<24x24xf32>
    %cst_44 = arith.constant dense<0xFF800000> : vector<24xf32>
    %84 = vector.multi_reduction <maximumf>, %83, %cst_44 [1] : vector<24x24xf32> to vector<24xf32>
    %85 = vector.shape_cast %84 : vector<24xf32> to vector<24x1xf32>
    %86 = vector.broadcast %85 : vector<24x1xf32> to vector<24x24xf32>
    %87 = arith.subf %83, %86 : vector<24x24xf32>
    %88 = math.exp %87 : vector<24x24xf32>
    %cst_45 = arith.constant dense<0.000000e+00> : vector<24xf32>
    %89 = vector.multi_reduction <add>, %88, %cst_45 [1] : vector<24x24xf32> to vector<24xf32>
    %90 = vector.shape_cast %89 : vector<24xf32> to vector<24x1xf32>
    %91 = tpu.reciprocal %90 {approx = true} : vector<24x1xf32> -> vector<24x1xf32>
    %92 = vector.broadcast %91 : vector<24x1xf32> to vector<24x24xf32>
    %93 = arith.mulf %88, %92 : vector<24x24xf32>
    %cst_46 = arith.constant dense<0.000000e+00> : vector<24x4xf32>
    %94 = tpu.matmul %93, %77, %cst_46 {dimension_numbers = #tpu.dot_dimension_numbers<[1], [0], [0], [1], [0, 0, 1, 1], [], []>} : vector<24x24xf32>, vector<24x4xf32>, vector<24x4xf32> -> vector<24x4xf32>
    %95 = vector.extract_strided_slice %21 {offsets = [8, 0], sizes = [4, 16], strides = [1, 1]} : vector<16x16xf32> to vector<4x16xf32>
    %cst_47 = arith.constant dense<0.000000e+00> : vector<24x16xf32>
    %96 = tpu.matmul %94, %95, %cst_47 {dimension_numbers = #tpu.dot_dimension_numbers<[1], [0], [0], [1], [0, 0, 1, 1], [], []>} : vector<24x4xf32>, vector<4x16xf32>, vector<24x16xf32> -> vector<24x16xf32>
    %97 = arith.addf %74, %96 : vector<24x16xf32>
    %98 = vector.extract_strided_slice %26 {offsets = [0, 12], sizes = [24, 4], strides = [1, 1]} : vector<24x48xf32> to vector<24x4xf32>
    %99 = vector.extract_strided_slice %26 {offsets = [0, 28], sizes = [24, 4], strides = [1, 1]} : vector<24x48xf32> to vector<24x4xf32>
    %100 = vector.extract_strided_slice %26 {offsets = [0, 44], sizes = [24, 4], strides = [1, 1]} : vector<24x48xf32> to vector<24x4xf32>
    %101 = tpu.transpose %99, [1, 0] : vector<24x4xf32> -> vector<4x24xf32>
    %cst_48 = arith.constant dense<0.000000e+00> : vector<24x24xf32>
    %102 = tpu.matmul %98, %101, %cst_48 {dimension_numbers = #tpu.dot_dimension_numbers<[1], [0], [0], [1], [0, 0, 1, 1], [], []>} : vector<24x4xf32>, vector<4x24xf32>, vector<24x24xf32> -> vector<24x24xf32>
    %cst_49 = arith.constant 5.000000e-01 : f32
    %103 = vector.broadcast %cst_49 : f32 to vector<24x24xf32>
    %104 = arith.mulf %102, %103 : vector<24x24xf32>
    %cst_50 = arith.constant -1.000000e+30 : f32
    %105 = vector.broadcast %cst_50 : f32 to vector<24x24xf32>
    %106 = arith.select %29, %104, %105 : vector<24x24xi1>, vector<24x24xf32>
    %cst_51 = arith.constant dense<0xFF800000> : vector<24xf32>
    %107 = vector.multi_reduction <maximumf>, %106, %cst_51 [1] : vector<24x24xf32> to vector<24xf32>
    %108 = vector.shape_cast %107 : vector<24xf32> to vector<24x1xf32>
    %109 = vector.broadcast %108 : vector<24x1xf32> to vector<24x24xf32>
    %110 = arith.subf %106, %109 : vector<24x24xf32>
    %111 = math.exp %110 : vector<24x24xf32>
    %cst_52 = arith.constant dense<0.000000e+00> : vector<24xf32>
    %112 = vector.multi_reduction <add>, %111, %cst_52 [1] : vector<24x24xf32> to vector<24xf32>
    %113 = vector.shape_cast %112 : vector<24xf32> to vector<24x1xf32>
    %114 = tpu.reciprocal %113 {approx = true} : vector<24x1xf32> -> vector<24x1xf32>
    %115 = vector.broadcast %114 : vector<24x1xf32> to vector<24x24xf32>
    %116 = arith.mulf %111, %115 : vector<24x24xf32>
    %cst_53 = arith.constant dense<0.000000e+00> : vector<24x4xf32>
    %117 = tpu.matmul %116, %100, %cst_53 {dimension_numbers = #tpu.dot_dimension_numbers<[1], [0], [0], [1], [0, 0, 1, 1], [], []>} : vector<24x24xf32>, vector<24x4xf32>, vector<24x4xf32> -> vector<24x4xf32>
    %118 = vector.extract_strided_slice %21 {offsets = [12, 0], sizes = [4, 16], strides = [1, 1]} : vector<16x16xf32> to vector<4x16xf32>
    %cst_54 = arith.constant dense<0.000000e+00> : vector<24x16xf32>
    %119 = tpu.matmul %117, %118, %cst_54 {dimension_numbers = #tpu.dot_dimension_numbers<[1], [0], [0], [1], [0, 0, 1, 1], [], []>} : vector<24x4xf32>, vector<4x16xf32>, vector<24x16xf32> -> vector<24x16xf32>
    %120 = arith.addf %97, %119 : vector<24x16xf32>
    %121 = vector.broadcast %23 : vector<1x16xf32> to vector<24x16xf32>
    %122 = arith.addf %120, %121 : vector<24x16xf32>
    %123 = arith.addf %15, %122 : vector<24x16xf32>
    %c0_55 = arith.constant 0 : index
    %c0_56 = arith.constant 0 : index
    %c0_57 = arith.constant 0 : index
    %124 = vector.load %arg14[%c0_55, %c0_56, %c0_57] : memref<1x1x16xf32, #tpu.memory_space<vmem>>, vector<1x1x16xf32>
    %125 = vector.shape_cast %124 : vector<1x1x16xf32> to vector<1x16xf32>
    %c0_58 = arith.constant 0 : index
    %c0_59 = arith.constant 0 : index
    %c0_60 = arith.constant 0 : index
    %126 = vector.load %arg15[%c0_58, %c0_59, %c0_60] : memref<1x1x16xf32, #tpu.memory_space<vmem>>, vector<1x1x16xf32>
    %127 = vector.shape_cast %126 : vector<1x1x16xf32> to vector<1x16xf32>
    %cst_61 = arith.constant dense<0.000000e+00> : vector<24xf32>
    %128 = vector.multi_reduction <add>, %123, %cst_61 [1] : vector<24x16xf32> to vector<24xf32>
    %129 = vector.shape_cast %128 : vector<24xf32> to vector<24x1xf32>
    %cst_62 = arith.constant 1.600000e+01 : f32
    %130 = vector.broadcast %cst_62 : f32 to vector<24x1xf32>
    %131 = arith.divf %129, %130 : vector<24x1xf32>
    %132 = vector.broadcast %131 : vector<24x1xf32> to vector<24x16xf32>
    %133 = arith.subf %123, %132 : vector<24x16xf32>
    %134 = arith.mulf %133, %133 : vector<24x16xf32>
    %cst_63 = arith.constant dense<0.000000e+00> : vector<24xf32>
    %135 = vector.multi_reduction <add>, %134, %cst_63 [1] : vector<24x16xf32> to vector<24xf32>
    %136 = vector.shape_cast %135 : vector<24xf32> to vector<24x1xf32>
    %cst_64 = arith.constant 1.600000e+01 : f32
    %137 = vector.broadcast %cst_64 : f32 to vector<24x1xf32>
    %138 = arith.divf %136, %137 : vector<24x1xf32>
    %cst_65 = arith.constant 9.99999974E-6 : f32
    %139 = vector.broadcast %cst_65 : f32 to vector<24x1xf32>
    %140 = arith.addf %138, %139 : vector<24x1xf32>
    %141 = math.rsqrt %140 : vector<24x1xf32>
    %142 = vector.broadcast %141 : vector<24x1xf32> to vector<24x16xf32>
    %143 = arith.mulf %133, %142 : vector<24x16xf32>
    %144 = vector.broadcast %125 : vector<1x16xf32> to vector<24x16xf32>
    %145 = arith.mulf %143, %144 : vector<24x16xf32>
    %146 = vector.broadcast %127 : vector<1x16xf32> to vector<24x16xf32>
    %147 = arith.addf %145, %146 : vector<24x16xf32>
    %c0_66 = arith.constant 0 : index
    %c0_67 = arith.constant 0 : index
    %c0_68 = arith.constant 0 : index
    %148 = vector.load %arg16[%c0_66, %c0_67, %c0_68] : memref<1x16x32xf32, #tpu.memory_space<vmem>>, vector<1x16x32xf32>
    %149 = vector.shape_cast %148 : vector<1x16x32xf32> to vector<16x32xf32>
    %cst_69 = arith.constant dense<0.000000e+00> : vector<24x32xf32>
    %150 = tpu.matmul %147, %149, %cst_69 {dimension_numbers = #tpu.dot_dimension_numbers<[1], [0], [0], [1], [0, 0, 1, 1], [], []>} : vector<24x16xf32>, vector<16x32xf32>, vector<24x32xf32> -> vector<24x32xf32>
    %c0_70 = arith.constant 0 : index
    %c0_71 = arith.constant 0 : index
    %c0_72 = arith.constant 0 : index
    %151 = vector.load %arg17[%c0_70, %c0_71, %c0_72] : memref<1x1x32xf32, #tpu.memory_space<vmem>>, vector<1x1x32xf32>
    %152 = vector.shape_cast %151 : vector<1x1x32xf32> to vector<1x32xf32>
    %153 = vector.broadcast %152 : vector<1x32xf32> to vector<24x32xf32>
    %154 = arith.addf %150, %153 : vector<24x32xf32>
    %cst_73 = arith.constant 0.000000e+00 : f32
    %155 = vector.broadcast %cst_73 : f32 to vector<24x32xf32>
    %156 = arith.maximumf %154, %155 : vector<24x32xf32>
    %c0_74 = arith.constant 0 : index
    %c0_75 = arith.constant 0 : index
    %c0_76 = arith.constant 0 : index
    %157 = vector.load %arg18[%c0_74, %c0_75, %c0_76] : memref<1x32x16xf32, #tpu.memory_space<vmem>>, vector<1x32x16xf32>
    %158 = vector.shape_cast %157 : vector<1x32x16xf32> to vector<32x16xf32>
    %cst_77 = arith.constant dense<0.000000e+00> : vector<24x16xf32>
    %159 = tpu.matmul %156, %158, %cst_77 {dimension_numbers = #tpu.dot_dimension_numbers<[1], [0], [0], [1], [0, 0, 1, 1], [], []>} : vector<24x32xf32>, vector<32x16xf32>, vector<24x16xf32> -> vector<24x16xf32>
    %c0_78 = arith.constant 0 : index
    %c0_79 = arith.constant 0 : index
    %c0_80 = arith.constant 0 : index
    %160 = vector.load %arg19[%c0_78, %c0_79, %c0_80] : memref<1x1x16xf32, #tpu.memory_space<vmem>>, vector<1x1x16xf32>
    %161 = vector.shape_cast %160 : vector<1x1x16xf32> to vector<1x16xf32>
    %162 = vector.broadcast %161 : vector<1x16xf32> to vector<24x16xf32>
    %163 = arith.addf %159, %162 : vector<24x16xf32>
    %164 = arith.addf %147, %163 : vector<24x16xf32>
    %c0_81 = arith.constant 0 : index
    %c0_82 = arith.constant 0 : index
    %c0_83 = arith.constant 0 : index
    %165 = vector.load %arg20[%c0_81, %c0_82, %c0_83] : memref<1x1x16xf32, #tpu.memory_space<vmem>>, vector<1x1x16xf32>
    %166 = vector.shape_cast %165 : vector<1x1x16xf32> to vector<1x16xf32>
    %c0_84 = arith.constant 0 : index
    %c0_85 = arith.constant 0 : index
    %c0_86 = arith.constant 0 : index
    %167 = vector.load %arg21[%c0_84, %c0_85, %c0_86] : memref<1x1x16xf32, #tpu.memory_space<vmem>>, vector<1x1x16xf32>
    %168 = vector.shape_cast %167 : vector<1x1x16xf32> to vector<1x16xf32>
    %cst_87 = arith.constant dense<0.000000e+00> : vector<24xf32>
    %169 = vector.multi_reduction <add>, %164, %cst_87 [1] : vector<24x16xf32> to vector<24xf32>
    %170 = vector.shape_cast %169 : vector<24xf32> to vector<24x1xf32>
    %cst_88 = arith.constant 1.600000e+01 : f32
    %171 = vector.broadcast %cst_88 : f32 to vector<24x1xf32>
    %172 = arith.divf %170, %171 : vector<24x1xf32>
    %173 = vector.broadcast %172 : vector<24x1xf32> to vector<24x16xf32>
    %174 = arith.subf %164, %173 : vector<24x16xf32>
    %175 = arith.mulf %174, %174 : vector<24x16xf32>
    %cst_89 = arith.constant dense<0.000000e+00> : vector<24xf32>
    %176 = vector.multi_reduction <add>, %175, %cst_89 [1] : vector<24x16xf32> to vector<24xf32>
    %177 = vector.shape_cast %176 : vector<24xf32> to vector<24x1xf32>
    %cst_90 = arith.constant 1.600000e+01 : f32
    %178 = vector.broadcast %cst_90 : f32 to vector<24x1xf32>
    %179 = arith.divf %177, %178 : vector<24x1xf32>
    %cst_91 = arith.constant 9.99999974E-6 : f32
    %180 = vector.broadcast %cst_91 : f32 to vector<24x1xf32>
    %181 = arith.addf %179, %180 : vector<24x1xf32>
    %182 = math.rsqrt %181 : vector<24x1xf32>
    %183 = vector.broadcast %182 : vector<24x1xf32> to vector<24x16xf32>
    %184 = arith.mulf %174, %183 : vector<24x16xf32>
    %185 = vector.broadcast %166 : vector<1x16xf32> to vector<24x16xf32>
    %186 = arith.mulf %184, %185 : vector<24x16xf32>
    %187 = vector.broadcast %168 : vector<1x16xf32> to vector<24x16xf32>
    %188 = arith.addf %186, %187 : vector<24x16xf32>
    %c0_92 = arith.constant 0 : index
    %c0_93 = arith.constant 0 : index
    %189 = vector.load %arg25[%c0_92, %c0_93] : memref<24x16xf32, #tpu.memory_space<vmem>>, vector<24x16xf32>
    tpu.vector_store %arg25[%c0_92, %c0_93], %188 {strides = array<i32>} : memref<24x16xf32, #tpu.memory_space<vmem>>, vector<24x16xf32>,
    %c2_i32 = arith.constant 2 : i32
    %190 = arith.cmpi eq, %arg1, %c2_i32 : i32
    %191 = arith.extui %190 : i1 to i32
    %c0_i32_94 = arith.constant 0 : i32
    %192 = arith.cmpi ne, %191, %c0_i32_94 : i32
    scf.if %192 {
      %193 = vector.extract_strided_slice %188 {offsets = [1, 0], sizes = [16, 16], strides = [1, 1]} : vector<24x16xf32> to vector<16x16xf32>
      %c0_95 = arith.constant 0 : index
      %c0_96 = arith.constant 0 : index
      %194 = vector.load %arg22[%c0_95, %c0_96] : memref<16x64xf32, #tpu.memory_space<vmem>>, vector<16x64xf32>
      %cst_97 = arith.constant dense<0.000000e+00> : vector<16x64xf32>
      %195 = tpu.matmul %193, %194, %cst_97 {dimension_numbers = #tpu.dot_dimension_numbers<[1], [0], [0], [1], [0, 0, 1, 1], [], []>} : vector<16x16xf32>, vector<16x64xf32>, vector<16x64xf32> -> vector<16x64xf32>
      %c0_98 = arith.constant 0 : index
      %c0_99 = arith.constant 0 : index
      %196 = vector.load %arg23[%c0_98, %c0_99] : memref<1x64xf32, #tpu.memory_space<vmem>>, vector<1x64xf32>
      %197 = vector.broadcast %196 : vector<1x64xf32> to vector<16x64xf32>
      %198 = arith.addf %195, %197 : vector<16x64xf32>
      %c0_100 = arith.constant 0 : index
      %c0_101 = arith.constant 0 : index
      %c0_102 = arith.constant 0 : index
      %199 = vector.load %arg24[%c0_100, %c0_101, %c0_102] : memref<1x16x64xf32, #tpu.memory_space<vmem>>, vector<1x16x64xf32>
      %200 = vector.shape_cast %199 : vector<1x16x64xf32> to vector<16x64xf32>
      %201 = vector.shape_cast %198 : vector<16x64xf32> to vector<1x16x64xf32>
      tpu.vector_store %arg24[%c0_100, %c0_101, %c0_102], %201 {strides = array<i32>} : memref<1x16x64xf32, #tpu.memory_space<vmem>>, vector<1x16x64xf32>,
    } else {
    }
    return
  }
  func.func @transform_0(%arg0: i32, %arg1: i32) -> (i32, i32, i32, i32) {
    %c2_i32 = arith.constant 2 : i32
    %0 = arith.subi %c2_i32, %arg1 : i32
    %c0_i32 = arith.constant 0 : i32
    %c0_i32_0 = arith.constant 0 : i32
    %c0_i32_1 = arith.constant 0 : i32
    return %0, %arg0, %c0_i32, %c0_i32_0 : i32, i32, i32, i32
  }
  func.func @transform_1(%arg0: i32, %arg1: i32) -> (i32, i32, i32) {
    %c0_i32 = arith.constant 0 : i32
    %c0_i32_0 = arith.constant 0 : i32
    %c0_i32_1 = arith.constant 0 : i32
    return %arg0, %c0_i32, %c0_i32_0 : i32, i32, i32
  }
  func.func @transform_2(%arg0: i32, %arg1: i32) -> (i32, i32) {
    %c0_i32 = arith.constant 0 : i32
    %c0_i32_0 = arith.constant 0 : i32
    %c0_i32_1 = arith.constant 0 : i32
    return %c0_i32, %c0_i32_0 : i32, i32
  }
  func.func @transform_3(%arg0: i32, %arg1: i32) -> (i32, i32) {
    %c0_i32 = arith.constant 0 : i32
    %c0_i32_0 = arith.constant 0 : i32
    %c0_i32_1 = arith.constant 0 : i32
    return %c0_i32, %c0_i32_0 : i32, i32
  }
  func.func @transform_4(%arg0: i32, %arg1: i32) -> (i32, i32) {
    %c0_i32 = arith.constant 0 : i32
    %c0_i32_0 = arith.constant 0 : i32
    %c0_i32_1 = arith.constant 0 : i32
    return %c0_i32, %c0_i32_0 : i32, i32
  }
  func.func @transform_5(%arg0: i32, %arg1: i32) -> (i32, i32) {
    %c0_i32 = arith.constant 0 : i32
    %c0_i32_0 = arith.constant 0 : i32
    %c0_i32_1 = arith.constant 0 : i32
    return %c0_i32, %c0_i32_0 : i32, i32
  }
  func.func @transform_6(%arg0: i32, %arg1: i32) -> (i32, i32, i32) {
    %c0_i32 = arith.constant 0 : i32
    %c0_i32_0 = arith.constant 0 : i32
    %c0_i32_1 = arith.constant 0 : i32
    return %arg1, %c0_i32, %c0_i32_0 : i32, i32, i32
  }
  func.func @transform_7(%arg0: i32, %arg1: i32) -> (i32, i32, i32) {
    %c0_i32 = arith.constant 0 : i32
    %c0_i32_0 = arith.constant 0 : i32
    %c0_i32_1 = arith.constant 0 : i32
    return %arg1, %c0_i32, %c0_i32_0 : i32, i32, i32
  }
  func.func @transform_8(%arg0: i32, %arg1: i32) -> (i32, i32, i32) {
    %c0_i32 = arith.constant 0 : i32
    %c0_i32_0 = arith.constant 0 : i32
    %c0_i32_1 = arith.constant 0 : i32
    return %arg1, %c0_i32, %c0_i32_0 : i32, i32, i32
  }
  func.func @transform_9(%arg0: i32, %arg1: i32) -> (i32, i32, i32) {
    %c0_i32 = arith.constant 0 : i32
    %c0_i32_0 = arith.constant 0 : i32
    %c0_i32_1 = arith.constant 0 : i32
    return %arg1, %c0_i32, %c0_i32_0 : i32, i32, i32
  }
  func.func @transform_10(%arg0: i32, %arg1: i32) -> (i32, i32, i32) {
    %c0_i32 = arith.constant 0 : i32
    %c0_i32_0 = arith.constant 0 : i32
    %c0_i32_1 = arith.constant 0 : i32
    return %arg1, %c0_i32, %c0_i32_0 : i32, i32, i32
  }
  func.func @transform_11(%arg0: i32, %arg1: i32) -> (i32, i32, i32) {
    %c0_i32 = arith.constant 0 : i32
    %c0_i32_0 = arith.constant 0 : i32
    %c0_i32_1 = arith.constant 0 : i32
    return %arg1, %c0_i32, %c0_i32_0 : i32, i32, i32
  }
  func.func @transform_12(%arg0: i32, %arg1: i32) -> (i32, i32, i32) {
    %c0_i32 = arith.constant 0 : i32
    %c0_i32_0 = arith.constant 0 : i32
    %c0_i32_1 = arith.constant 0 : i32
    return %arg1, %c0_i32, %c0_i32_0 : i32, i32, i32
  }
  func.func @transform_13(%arg0: i32, %arg1: i32) -> (i32, i32, i32) {
    %c0_i32 = arith.constant 0 : i32
    %c0_i32_0 = arith.constant 0 : i32
    %c0_i32_1 = arith.constant 0 : i32
    return %arg1, %c0_i32, %c0_i32_0 : i32, i32, i32
  }
  func.func @transform_14(%arg0: i32, %arg1: i32) -> (i32, i32, i32) {
    %c0_i32 = arith.constant 0 : i32
    %c0_i32_0 = arith.constant 0 : i32
    %c0_i32_1 = arith.constant 0 : i32
    return %arg1, %c0_i32, %c0_i32_0 : i32, i32, i32
  }
  func.func @transform_15(%arg0: i32, %arg1: i32) -> (i32, i32, i32) {
    %c0_i32 = arith.constant 0 : i32
    %c0_i32_0 = arith.constant 0 : i32
    %c0_i32_1 = arith.constant 0 : i32
    return %arg1, %c0_i32, %c0_i32_0 : i32, i32, i32
  }
  func.func @transform_16(%arg0: i32, %arg1: i32) -> (i32, i32, i32) {
    %c0_i32 = arith.constant 0 : i32
    %c0_i32_0 = arith.constant 0 : i32
    %c0_i32_1 = arith.constant 0 : i32
    return %arg1, %c0_i32, %c0_i32_0 : i32, i32, i32
  }
  func.func @transform_17(%arg0: i32, %arg1: i32) -> (i32, i32, i32) {
    %c0_i32 = arith.constant 0 : i32
    %c0_i32_0 = arith.constant 0 : i32
    %c0_i32_1 = arith.constant 0 : i32
    return %arg1, %c0_i32, %c0_i32_0 : i32, i32, i32
  }
  func.func @transform_18(%arg0: i32, %arg1: i32) -> (i32, i32, i32) {
    %c0_i32 = arith.constant 0 : i32
    %c0_i32_0 = arith.constant 0 : i32
    %c0_i32_1 = arith.constant 0 : i32
    return %arg1, %c0_i32, %c0_i32_0 : i32, i32, i32
  }
  func.func @transform_19(%arg0: i32, %arg1: i32) -> (i32, i32, i32) {
    %c0_i32 = arith.constant 0 : i32
    %c0_i32_0 = arith.constant 0 : i32
    %c0_i32_1 = arith.constant 0 : i32
    return %arg1, %c0_i32, %c0_i32_0 : i32, i32, i32
  }
  func.func @transform_20(%arg0: i32, %arg1: i32) -> (i32, i32) {
    %c0_i32 = arith.constant 0 : i32
    %c0_i32_0 = arith.constant 0 : i32
    %c0_i32_1 = arith.constant 0 : i32
    return %c0_i32, %c0_i32_0 : i32, i32
  }
  func.func @transform_21(%arg0: i32, %arg1: i32) -> (i32, i32) {
    %c0_i32 = arith.constant 0 : i32
    %c0_i32_0 = arith.constant 0 : i32
    %c0_i32_1 = arith.constant 0 : i32
    return %c0_i32, %c0_i32_0 : i32, i32
  }
  func.func @transform_22(%arg0: i32, %arg1: i32) -> (i32, i32, i32) {
    %c0_i32 = arith.constant 0 : i32
    %c0_i32_0 = arith.constant 0 : i32
    %c0_i32_1 = arith.constant 0 : i32
    return %arg0, %c0_i32, %c0_i32_0 : i32, i32, i32
  }
}

</mosaic_0001>

<bundles_post_ra>
// kernel: forward.2
= control target key start
LH: loop header
LB: loop body
LE: loop exit
PB: predicated region body
PF: predicated region fallthrough
CT: control target
= control target key end

     0   :  { %s3159_s0 = inlined_call_operand.vmem [shape: f32[2,24,192], index: 0, kind: input, shape index: {}]   ;;  %s3160_s1 = inlined_call_operand.vmem [shape: f32[24,32], index: 1, kind: input, shape index: {}]   ;;  %s3161_s2 = inlined_call_operand.vmem [shape: f32[192,32], index: 2, kind: input, shape index: {}]   ;;  %s3162_s3 = inlined_call_operand.vmem [shape: f32[10,1,32], index: 3, kind: input, shape index: {}]   ;;  %s3163_s4 = inlined_call_operand.vmem [shape: f32[10,1,32], index: 4, kind: input, shape index: {}]   ;;  %s3164_s5 = inlined_call_operand.vmem [shape: f32[10,32,96], index: 5, kind: input, shape index: {}]   ;;  %s3165_s6 = inlined_call_operand.vmem [shape: f32[10,1,96], index: 6, kind: input, shape index: {}]   ;;  %s3166_s7 = inlined_call_operand.vmem [shape: f32[10,32,32], index: 7, kind: input, shape index: {}]   ;;  %s3167_s8 = inlined_call_operand.vmem [shape: f32[10,1,32], index: 8, kind: input, shape index: {}]   ;;  %s3168_s9 = inlined_call_operand.vmem [shape: f32[10,1,32], index: 9, kind: input, shape index: {}]   ;;  %s3169_s10 = inlined_call_operand.vmem [shape: f32[10,1,32], index: 10, kind: input, shape index: {}]   ;;  %s3170_s11 = inlined_call_operand.vmem [shape: f32[10,32,128], index: 11, kind: input, shape index: {}]   ;;  %s3171_s12 = inlined_call_operand.vmem [shape: f32[10,1,128], index: 12, kind: input, shape index: {}]   ;;  %s3172_s13 = inlined_call_operand.vmem [shape: f32[10,128,32], index: 13, kind: input, shape index: {}]   ;;  %s3173_s14 = inlined_call_operand.vmem [shape: f32[10,1,32], index: 14, kind: input, shape index: {}]   ;;  %s3174_s15 = inlined_call_operand.vmem [shape: f32[3,2,24,32], index: 15, kind: output, shape index: {}]  }
   0x1   :  { %3186 = sst [smem:[#allocation15_spill]] %s3159_s0 }
   0x2   :  { %3187 = sst [smem:[#allocation16_spill]] %s3160_s1 }
   0x3   :  { %3188 = sst [smem:[#allocation17_spill]] %s3161_s2 }
   0x4   :  { %3189 = sst [smem:[#allocation18_spill]] %s3164_s5 }
   0x5   :  { %3190 = sst [smem:[#allocation19_spill]] %s3166_s7 }
   0x6   :  { %3191 = sst [smem:[#allocation20_spill]] %s3174_s15 }
   0x7   :  { %s2544_s18 = smov 0   ;;  %s2546_s19 = smov 0  }
   0x8   :  { %s2548_s20 = smov 0   ;;  %s2550_s21 = smov 0  }
   0x9   :  { %s2552_s22 = smov 0   ;;  %s2554_s23 = smov 0  }
   0xa   :  { %s2556_s24 = smov 0  }
   0xb LB: > { %3192 = sst [smem:[#allocation4_spill]] %s2430_s19  ;;  %s34_s25 = sadd.s32 1, %s2442_s22  ;;  %s2450_s24 = sphi %s2556_s24, %s25_s24   ;;  %s2446_s23 = sphi %s2554_s23, %s3226_s23   ;;  %s2442_s22 = sphi %s2552_s22, %s3225_s22   ;;  %s2438_s21 = sphi %s2550_s21, %s3224_s21   ;;  %s2434_s20 = sphi %s2548_s20, %s3223_s20   ;;  %s2430_s19 = sphi %s2546_s19, %s3222_s19   ;;  %s2426_s18 = sphi %s2544_s18, %s3221_s18  }
   0xc   : > { %3193 = sst [smem:[#allocation5_spill]] %s2438_s21  ;;  %p35_p0 = scmp.ge.s32.totalorder %s34_s25, 10 }
   0xd   : > { %3194 = sst [smem:[#allocation6_spill]] %s2442_s22  ;;  %s37_s26 = sadd.s32 1, %s2446_s23 }
   0xe   : > { %3195 = sst [smem:[#allocation7_spill]] %s2446_s23  ;;  %s2106_s27 = sadd.s32 4294967295, %s2450_s24  }
   0xf   : > { %3196 = sst [smem:[#allocation8_spill]] %s2450_s24  ;;  %p434_p1 = scmp.ne.s32.totalorder %s2430_s19, %s2426_s18 }
  0x10   : > { %s3228_s25 = smov (%p35_p0, %s34_s25), 0  ;;  %s3230_s26 = smov (!%p35_p0, %s37_s26), %s2446_s23 }
  0x11   : > { %3197 = sst [smem:[#allocation9_spill]] %s3228_s25  ;;  %p435_p2 = scmp.eq.s32.totalorder %s2106_s27, 19 }
  0x12   : > { %p2110_p3 = scmp.ge.s32.totalorder %s2450_s24, 1  ;;  %p39_p4 = scmp.ge.s32.totalorder %s3230_s26, 2 }
  0x13   : > { %p553_p5 = scmp.lt.s32.totalorder %s2450_s24, 21  ;;  %p2586_p6 = por %p435_p2, %p434_p1 }
  0x14   : > { %s3232_s26 = smov (%p39_p4, %s3230_s26), 0  ;;  %s424_s30 = sadd.s32 1, %s2430_s19 }
  0x15   : > { %s3198_s28 = scalar_select %p2586_p6, 1, 0 }
  0x16   : > { %3200 = sst [smem:[#allocation11_spill]] %s3232_s26  ;;  %p554_p7 = pnand %p2110_p3, %p553_p5 }
  0x17   : > { %3199 = sst [smem:[#allocation10_spill]] %s3198_s28  ;;  %s421_s29 = ssub.s32 %s2446_s23, %s3232_s26 }
  0x18   : > { %p422_p8 = scmp.eq.s32.totalorder %s421_s29, 0  ;;  %557 = sbr.rel (%p554_p7) target bundleno = 2634 (0xa4a), region = 80 }
  0x1a   : > { %s2596_s16 = scalar_select %p422_p8, %s2430_s19, %s424_s30  }
  0x1c   : > { %3201 = sst [smem:[#allocation12_spill]] %s2596_s16 }
  0x1d   : > { %s641_s17 = sand.u32 1, %s2426_s18   ;;  %p644_p9 = scmp.lt.s32.totalorder %s2438_s21, 1 }
  0x1e   : > { %s2229_s27 = smul.u32 72, %s641_s17  ;;  %p649_p10 = scmp.lt.s32.totalorder %s2434_s20, 9 }
  0x1f   : > { %s645_s25 = scalar_select %p644_p9, %s2438_s21, 1 }
  0x20   : > { %s2602_s24 = scalar_select %p649_p10, %s2434_s20, 9 }
  0x21   : > { %s2230_s22 = smul.u32 48, %s645_s25  ;;  %s3202_s0 = sld [smem:[#allocation15_spill]] }
  0x22   : > { %s2190_s28 = sshll.u32 %s2602_s24, 5  ;;  %s3204_s5 = sld [smem:[#allocation18_spill]] }
  0x23   : > { %s3205_s7 = sld [smem:[#allocation19_spill]]  ;;  %s676_s19 = scalar_lea.vmem %s3169_s10, %s2602_s24 }
  0x24   : > { %s692_s23 = scalar_lea.vmem %s3173_s14, %s2602_s24  ;;  %s2663_s16 = scalar_lea.vmem [#allocation3], %s2229_s27 }
  0x25   : > { %p2120_p11 = scmp.ne.s32.totalorder %s2434_s20, 0 }
  0x26   : > { %s3207_s21 = sld [smem:[#allocation17_spill]] (!%p2120_p11) }
  0x27   : > { %s2607_s18 = scalar_lea.vmem %s3202_s0, %s2230_s22  ;;  %s3210_s17 = sld [smem:[#allocation16_spill]] (!%p2120_p11) }
  0x28   : > { %3203 = sst [smem:[#allocation13_spill]] %s2607_s18  ;;  %s2625_s2 = scalar_lea.vmem %s3204_s5, %s2190_s28 }
  0x29   : > { %s2630_s18 = scalar_lea.vmem %s3205_s7, %s2190_s28  ;;  %s2647_s5 = scalar_lea.vmem %s3170_s11, %s2190_s28 }
  0x2a   : > { %3206 = sst [smem:[#allocation14_spill]] %s2630_s18  ;;  %s684_s7 = scalar_lea.vmem %s3171_s12, %s2602_s24 }
  0x2b   : > { %s2193_s18 = sshll.u32 %s2602_s24, 7  ;;  %696 = sbr.rel (%p2120_p11) target bundleno = 219 (0xdb), region = 84 }
  0x2c   : > { %s2657_s26 = scalar_lea.vmem %s3172_s13, %s2193_s18  ;;  %s3208_s25 = smov (!%p2120_p11), %s3207_s21 }
  0x2d   : > { %s3209_s18 = sld [smem:[#allocation13_spill]] (!%p2120_p11) }
  0x30   : > { %v718_v0 = vld [vmem:[%s3207_s21 + $0x78] sm:$0xff]  ;;  %v717_v1 = vld [vmem:[%s3208_s25 + $0x70] sm:$0xff]  ;;  %v716_v3 = vld [vmem:[%s3208_s25 + $0x68] sm:$0xff]  ;;  %vm730_vm0 = vcmask 523264   ;;  %vm792_vm1 = vcmask 261120  }
  0x31   : > { %740 = vmatpush.msra.mxu0 %v718_v0  ;;  %2194 = vmatpush.msra.mxu2 %v718_v0  ;;  %v726_v2 = vld [vmem:[%s3208_s25 + $0xb8] sm:$0xff]  ;;  %v725_v4 = vld [vmem:[%s3208_s25 + $0xb0] sm:$0xff]  ;;  %v724_v5 = vld [vmem:[%s3208_s25 + $0xa8] sm:$0xff] }
  0x32   : > { %2195 = vmatpush.msra.mxu3 %v718_v0  ;;  %774 = vmatpush.msra.mxu1 %v726_v2  ;;  %v715_v6 = vld [vmem:[%s3208_s25 + $0x60] sm:$0xff]  ;;  %v714_v8 = vld [vmem:[%s3208_s25 + $0x58] sm:$0xff]  ;;  %v713_v10 = vld [vmem:[%s3208_s25 + $0x50] sm:$0xff] }
  0x33   : > { %741 = vmatpush.msra.mxu0 %v717_v1  ;;  %2196 = vmatpush.msra.mxu2 %v717_v1  ;;  %v723_v7 = vld [vmem:[%s3208_s25 + $0xa0] sm:$0xff]  ;;  %v722_v9 = vld [vmem:[%s3208_s25 + $0x98] sm:$0xff]  ;;  %v721_v11 = vld [vmem:[%s3208_s25 + $0x90] sm:$0xff] }
  0x34   : > { %2197 = vmatpush.msra.mxu3 %v717_v1  ;;  %775 = vmatpush.msra.mxu1 %v725_v4  ;;  %v712_v12 = vld [vmem:[%s3208_s25 + $0x48] sm:$0xff]  ;;  %v711_v14 = vld [vmem:[%s3208_s25 + $0x40] sm:$0xff]  ;;  %v710_v16 = vld [vmem:[%s3208_s25 + $0x38] sm:$0xff] }
  0x35   : > { %742 = vmatpush.msra.mxu0 %v716_v3  ;;  %2198 = vmatpush.msra.mxu2 %v716_v3  ;;  %v720_v13 = vld [vmem:[%s3208_s25 + $0x88] sm:$0xff]  ;;  %v719_v15 = vld [vmem:[%s3208_s25 + $0x80] sm:$0xff]  ;;  %v709_v18 = vld [vmem:[%s3208_s25 + $0x30] sm:$0xff] }
  0x36   : > { %2199 = vmatpush.msra.mxu3 %v716_v3  ;;  %776 = vmatpush.msra.mxu1 %v724_v5  ;;  %v698_v17 = vld [vmem:[%s3209_s18 + $0x8] sm:$0xff]  ;;  %v707_v20 = vld [vmem:[%s3208_s25 + $0x20] sm:$0xff]  ;;  %v706_v21 = vld [vmem:[%s3208_s25 + $0x18] sm:$0xff] }
  0x37   : > { %743 = vmatpush.msra.mxu0 %v715_v6  ;;  %2200 = vmatpush.msra.mxu2 %v715_v6  ;;  %v708_v19 = vld [vmem:[%s3208_s25 + $0x28] sm:$0xff]  ;;  %v700_v22 = vld [vmem:[%s3209_s18 + $0x18] sm:$0xff]  ;;  %v705_v23 = vld [vmem:[%s3208_s25 + $0x10] sm:$0xff] }
  0x38   : > { %2201 = vmatpush.msra.mxu3 %v715_v6  ;;  %777 = vmatpush.msra.mxu1 %v723_v7  ;;  %v704_v24 = vld [vmem:[%s3208_s25 + $0x8] sm:$0xff]  ;;  %v703_v25 = vld [vmem:[%s3208_s25] sm:$0xff]  ;;  %v699_v27 = vld [vmem:[%s3209_s18 + $0x10] sm:$0xff] }
  0x39   : > { %744 = vmatpush.msra.mxu0 %v714_v8  ;;  %2202 = vmatpush.msra.mxu2 %v714_v8  ;;  %v697_v26 = vld [vmem:[%s3209_s18] sm:$0xff]  ;;  %v702_v29 = vld [vmem:[%s3209_s18 + $0x28] sm:$0xff]  ;;  %v729_v37 = vld [vmem:[%s3210_s17 + $0x10] sm:$0xff] }
  0x3a   : > { %2203 = vmatpush.msra.mxu3 %v714_v8  ;;  %778 = vmatpush.msra.mxu1 %v722_v9  ;;  %v701_v28 = vld [vmem:[%s3209_s18 + $0x20] sm:$0xff]  ;;  %v728_v36 = vld [vmem:[%s3210_s17 + $0x8] sm:$0xff] }
  0x3b   : > { %745 = vmatpush.msra.mxu0 %v713_v10  ;;  %2204 = vmatpush.msra.mxu2 %v713_v10  ;;  %v727_v32 = vld [vmem:[%s3210_s17] sm:$0xff] }
  0x3c   : > { %2205 = vmatpush.msra.mxu3 %v713_v10  ;;  %779 = vmatpush.msra.mxu1 %v721_v11 }
  0x3d   : > { %746 = vmatpush.msra.mxu0 %v712_v12  ;;  %2206 = vmatpush.msra.mxu2 %v712_v12 }
  0x3e   : > { %2207 = vmatpush.msra.mxu3 %v712_v12  ;;  %780 = vmatpush.msra.mxu1 %v720_v13 }
  0x3f   : > { %747 = vmatpush.msra.mxu0 %v711_v14  ;;  %2208 = vmatpush.msra.mxu2 %v711_v14 }
  0x40   : > { %2209 = vmatpush.msra.mxu3 %v711_v14  ;;  %781 = vmatpush.msra.mxu1 %v719_v15 }
  0x41   : > { %748 = vmatpush.msra.mxu0 %v710_v16  ;;  %2210 = vmatpush.msra.mxu2 %v710_v16 }
  0x42   : > { %2211 = vmatpush.msra.mxu3 %v710_v16  ;;  %2121 = vmatmul.msk.f32.vlgmr.msra.gmra.mxu1 %vm730_vm0, %v698_v17 }
  0x43   : > { %749 = vmatpush.msra.mxu0 %v709_v18  ;;  %2212 = vmatpush.msra.mxu2 %v709_v18 }
  0x44   : > { %2213 = vmatpush.msra.mxu3 %v709_v18 }
  0x45   : > { %750 = vmatpush.msra.mxu0 %v708_v19  ;;  %2214 = vmatpush.msra.mxu2 %v708_v19 }
  0x46   : > { %2215 = vmatpush.msra.mxu3 %v708_v19 }
  0x47   : > { %751 = vmatpush.msra.mxu0 %v707_v20  ;;  %2216 = vmatpush.msra.mxu2 %v707_v20 }
  0x48   : > { %2217 = vmatpush.msra.mxu3 %v707_v20 }
  0x49   : > { %752 = vmatpush.msra.mxu0 %v706_v21  ;;  %2218 = vmatpush.msra.mxu2 %v706_v21 }
  0x4a   : > { %2219 = vmatpush.msra.mxu3 %v706_v21  ;;  %2122 = vmatmul.msk.f32.gmra.mxu1 %vm730_vm0, %v700_v22 }
  0x4b   : > { %753 = vmatpush.msra.mxu0 %v705_v23  ;;  %2220 = vmatpush.msra.mxu2 %v705_v23 }
  0x4c   : > { %2221 = vmatpush.msra.mxu3 %v705_v23 }
  0x4d   : > { %754 = vmatpush.msra.mxu0 %v704_v24  ;;  %2222 = vmatpush.msra.mxu2 %v704_v24 }
  0x4e   : > { %2223 = vmatpush.msra.mxu3 %v704_v24 }
  0x4f   : > { %755 = vmatpush.msra.mxu0 %v703_v25  ;;  %2224 = vmatpush.msra.mxu2 %v703_v25 }
  0x50   : > { %2225 = vmatpush.msra.mxu3 %v703_v25  ;;  %756 = vmatmul.f32.vlgmr.msra.gmra.mxu0 %v697_v26 }
  0x51   : > { %759 = vmatmul.f32.vlgmr.msra.gmra.mxu2 %v699_v27  ;;  %762 = vmatmul.f32.vlgmr.msra.gmra.mxu3 %v701_v28 }
  0x52   : > { %2123 = vmatmul.msk.f32.gmra.mxu1 %vm730_vm0, %v702_v29 }
  0xbf   : > { %v783_v30 = vpop.f32.mrf.mxu1 }
  0xc7   : > { %v786_v31 = vpop.f32.mrf.mxu1 }
  0xcd   : > { %v757_v33 = vpop.f32.mrf.mxu0 }
  0xce   : > { %v758_v34 = vadd.f32 %v757_v33, %v727_v32 }
  0xcf   : > { %v789_v38 = vpop.f32.mrf.mxu1 }
  0xd0   : > { %v784_v35 = vadd.f32 %v783_v30, %v758_v34 }
  0xd2   : > { %793 = vst.msk [vmem:[#allocation2] sm:$0xff] %vm792_vm1, %v784_v35 }
  0xd4   : > { %v760_v39 = vpop.f32.mrf.mxu2  ;;  %v763_v40 = vpop.f32.mrf.mxu3 }
  0xd5   : > { %v761_v41 = vadd.f32 %v760_v39, %v728_v36  ;;  %v764_v42 = vadd.f32 %v763_v40, %v729_v37 }
  0xd7   : > { %v787_v43 = vadd.f32 %v786_v31, %v761_v41  ;;  %v790_v44 = vadd.f32 %v789_v38, %v764_v42 }
  0xd9   : > { %794 = vst.msk [vmem:[#allocation2 + $0x8] sm:$0xff] %vm792_vm1, %v787_v43 }
  0xda   : > { %795 = vst.msk [vmem:[#allocation2 + $0x10] sm:$0xff] %vm792_vm1, %v790_v44 }
  0xdb PF: > { %v2756_v45 = vld [vmem:[#allocation2] sm:$0xff]  ;;  %vm801_vm2 = vcmask 261120   ;;  %v2452_v51 = vmov 32.0   ;;  %v890_v9 = vld [vmem:[%s2625_s2 + $0x18] sm:$0xff]  ;;  %v889_v10 = vld [vmem:[%s2625_s2 + $0x10] sm:$0xff]  ;;  %s3211_s22 = scalar_lea.vmem %s3162_s3, %s2602_s24  ;;  %s3212_s30 = scalar_lea.vmem %s3163_s4, %s2602_s24  ;;  %vm947_vm13 = vcmask 64512  }
  0xdc   : > { %v802_v47 = vsel %vm801_vm2, %v2756_v45, 0.0  ;;  %2328 = vrcp.f32 %v2452_v51  ;;  %921 = vmatpush.msra.mxu0 %v890_v9  ;;  %v888_v11 = vld [vmem:[%s2625_s2 + $0x8] sm:$0xff]  ;;  %v887_v12 = vld [vmem:[%s2625_s2] sm:$0xff]  ;;  %s3213_s1 = scalar_lea.vmem %s3165_s6, %s2602_s24  ;;  %s2453_s18 = smov 96   ;;  %vm992_vm15 = vcmask 195584  }
  0xdd   : > { %803 = vadd.xlane.f32.xlu0 %v802_v47  ;;  %v2320_v30 = vld [vmem:[%s3211_s22] ss:$0 sm:$0xff]  ;;  %s2454_s21 = smov 64   ;;  %s2455_s2 = smov 88  }
  0xde   : > { %922 = vmatpush.msra.mxu0 %v889_v10  ;;  %v2321_v34 = vld [vmem:[%s3212_s30] ss:$0 sm:$0xff]  ;;  %s2456_s0 = smov 120   ;;  %s2457_s22 = smov 80  }
  0xdf   : > { %s2458_s29 = smov 72   ;;  %s2459_s27 = smov 112  }
  0xe0   : > { %v2764_v49 = vld [vmem:[#allocation2 + $0x8] sm:$0xff]  ;;  %923 = vmatpush.msra.mxu0 %v888_v11  ;;  %s2460_s30 = smov 104   ;;  %s3214_s15 = sld [smem:[#allocation14_spill]] }
  0xe1   : > { %v2758_v46 = vld [vmem:[#allocation2 + $0x10] sm:$0xff]  ;;  %v805_v50 = vsel %vm801_vm2, %v2764_v49, 0.0  ;;  %s2461_s28 = smov 56   ;;  %p2178_p12 = scmp.ne.s32.totalorder %s2434_s20, 3 }
  0xe2   : > { %v808_v48 = vsel %vm801_vm2, %v2758_v46, 0.0  ;;  %v2329_v52 = vpop.eup %2328  ;;  %924 = vmatpush.msra.mxu0 %v887_v12 }
  0xe3   : > { %809 = vadd.xlane.f32.xlu1 %v808_v48  ;;  %v812_v53 = vmul.f32 32.0, %v2329_v52  ;;  %vm816_vm3 = vweird.f32 %v2329_v52 }
  0xe5   : > { %806 = vadd.xlane.f32.xlu0 %v805_v50  ;;  %v813_v54 = vsub.f32 1.0, %v812_v53 }
  0xe7   : > { %v814_v55 = vmul.f32 %v2329_v52, %v813_v54 }
  0xe9   : > { %v815_v56 = vadd.f32 %v2329_v52, %v814_v55 }
  0xeb   : > { %v2768_v57 = vsel %vm816_vm3, %v2329_v52, %v815_v56 }
 0x150   : > { %v804_v58 = vpop.xlane.xlu0 %803 }
 0x151   : > { %v818_v59 = vmul.f32 %v2768_v57, %v804_v58  ;;  %v2322_v58 = vld [vmem:[%s3213_s1] ss:$0 sm:$0xff]  ;;  %s2462_s1 = smov 40  }
 0x153   : > { %v821_v60 = vsub.f32 %v2756_v45, %v818_v59 }
 0x155   : > { %v824_v61 = vmul.f32 %v821_v60, %v821_v60 }
 0x156   : > { %v810_v62 = vpop.xlane.xlu1 %809 }
 0x157   : > { %v827_v63 = vsel %vm801_vm2, %v824_v61, 0.0  ;;  %v820_v2 = vmul.f32 %v2768_v57, %v810_v62 }
 0x158   : > { %828 = vadd.xlane.f32.xlu1 %v827_v63  ;;  %v807_v0 = vpop.xlane.xlu0 %806 }
 0x159   : > { %v819_v1 = vmul.f32 %v2768_v57, %v807_v0  ;;  %v2777_v4 = vsub.f32 %v2758_v46, %v820_v2 }
 0x15b   : > { %v822_v3 = vsub.f32 %v2764_v49, %v819_v1  ;;  %v826_v7 = vmul.f32 %v2777_v4, %v2777_v4 }
 0x15d   : > { %v825_v5 = vmul.f32 %v822_v3, %v822_v3  ;;  %v833_v8 = vsel %vm801_vm2, %v826_v7, 0.0 }
 0x15f   : > { %v830_v6 = vsel %vm801_vm2, %v825_v5, 0.0 }
 0x160   : > { %831 = vadd.xlane.f32.xlu2 %v830_v6 }
 0x168   : > { %834 = vadd.xlane.f32.xlu2 %v833_v8 }
 0x1cb   : > { %v829_v13 = vpop.xlane.xlu1 %828 }
 0x1cc   : > { %v836_v14 = vmul.f32 %v829_v13, %v2768_v57 }
 0x1ce   : > { %v839_v15 = vadd.f32 1e-06, %v836_v14 }
 0x1d0   : > { %2330 = vrsqrt.f32 %v839_v15  ;;  %vm848_vm5 = vweird.f32 %v839_v15 }
 0x1d3   : > { %v832_v16 = vpop.xlane.xlu2 %831 }
 0x1d4   : > { %v837_v17 = vmul.f32 %v832_v16, %v2768_v57 }
 0x1d6   : > { %v2331_v18 = vpop.eup %2330  ;;  %v840_v19 = vadd.f32 1e-06, %v837_v17 }
 0x1d7   : > { %v843_v20 = vmul.f32 %v2331_v18, %v839_v15  ;;  %vm849_vm4 = vweird.f32 %v2331_v18 }
 0x1d8   : > { %2332 = vrsqrt.f32 %v840_v19  ;;  %vm850_vm6 = vmor %vm848_vm5, %vm849_vm4  ;;  %vm858_vm8 = vweird.f32 %v840_v19 }
 0x1d9   : > { %v844_v21 = vmul.f32 %v2331_v18, %v843_v20 }
 0x1db   : > { %v845_v22 = vmul.f32 0.5, %v844_v21  ;;  %v835_v23 = vpop.xlane.xlu2 %834 }
 0x1dc   : > { %v838_v24 = vmul.f32 %v835_v23, %v2768_v57 }
 0x1dd   : > { %v846_v25 = vsub.f32 1.5, %v845_v22 }
 0x1de   : > { %v2333_v26 = vpop.eup %2332  ;;  %v841_v27 = vadd.f32 1e-06, %v838_v24 }
 0x1df   : > { %v847_v28 = vmul.f32 %v2331_v18, %v846_v25  ;;  %v853_v29 = vmul.f32 %v2333_v26, %v840_v19  ;;  %vm859_vm7 = vweird.f32 %v2333_v26 }
 0x1e0   : > { %2334 = vrsqrt.f32 %v841_v27  ;;  %vm860_vm9 = vmor %vm858_vm8, %vm859_vm7  ;;  %vm868_vm11 = vweird.f32 %v841_v27 }
 0x1e1   : > { %v851_v31 = vsel %vm850_vm6, %v2331_v18, %v847_v28  ;;  %v854_v32 = vmul.f32 %v2333_v26, %v853_v29 }
 0x1e2   : > { %v872_v33 = vmul.f32 %v851_v31, %v821_v60 }
 0x1e3   : > { %v855_v35 = vmul.f32 0.5, %v854_v32 }
 0x1e4   : > { %v878_v36 = vmul.f32 %v2320_v30, %v872_v33 }
 0x1e5   : > { %v856_v37 = vsub.f32 1.5, %v855_v35 }
 0x1e6   : > { %v2335_v38 = vpop.eup %2334  ;;  %v884_v39 = vadd.f32 %v2321_v34, %v878_v36 }
 0x1e7   : > { %v857_v40 = vmul.f32 %v2333_v26, %v856_v37  ;;  %v863_v41 = vmul.f32 %v2335_v38, %v841_v27  ;;  %vm869_vm10 = vweird.f32 %v2335_v38 }
 0x1e8   : > { %2124 = vmatmul.msk.f32.vlgmr.msra.gmra.mxu0 %vm801_vm2, %v884_v39  ;;  %vm870_vm12 = vmor %vm868_vm11, %vm869_vm10 }
 0x1e9   : > { %v861_v42 = vsel %vm860_vm9, %v2333_v26, %v857_v40  ;;  %v864_v43 = vmul.f32 %v2335_v38, %v863_v41 }
 0x1ea   : > { %v873_v44 = vmul.f32 %v861_v42, %v822_v3 }
 0x1eb   : > { %v865_v47 = vmul.f32 0.5, %v864_v43 }
 0x1ec   : > { %v879_v48 = vmul.f32 %v2320_v30, %v873_v44 }
 0x1ed   : > { %v866_v50 = vsub.f32 1.5, %v865_v47 }
 0x1ee   : > { %v885_v51 = vadd.f32 %v2321_v34, %v879_v48 }
 0x1ef   : > { %v867_v52 = vmul.f32 %v2335_v38, %v866_v50 }
 0x1f0   : > { %2125 = vmatmul.msk.f32.gmra.mxu0 %vm801_vm2, %v885_v51 }
 0x1f1   : > { %v871_v53 = vsel %vm870_vm12, %v2335_v38, %v867_v52  ;;  %v892_v38 = vld [vmem:[%s3214_s15] sm:$0xff] }
 0x1f2   : > { %v874_v54 = vmul.f32 %v871_v53, %v2777_v4  ;;  %v935_v4 = vlaneseq }
 0x1f4   : > { %v880_v55 = vmul.f32 %v2320_v30, %v874_v54  ;;  %v2830_v5 = vand.u32 127, %v935_v4 }
 0x1f6   : > { %v886_v56 = vadd.f32 %v2321_v34, %v880_v55  ;;  %vm937_vm14 = vcmp.lt.s32.totalorder %v2830_v5, 17 }
 0x1f8   : > { %2126 = vmatmul.msk.f32.gmra.mxu0 %vm801_vm2, %v886_v56 }
 0x265   : > { %v926_v59 = vpop.f32.mrf.mxu0 }
 0x266   : > { %v2809_v60 = vadd.f32 %v2322_v58, %v926_v59 }
 0x268   : > { %941 = vrot.lane.b32.xlu2 %v2809_v60, %s2453_s18 }
 0x26d   : > { %v929_v61 = vpop.f32.mrf.mxu0 }
 0x26e   : > { %v2812_v62 = vadd.f32 %v2322_v58, %v929_v61 }
 0x270   : > { %943 = vrot.lane.b32.xlu1 %v2812_v62, %s2453_s18 }
 0x275   : > { %v932_v63 = vpop.f32.mrf.mxu0 }
 0x276   : > { %v2815_v0 = vadd.f32 %v2322_v58, %v932_v63 }
 0x278   : > { %945 = vrot.lane.b32.xlu0 %v2815_v0, %s2453_s18  ;;  %v2844_v18 = vpack.i.bf16 %v2812_v62, %v2815_v0  ;;  %s2463_s18 = smov 48  }
 0x2c2   : > { %v942_v3 = vpop.permute.xlu2 %941 }
 0x2e2   : > { %v944_v2 = vpop.permute.xlu1 %943 }
 0x2ea   : > { %v946_v1 = vpop.permute.xlu0 %945 }
 0x2eb   : > { %2127 = vmatpush.xpose.msk.msra.mxu1 %vm947_vm13, %v946_v1  ;;  %2226 = vmatpush.xpose.msk.msra.mxu3 %vm947_vm13, %v946_v1 }
 0x2ef   : > { %2128 = vmatpush.xpose.msk.msra.mxu1 %vm947_vm13, %v944_v2  ;;  %2227 = vmatpush.xpose.msk.msra.mxu3 %vm947_vm13, %v944_v2 }
 0x2f3   : > { %2129 = vmatpush.xpose.msk.msra.mxu1 %vm947_vm13, %v942_v3  ;;  %2228 = vmatpush.xpose.msk.msra.mxu3 %vm947_vm13, %v942_v3 }
 0x2f6   : > { %2130 = vmatmul.msk.f32.vlgmr.msra.gmra.mxu1 %vm947_vm13, %v2809_v60  ;;  %2131 = vmatmul.msk.f32.vlgmr.msra.gmra.mxu3 %vm947_vm13, %v2812_v62 }
 0x2f7   : > { %1262 = vmatpush.msrb.mxu1 %v892_v38 }
 0x2fe   : > { %2132 = vmatmul.msk.f32.gmra.mxu3 %vm947_vm13, %v2815_v0 }
 0x373   : > { %v977_v6 = vpop.f32.mrf.mxu1 }
 0x374   : > { %v986_v7 = vmul.f32 0.35355338, %v977_v6 }
 0x376   : > { %v989_v8 = vsel %vm937_vm14, %v986_v7, -1e+30 }
 0x377   : > { %v993_v9 = vsel %vm992_vm15, %v989_v8, -inf }
 0x378   : > { %994 = vmax.xlane.f32.xlu0 %v993_v9 }
 0x379   : > { %v980_v10 = vpop.f32.mrf.mxu3 }
 0x37a   : > { %v987_v11 = vmul.f32 0.35355338, %v980_v10 }
 0x37c   : > { %v990_v12 = vsel %vm937_vm14, %v987_v11, -1e+30 }
 0x37d   : > { %v996_v13 = vsel %vm992_vm15, %v990_v12, -inf }
 0x37e   : > { %997 = vmax.xlane.f32.xlu2 %v996_v13 }
 0x381   : > { %v983_v14 = vpop.f32.mrf.mxu3 }
 0x382   : > { %v988_v15 = vmul.f32 0.35355338, %v983_v14 }
 0x384   : > { %v991_v16 = vsel %vm937_vm14, %v988_v15, -1e+30 }
 0x385   : > { %v999_v17 = vsel %vm992_vm15, %v991_v16, -inf }
 0x386   : > { %1000 = vmax.xlane.f32.xlu1 %v999_v17 }
 0x396   : > { %2301 = vrot.lane.b32.xlu2 %v2844_v18, %s2454_s21 }
 0x39e   : > { %1078 = vrot.lane.b32.xlu2 %v2812_v62, %s2455_s2 }
 0x3a6   : > { %1070 = vrot.lane.b32.xlu2 %v2809_v60, %s2456_s0 }
 0x3ae   : > { %1283 = vrot.lane.b32.xlu2 %v2815_v0, %s2457_s22 }
 0x3b6   : > { %1281 = vrot.lane.b32.xlu2 %v2812_v62, %s2457_s22 }
 0x3be   : > { %1450 = vrot.lane.b32.xlu2 %v2809_v60, %s2458_s29 }
 0x3c6   : > { %1275 = vrot.lane.b32.xlu2 %v2812_v62, %s2459_s27 }
 0x3ce   : > { %1448 = vrot.lane.b32.xlu2 %v2815_v0, %s2460_s30 }
 0x3eb   : > { %v995_v19 = vpop.xlane.xlu0 %994 }
 0x3ec   : > { %v1002_v20 = vsub.f32 %v989_v8, %v995_v19 }
 0x3ee   : > { %v1005_v21 = vmul.f32 1.442695, %v1002_v20 }
 0x3f0   : > { %2336 = vpow2.f32 %v1005_v21 }
 0x3f1   : > { %v998_v22 = vpop.xlane.xlu2 %997 }
 0x3f2   : > { %v1003_v23 = vsub.f32 %v990_v12, %v998_v22 }
 0x3f4   : > { %v1007_v24 = vmul.f32 1.442695, %v1003_v23 }
 0x3f6   : > { %v2337_v25 = vpop.eup %2336  ;;  %2338 = vpow2.f32 %v1007_v24 }
 0x3f7   : > { %v1011_v26 = vsel %vm992_vm15, %v2337_v25, 0.0 }
 0x3f8   : > { %1012 = vadd.xlane.f32.xlu0 %v1011_v26 }
 0x3f9   : > { %v2302_v27 = vpop.permute.xlu2 %2301  ;;  %v1001_v28 = vpop.xlane.xlu1 %1000 }
 0x3fa   : > { %v1004_v29 = vsub.f32 %v991_v16, %v1001_v28  ;;  %v2303_v30 = vunpack.i.l.bf16 %v2302_v27  ;;  %v2304_v33 = vunpack.i.h.bf16 %v2302_v27 }
 0x3fc   : > { %v2339_v31 = vpop.eup %2338  ;;  %v1009_v32 = vmul.f32 1.442695, %v1004_v29  ;;  %1057 = vmatpush.msra.mxu2 %v2303_v30 }
 0x3fd   : > { %v1014_v34 = vsel %vm992_vm15, %v2339_v31, 0.0 }
 0x3fe   : > { %2340 = vpow2.f32 %v1009_v32  ;;  %1058 = vmatpush.msra.mxu2 %v2304_v33  ;;  %1015 = vadd.xlane.f32.xlu1 %v1014_v34 }
 0x401   : > { %v1079_v40 = vpop.permute.xlu2 %1078 }
 0x404   : > { %v2341_v35 = vpop.eup %2340 }
 0x405   : > { %v1017_v36 = vsel %vm992_vm15, %v2341_v35, 0.0 }
 0x406   : > { %1018 = vadd.xlane.f32.xlu1 %v1017_v36 }
 0x409   : > { %v1071_v48 = vpop.permute.xlu2 %1070 }
 0x40c   : > { %1026 = vrot.lane.b32.xlu0 %v2809_v60, %s2454_s21 }
 0x411   : > { %v1284_v53 = vpop.permute.xlu2 %1283 }
 0x414   : > { %1076 = vrot.lane.b32.xlu0 %v2809_v60, %s2455_s2 }
 0x419   : > { %v1282_v59 = vpop.permute.xlu2 %1281 }
 0x41c   : > { %1072 = vrot.lane.b32.xlu0 %v2812_v62, %s2456_s0 }
 0x41f   : > { %1080 = vrot.lane.b32.xlu1 %v2815_v0, %s2455_s2 }
 0x424   : > { %1454 = vrot.lane.b32.xlu0 %v2815_v0, %s2458_s29 }
 0x427   : > { %1074 = vrot.lane.b32.xlu1 %v2815_v0, %s2456_s0  ;;  %s3215_s0 = scalar_lea.vmem %s3167_s8, %s2602_s24 }
 0x42c   : > { %1452 = vrot.lane.b32.xlu0 %v2812_v62, %s2458_s29  ;;  %s3216_s29 = scalar_lea.vmem %s3168_s9, %s2602_s24 }
 0x42f   : > { %1279 = vrot.lane.b32.xlu1 %v2809_v60, %s2457_s22 }
 0x434   : > { %1273 = vrot.lane.b32.xlu0 %v2809_v60, %s2459_s27 }
 0x437   : > { %1444 = vrot.lane.b32.xlu1 %v2809_v60, %s2460_s30 }
 0x43c   : > { %1446 = vrot.lane.b32.xlu0 %v2812_v62, %s2460_s30 }
 0x43f   : > { %1277 = vrot.lane.b32.xlu1 %v2815_v0, %s2459_s27  ;;  %v1451_v0 = vpop.permute.xlu2 %1450 }
 0x447   : > { %v1276_v3 = vpop.permute.xlu2 %1275 }
 0x44f   : > { %v1449_v16 = vpop.permute.xlu2 %1448 }
 0x46b   : > { %v1013_v37 = vpop.xlane.xlu0 %1012 }
 0x46c   : > { %2342 = vrcp.f32 %v1013_v37 }
 0x471   : > { %v1016_v39 = vpop.xlane.xlu1 %1015 }
 0x472   : > { %v2343_v41 = vpop.eup %2342  ;;  %2344 = vrcp.f32 %v1016_v39 }
 0x473   : > { %v1023_v43 = vmul.f32 %v2343_v41, %v2337_v25 }
 0x478   : > { %v2345_v47 = vpop.eup %2344 }
 0x479   : > { %v1019_v44 = vpop.xlane.xlu1 %1018  ;;  %v1024_v51 = vmul.f32 %v2345_v47, %v2339_v31 }
 0x47a   : > { %2346 = vrcp.f32 %v1019_v44 }
 0x47e   : > { %v1027_v42 = vpop.permute.xlu0 %1026 }
 0x47f   : > { %1059 = vmatpush.msra.mxu2 %v1027_v42 }
 0x480   : > { %2133 = vmatmul.msk.f32.vlgmr.msra.gmra.mxu2 %vm992_vm15, %v1023_v43  ;;  %v2347_v52 = vpop.eup %2346 }
 0x481   : > { %v1025_v55 = vmul.f32 %v2347_v52, %v2341_v35 }
 0x486   : > { %v1077_v50 = vpop.permute.xlu0 %1076 }
 0x488   : > { %2134 = vmatmul.msk.f32.gmra.mxu2 %vm992_vm15, %v1024_v51 }
 0x48e   : > { %v1073_v54 = vpop.permute.xlu0 %1072 }
 0x490   : > { %2135 = vmatmul.msk.f32.gmra.mxu2 %vm992_vm15, %v1025_v55 }
 0x491   : > { %v1081_v56 = vpop.permute.xlu1 %1080 }
 0x492   : > { %2136 = vmatpush.xpose.msk.msrb.mxu3 %vm947_vm13, %v1081_v56 }
 0x496   : > { %2137 = vmatpush.xpose.msk.msrb.mxu3 %vm947_vm13, %v1079_v40  ;;  %v1455_v58 = vpop.permute.xlu0 %1454 }
 0x497   : > { %2163 = vmatpush.xpose.msk.msra.mxu1 %vm947_vm13, %v1455_v58 }
 0x499   : > { %v1075_v61 = vpop.permute.xlu1 %1074 }
 0x49a   : > { %2138 = vmatpush.xpose.msk.msrb.mxu3 %vm947_vm13, %v1077_v50 }
 0x49d   : > { %2139 = vmatmul.msk.f32.vlgmr.msrb.gmra.mxu3 %vm947_vm13, %v1071_v48 }
 0x49e   : > { %2151 = vmatpush.xpose.msk.msra.mxu3 %vm947_vm13, %v1284_v53  ;;  %v1453_v62 = vpop.permute.xlu0 %1452 }
 0x49f   : > { %2164 = vmatpush.xpose.msk.msra.mxu1 %vm947_vm13, %v1453_v62 }
 0x4a1   : > { %v1280_v63 = vpop.permute.xlu1 %1279 }
 0x4a2   : > { %2152 = vmatpush.xpose.msk.msra.mxu3 %vm947_vm13, %v1282_v59 }
 0x4a3   : > { %2165 = vmatpush.xpose.msk.msra.mxu1 %vm947_vm13, %v1451_v0 }
 0x4a5   : > { %2140 = vmatmul.msk.f32.gmra.mxu3 %vm947_vm13, %v1073_v54 }
 0x4a6   : > { %2153 = vmatpush.xpose.msk.msra.mxu3 %vm947_vm13, %v1280_v63  ;;  %v1274_v1 = vpop.permute.xlu0 %1273 }
 0x4a9   : > { %v1445_v2 = vpop.permute.xlu1 %1444 }
 0x4ad   : > { %2141 = vmatmul.msk.f32.gmra.mxu3 %vm947_vm13, %v1075_v61 }
 0x4ae   : > { %v1447_v11 = vpop.permute.xlu0 %1446 }
 0x4b1   : > { %v1278_v4 = vpop.permute.xlu1 %1277 }
 0x4b5   : > { %2154 = vmatmul.msk.f32.vlgmr.msra.gmra.mxu3 %vm947_vm13, %v1274_v1 }
 0x4bd   : > { %2155 = vmatmul.msk.f32.gmra.mxu3 %vm947_vm13, %v1276_v3 }
 0x4c5   : > { %2156 = vmatmul.msk.f32.gmra.mxu3 %vm947_vm13, %v1278_v4 }
 0x503   : > { %v1061_v6 = vpop.f32.mrf.mxu2 }
 0x504   : > { %2148 = vmatmul.msk.f32.vlgmr.msrb.gmra.mxu1 %vm947_vm13, %v1061_v6 }
 0x50b   : > { %v1064_v7 = vpop.f32.mrf.mxu2 }
 0x50c   : > { %2149 = vmatmul.msk.f32.gmra.mxu1 %vm947_vm13, %v1064_v7 }
 0x513   : > { %v1067_v8 = vpop.f32.mrf.mxu2 }
 0x514   : > { %2150 = vmatmul.msk.f32.gmra.mxu1 %vm947_vm13, %v1067_v8 }
 0x51c   : > { %2166 = vmatmul.msk.f32.vlgmr.msra.gmra.mxu1 %vm947_vm13, %v1445_v2 }
 0x520   : > { %v1111_v9 = vpop.f32.mrf.mxu3 }
 0x521   : > { %v1120_v10 = vmul.f32 0.35355338, %v1111_v9 }
 0x523   : > { %v1123_v12 = vsel %vm937_vm14, %v1120_v10, -1e+30 }
 0x524   : > { %2167 = vmatmul.msk.f32.gmra.mxu1 %vm947_vm13, %v1447_v11  ;;  %v1126_v13 = vsel %vm992_vm15, %v1123_v12, -inf }
 0x525   : > { %1127 = vmax.xlane.f32.xlu0 %v1126_v13 }
 0x528   : > { %v1114_v14 = vpop.f32.mrf.mxu3 }
 0x529   : > { %v1121_v15 = vmul.f32 0.35355338, %v1114_v14 }
 0x52b   : > { %v1124_v17 = vsel %vm937_vm14, %v1121_v15, -1e+30 }
 0x52c   : > { %2168 = vmatmul.msk.f32.gmra.mxu1 %vm947_vm13, %v1449_v16  ;;  %v1129_v19 = vsel %vm992_vm15, %v1124_v17, -inf }
 0x52d   : > { %1130 = vmax.xlane.f32.xlu1 %v1129_v19 }
 0x530   : > { %v1117_v20 = vpop.f32.mrf.mxu3 }
 0x531   : > { %v1122_v21 = vmul.f32 0.35355338, %v1117_v20 }
 0x533   : > { %v1125_v22 = vsel %vm937_vm14, %v1122_v21, -1e+30 }
 0x534   : > { %v1132_v23 = vsel %vm992_vm15, %v1125_v22, -inf }
 0x535   : > { %1133 = vmax.xlane.f32.xlu2 %v1132_v23 }
 0x538   : > { %v1314_v24 = vpop.f32.mrf.mxu3 }
 0x539   : > { %v1323_v25 = vmul.f32 0.35355338, %v1314_v24 }
 0x53b   : > { %v1326_v26 = vsel %vm937_vm14, %v1323_v25, -1e+30 }
 0x53c   : > { %v1329_v27 = vsel %vm992_vm15, %v1326_v26, -inf }
 0x53d   : > { %1330 = vmax.xlane.f32.xlu1 %v1329_v27 }
 0x540   : > { %v1317_v28 = vpop.f32.mrf.mxu3 }
 0x541   : > { %v1324_v29 = vmul.f32 0.35355338, %v1317_v28 }
 0x543   : > { %v1327_v30 = vsel %vm937_vm14, %v1324_v29, -1e+30 }
 0x544   : > { %v1332_v31 = vsel %vm992_vm15, %v1327_v30, -inf }
 0x545   : > { %1333 = vmax.xlane.f32.xlu0 %v1332_v31 }
 0x548   : > { %v1320_v32 = vpop.f32.mrf.mxu3 }
 0x549   : > { %v1325_v33 = vmul.f32 0.35355338, %v1320_v32 }
 0x54b   : > { %v2931_v34 = vsel %vm937_vm14, %v1325_v33, -1e+30 }
 0x54c   : > { %v1335_v35 = vsel %vm992_vm15, %v2931_v34, -inf }
 0x54d   : > { %1336 = vmax.xlane.f32.xlu2 %v1335_v35 }
 0x581   : > { %v2935_v36 = vpop.f32.mrf.mxu1 }
 0x589   : > { %v2937_v37 = vpop.f32.mrf.mxu1 }
 0x591   : > { %v2939_v38 = vpop.f32.mrf.mxu1 }
 0x598   : > { %v1128_v39 = vpop.xlane.xlu0 %1127 }
 0x599   : > { %v1135_v40 = vsub.f32 %v1123_v12, %v1128_v39  ;;  %v1485_v41 = vpop.f32.mrf.mxu1 }
 0x59a   : > { %v1494_v54 = vmul.f32 0.35355338, %v1485_v41 }
 0x59b   : > { %v1138_v42 = vmul.f32 1.442695, %v1135_v40 }
 0x59c   : > { %v1497_v61 = vsel %vm937_vm14, %v1494_v54, -1e+30 }
 0x59d   : > { %2348 = vpow2.f32 %v1138_v42  ;;  %v1500_v1 = vsel %vm992_vm15, %v1497_v61, -inf }
 0x5a0   : > { %v1131_v43 = vpop.xlane.xlu1 %1130 }
 0x5a1   : > { %v1136_v44 = vsub.f32 %v1124_v17, %v1131_v43  ;;  %v1488_v47 = vpop.f32.mrf.mxu1 }
 0x5a2   : > { %v1495_v48 = vmul.f32 0.35355338, %v1488_v47 }
 0x5a3   : > { %v2941_v50 = vpop.eup %2348  ;;  %v1140_v51 = vmul.f32 1.442695, %v1136_v44 }
 0x5a4   : > { %v1144_v52 = vsel %vm992_vm15, %v2941_v50, 0.0  ;;  %v1498_v53 = vsel %vm937_vm14, %v1495_v48, -1e+30 }
 0x5a5   : > { %2350 = vpow2.f32 %v1140_v51  ;;  %1145 = vadd.xlane.f32.xlu0 %v1144_v52  ;;  %v1503_v55 = vsel %vm992_vm15, %v1498_v53, -inf }
 0x5a6   : > { %1504 = vmax.xlane.f32.xlu2 %v1503_v55 }
 0x5a8   : > { %v1134_v56 = vpop.xlane.xlu2 %1133 }
 0x5a9   : > { %v1137_v58 = vsub.f32 %v1125_v22, %v1134_v56  ;;  %v1491_v59 = vpop.f32.mrf.mxu1 }
 0x5aa   : > { %v1496_v62 = vmul.f32 0.35355338, %v1491_v59 }
 0x5ab   : > { %v2950_v63 = vpop.eup %2350  ;;  %v1142_v0 = vmul.f32 1.442695, %v1137_v58 }
 0x5ac   : > { %v1147_v2 = vsel %vm992_vm15, %v2950_v63, 0.0  ;;  %v1499_v3 = vsel %vm937_vm14, %v1496_v62, -1e+30 }
 0x5ad   : > { %2352 = vpow2.f32 %v1142_v0  ;;  %1501 = vmax.xlane.f32.xlu0 %v1500_v1  ;;  %v1506_v4 = vsel %vm992_vm15, %v1499_v3, -inf }
 0x5ae   : > { %1148 = vadd.xlane.f32.xlu2 %v1147_v2  ;;  %1507 = vmax.xlane.f32.xlu1 %v1506_v4 }
 0x5b0   : > { %v1331_v5 = vpop.xlane.xlu1 %1330 }
 0x5b1   : > { %v1338_v8 = vsub.f32 %v1326_v26, %v1331_v5 }
 0x5b3   : > { %v2958_v6 = vpop.eup %2352  ;;  %v1341_v9 = vmul.f32 1.442695, %v1338_v8 }
 0x5b4   : > { %v1150_v7 = vsel %vm992_vm15, %v2958_v6, 0.0 }
 0x5b5   : > { %2354 = vpow2.f32 %v1341_v9 }
 0x5b6   : > { %1151 = vadd.xlane.f32.xlu2 %v1150_v7 }
 0x5b8   : > { %v1334_v10 = vpop.xlane.xlu0 %1333 }
 0x5b9   : > { %v1339_v11 = vsub.f32 %v1327_v30, %v1334_v10 }
 0x5bb   : > { %v2968_v12 = vpop.eup %2354  ;;  %v1343_v13 = vmul.f32 1.442695, %v1339_v11 }
 0x5bc   : > { %v1347_v14 = vsel %vm992_vm15, %v2968_v12, 0.0 }
 0x5bd   : > { %2356 = vpow2.f32 %v1343_v13 }
 0x5c1   : > { %1159 = vrot.lane.b32.xlu0 %v2809_v60, %s2461_s28 }
 0x5c3   : > { %v2972_v15 = vpop.eup %2356 }
 0x5c4   : > { %v1350_v16 = vsel %vm992_vm15, %v2972_v15, 0.0 }
 0x5c7   : > { %2306 = vrot.lane.b32.xlu1 %v2844_v18, %s2461_s28 }
 0x5c9   : > { %2311 = vrot.lane.b32.xlu0 %v2844_v18, %s2462_s1 }
 0x5ce   : > { %1533 = vrot.lane.b32.xlu2 %v2809_v60, %s2462_s1 }
 0x5d1   : > { %2316 = vrot.lane.b32.xlu0 %v2844_v18, %s2463_s18  ;;  %v1337_v18 = vpop.xlane.xlu2 %1336 }
 0x5d2   : > { %v1340_v62 = vsub.f32 %v2931_v34, %v1337_v18 }
 0x5d4   : > { %v1345_v0 = vmul.f32 1.442695, %v1340_v62 }
 0x5f1   : > { %1348 = vadd.xlane.f32.xlu1 %v1347_v14 }
 0x5fb   : > { %1351 = vadd.xlane.f32.xlu0 %v1350_v16 }
 0x618   : > { %v1146_v17 = vpop.xlane.xlu0 %1145 }
 0x619   : > { %v1505_v19 = vpop.xlane.xlu2 %1504 }
 0x61a   : > { %v1510_v24 = vsub.f32 %v1498_v53, %v1505_v19 }
 0x61c   : > { %v1514_v27 = vmul.f32 1.442695, %v1510_v24  ;;  %v894_v24 = vld [vmem:[%s3214_s15 + $0x10] sm:$0xff] }
 0x620   : > { %v1502_v20 = vpop.xlane.xlu0 %1501 }
 0x621   : > { %v1509_v21 = vsub.f32 %v1497_v61, %v1502_v20  ;;  %v1508_v22 = vpop.xlane.xlu1 %1507  ;;  %v1149_v31 = vpop.xlane.xlu2 %1148 }
 0x622   : > { %v1511_v23 = vsub.f32 %v1499_v3, %v1508_v22  ;;  %v893_v3 = vld [vmem:[%s3214_s15 + $0x8] sm:$0xff] }
 0x623   : > { %v1512_v25 = vmul.f32 1.442695, %v1509_v21  ;;  %1227 = vmatpush.msrb.mxu0 %v893_v3 }
 0x624   : > { %v1516_v26 = vmul.f32 1.442695, %v1511_v23  ;;  %v895_v23 = vld [vmem:[%s3214_s15 + $0x18] sm:$0xff] }
 0x625   : > { %2358 = vpow2.f32 %v1512_v25  ;;  %1430 = vmatpush.msra.mxu0 %v894_v24 }
 0x626   : > { %2360 = vpow2.f32 %v1516_v26 }
 0x627   : > { %2362 = vpow2.f32 %v1514_v27 }
 0x628   : > { %2364 = vrcp.f32 %v1146_v17 }
 0x629   : > { %v1152_v40 = vpop.xlane.xlu2 %1151  ;;  %2366 = vrcp.f32 %v1149_v31 }
 0x62a   : > { %2368 = vrcp.f32 %v1152_v40 }
 0x62b   : > { %v2359_v28 = vpop.eup %2358  ;;  %2370 = vpow2.f32 %v1345_v0 }
 0x62c   : > { %v2976_v29 = vpop.eup %2360  ;;  %v1518_v30 = vsel %vm992_vm15, %v2359_v28, 0.0 }
 0x62d   : > { %1519 = vadd.xlane.f32.xlu2 %v1518_v30  ;;  %v1524_v32 = vsel %vm992_vm15, %v2976_v29, 0.0  ;;  %v2363_v33 = vpop.eup %2362 }
 0x62e   : > { %1525 = vadd.xlane.f32.xlu1 %v1524_v32  ;;  %v1521_v39 = vsel %vm992_vm15, %v2363_v33, 0.0  ;;  %v2365_v44 = vpop.eup %2364 }
 0x62f   : > { %v1156_v52 = vmul.f32 %v2365_v44, %v2941_v50  ;;  %v2367_v55 = vpop.eup %2366 }
 0x630   : > { %v1157_v59 = vmul.f32 %v2367_v55, %v2950_v63  ;;  %v2369_v61 = vpop.eup %2368 }
 0x631   : > { %v1534_v53 = vpop.permute.xlu2 %1533  ;;  %v1158_v50 = vmul.f32 %v2369_v61, %v2958_v6  ;;  %v2371_v1 = vpop.eup %2370 }
 0x632   : > { %v1353_v2 = vsel %vm992_vm15, %v2371_v1, 0.0 }
 0x633   : > { %v1160_v35 = vpop.permute.xlu0 %1159 }
 0x635   : > { %1522 = vadd.xlane.f32.xlu2 %v1521_v39 }
 0x639   : > { %v2307_v41 = vpop.permute.xlu1 %2306 }
 0x63a   : > { %v2308_v42 = vunpack.i.l.bf16 %v2307_v41  ;;  %v2309_v48 = vunpack.i.h.bf16 %v2307_v41 }
 0x63b   : > { %v2312_v43 = vpop.permute.xlu0 %2311 }
 0x63c   : > { %v2313_v47 = vunpack.i.l.bf16 %v2312_v43  ;;  %1190 = vmatpush.msrb.mxu2 %v2308_v42  ;;  %v2314_v51 = vunpack.i.h.bf16 %v2312_v43  ;;  %v2323_v42 = vld [vmem:[%s3215_s0] ss:$0 sm:$0xff] }
 0x63e   : > { %1191 = vmatpush.msrb.mxu2 %v2309_v48  ;;  %1564 = vmatpush.msrb.mxu3 %v2313_v47 }
 0x640   : > { %1192 = vmatpush.msrb.mxu2 %v1160_v35  ;;  %1565 = vmatpush.msrb.mxu3 %v2314_v51 }
 0x641   : > { %2142 = vmatmul.msk.f32.vlgmr.msrb.gmra.mxu2 %vm992_vm15, %v1156_v52 }
 0x642   : > { %1566 = vmatpush.msrb.mxu3 %v1534_v53 }
 0x643   : > { %v2317_v54 = vpop.permute.xlu0 %2316 }
 0x644   : > { %v2318_v56 = vunpack.i.l.bf16 %v2317_v54  ;;  %v2319_v58 = vunpack.i.h.bf16 %v2317_v54 }
 0x646   : > { %1393 = vmatpush.msra.mxu2 %v2318_v56 }
 0x648   : > { %1394 = vmatpush.msra.mxu2 %v2319_v58 }
 0x649   : > { %2143 = vmatmul.msk.f32.gmra.mxu2 %vm992_vm15, %v1157_v59 }
 0x64d   : > { %1362 = vrot.lane.b32.xlu2 %v2809_v60, %s2463_s18 }
 0x651   : > { %2144 = vmatmul.msk.f32.gmra.mxu2 %vm992_vm15, %v1158_v50 }
 0x664   : > { %v1349_v4 = vpop.xlane.xlu1 %1348 }
 0x66e   : > { %v1352_v6 = vpop.xlane.xlu0 %1351 }
 0x676   : > { %1354 = vadd.xlane.f32.xlu2 %v1353_v2 }
 0x6a0   : > { %v1520_v63 = vpop.xlane.xlu2 %1519 }
 0x6a1   : > { %2372 = vrcp.f32 %v1520_v63  ;;  %v1526_v34 = vpop.xlane.xlu1 %1525 }
 0x6a2   : > { %2374 = vrcp.f32 %v1349_v4 }
 0x6a7   : > { %v2373_v7 = vpop.eup %2372 }
 0x6a8   : > { %v1530_v60 = vmul.f32 %v2373_v7, %v2359_v28  ;;  %v1523_v5 = vpop.xlane.xlu2 %1522  ;;  %v2375_v8 = vpop.eup %2374 }
 0x6a9   : > { %2376 = vrcp.f32 %v1523_v5  ;;  %v1359_v10 = vmul.f32 %v2375_v8, %v2968_v12 }
 0x6aa   : > { %2169 = vmatmul.msk.f32.vlgmr.msrb.gmra.mxu3 %vm992_vm15, %v1530_v60  ;;  %2378 = vrcp.f32 %v1352_v6 }
 0x6ab   : > { %2380 = vrcp.f32 %v1526_v34 }
 0x6af   : > { %v2377_v9 = vpop.eup %2376 }
 0x6b0   : > { %v1363_v11 = vpop.permute.xlu2 %1362  ;;  %v1531_v13 = vmul.f32 %v2377_v9, %v2363_v33  ;;  %v2379_v14 = vpop.eup %2378 }
 0x6b1   : > { %1395 = vmatpush.msra.mxu2 %v1363_v11  ;;  %v2381_v16 = vpop.eup %2380  ;;  %v1360_v18 = vmul.f32 %v2379_v14, %v2972_v15  ;;  %v1707_v11 = vld [vmem:[%s2647_s5 + $0x18] sm:$0xff]  ;;  %v1705_v14 = vld [vmem:[%s2647_s5 + $0x8] sm:$0xff] }
 0x6b2   : > { %2157 = vmatmul.msk.f32.vlgmr.msra.gmra.mxu2 %vm992_vm15, %v1359_v10  ;;  %2170 = vmatmul.msk.f32.gmra.mxu3 %vm992_vm15, %v1531_v13  ;;  %v1532_v17 = vmul.f32 %v2381_v16, %v2976_v29  ;;  %v1706_v13 = vld [vmem:[%s2647_s5 + $0x10] sm:$0xff]  ;;  %v1704_v16 = vld [vmem:[%s2647_s5] sm:$0xff] }
 0x6b3   : > { %1601 = vmatpush.msrb.mxu2 %v895_v23 }
 0x6ba   : > { %2158 = vmatmul.msk.f32.gmra.mxu2 %vm992_vm15, %v1360_v18  ;;  %2171 = vmatmul.msk.f32.gmra.mxu3 %vm992_vm15, %v1532_v17 }
 0x6c4   : > { %v1194_v12 = vpop.f32.mrf.mxu2 }
 0x6c5   : > { %2145 = vmatmul.msk.f32.vlgmr.msrb.gmra.mxu0 %vm947_vm13, %v1194_v12 }
 0x6c6   : > { %1733 = vmatpush.msrb.mxu0 %v1707_v11  ;;  %v2326_v11 = vld [vmem:[%s684_s7] ss:$0 sm:$0xff] }
 0x6c8   : > { %1734 = vmatpush.msrb.mxu0 %v1706_v13 }
 0x6ca   : > { %1735 = vmatpush.msrb.mxu0 %v1705_v14 }
 0x6cc   : > { %v1197_v19 = vpop.f32.mrf.mxu2  ;;  %1736 = vmatpush.msrb.mxu0 %v1704_v16 }
 0x6cd   : > { %2146 = vmatmul.msk.f32.gmra.mxu0 %vm947_vm13, %v1197_v19 }
 0x6d4   : > { %v1200_v20 = vpop.f32.mrf.mxu2 }
 0x6d5   : > { %2147 = vmatmul.msk.f32.gmra.mxu0 %vm947_vm13, %v1200_v20 }
 0x6e9   : > { %v1355_v21 = vpop.xlane.xlu2 %1354 }
 0x6ea   : > { %2382 = vrcp.f32 %v1355_v21 }
 0x6f0   : > { %v2383_v22 = vpop.eup %2382 }
 0x6f1   : > { %v1361_v15 = vmul.f32 %v2383_v22, %v2371_v1 }
 0x6f3   : > { %2159 = vmatmul.msk.f32.gmra.mxu2 %vm992_vm15, %v1361_v15 }
 0x72d   : > { %v1568_v25 = vpop.f32.mrf.mxu3 }
 0x72e   : > { %2172 = vmatmul.msk.f32.vlgmr.msrb.gmra.mxu2 %vm947_vm13, %v1568_v25 }
 0x735   : > { %v1397_v26 = vpop.f32.mrf.mxu2  ;;  %v1571_v27 = vpop.f32.mrf.mxu3 }
 0x736   : > { %2160 = vmatmul.msk.f32.vlgmr.msra.gmra.mxu0 %vm947_vm13, %v1397_v26  ;;  %2173 = vmatmul.msk.f32.gmra.mxu2 %vm947_vm13, %v1571_v27 }
 0x73d   : > { %v1400_v28 = vpop.f32.mrf.mxu2  ;;  %v1574_v29 = vpop.f32.mrf.mxu3 }
 0x73e   : > { %2161 = vmatmul.msk.f32.gmra.mxu0 %vm947_vm13, %v1400_v28  ;;  %2174 = vmatmul.msk.f32.gmra.mxu2 %vm947_vm13, %v1574_v29  ;;  %v2324_v29 = vld [vmem:[%s3216_s29] ss:$0 sm:$0xff] }
 0x742   : > { %v1229_v31 = vpop.f32.mrf.mxu0 }
 0x743   : > { %v1265_v35 = vadd.f32 %v2935_v36, %v1229_v31 }
 0x74a   : > { %v1232_v32 = vpop.f32.mrf.mxu0 }
 0x74b   : > { %v1268_v47 = vadd.f32 %v2937_v37, %v1232_v32 }
 0x752   : > { %v1235_v33 = vpop.f32.mrf.mxu0 }
 0x753   : > { %v1271_v37 = vadd.f32 %v2939_v38, %v1235_v33  ;;  %v2325_v33 = vld [vmem:[%s676_s19] ss:$0 sm:$0xff] }
 0x776   : > { %v1403_v30 = vpop.f32.mrf.mxu2 }
 0x777   : > { %2162 = vmatmul.msk.f32.gmra.mxu0 %vm947_vm13, %v1403_v30 }
 0x7b1   : > { %v1603_v39 = vpop.f32.mrf.mxu2 }
 0x7b3   : > { %v1432_v40 = vpop.f32.mrf.mxu0 }
 0x7b4   : > { %v1441_v41 = vadd.f32 %v1432_v40, %v1265_v35 }
 0x7b6   : > { %v1612_v43 = vadd.f32 %v1603_v39, %v1441_v41 }
 0x7b8   : > { %v1618_v44 = vadd.f32 %v2323_v42, %v1612_v43 }
 0x7b9   : > { %v1606_v53 = vpop.f32.mrf.mxu2 }
 0x7ba   : > { %v3021_v48 = vadd.f32 %v1618_v44, %v2756_v45 }
 0x7bb   : > { %v1435_v51 = vpop.f32.mrf.mxu0 }
 0x7bc   : > { %v1442_v52 = vadd.f32 %v1435_v51, %v1268_v47  ;;  %v1626_v36 = vsel %vm801_vm2, %v3021_v48, 0.0 }
 0x7bd   : > { %1627 = vadd.xlane.f32.xlu1 %v1626_v36  ;;  %v1788_v36 = vld [vmem:[%s2657_s26 + $0x70] sm:$0xff] }
 0x7be   : > { %v1613_v54 = vadd.f32 %v1606_v53, %v1442_v52  ;;  %v1789_v52 = vld [vmem:[%s2657_s26 + $0x78] sm:$0xff]  ;;  %v1787_v53 = vld [vmem:[%s2657_s26 + $0x68] sm:$0xff] }
 0x7bf   : > { %1794 = vmatpush.msrb.mxu1 %v1789_v52 }
 0x7c0   : > { %v1619_v55 = vadd.f32 %v2323_v42, %v1613_v54 }
 0x7c1   : > { %v1609_v61 = vpop.f32.mrf.mxu2  ;;  %1795 = vmatpush.msrb.mxu1 %v1788_v36 }
 0x7c2   : > { %v3026_v56 = vadd.f32 %v1619_v55, %v2764_v49 }
 0x7c3   : > { %1796 = vmatpush.msrb.mxu1 %v1787_v53  ;;  %v2327_v53 = vld [vmem:[%s692_s23] ss:$0 sm:$0xff] }
 0x7c4   : > { %v1629_v58 = vsel %vm801_vm2, %v3026_v56, 0.0 }
 0x7c5   : > { %1630 = vadd.xlane.f32.xlu1 %v1629_v58  ;;  %v1786_v58 = vld [vmem:[%s2657_s26 + $0x60] sm:$0xff] }
 0x7c6   : > { %1797 = vmatpush.msrb.mxu1 %v1786_v58 }
 0x7f4   : > { %v1438_v45 = vpop.f32.mrf.mxu0 }
 0x7f5   : > { %v1443_v59 = vadd.f32 %v1438_v45, %v1271_v37 }
 0x7f7   : > { %v1614_v50 = vadd.f32 %v1609_v61, %v1443_v59 }
 0x7f9   : > { %v1620_v62 = vadd.f32 %v2323_v42, %v1614_v50 }
 0x7fb   : > { %v3032_v0 = vadd.f32 %v1620_v62, %v2758_v46 }
 0x7fd   : > { %v1632_v1 = vsel %vm801_vm2, %v3032_v0, 0.0 }
 0x7fe   : > { %1633 = vadd.xlane.f32.xlu0 %v1632_v1 }
 0x830   : > { %v1628_v49 = vpop.xlane.xlu1 %1627 }
 0x831   : > { %v1635_v2 = vmul.f32 %v1628_v49, %v2768_v57 }
 0x833   : > { %v1638_v63 = vsub.f32 %v3021_v48, %v1635_v2 }
 0x835   : > { %v1641_v3 = vmul.f32 %v1638_v63, %v1638_v63 }
 0x837   : > { %v1644_v38 = vsel %vm801_vm2, %v1641_v3, 0.0  ;;  %v1785_v3 = vld [vmem:[%s2657_s26 + $0x58] sm:$0xff] }
 0x838   : > { %1645 = vadd.xlane.f32.xlu1 %v1644_v38  ;;  %v1631_v4 = vpop.xlane.xlu1 %1630  ;;  %1798 = vmatpush.msrb.mxu1 %v1785_v3  ;;  %v1784_v38 = vld [vmem:[%s2657_s26 + $0x50] sm:$0xff] }
 0x839   : > { %v1636_v46 = vmul.f32 %v1631_v4, %v2768_v57  ;;  %v1783_v4 = vld [vmem:[%s2657_s26 + $0x48] sm:$0xff] }
 0x83a   : > { %1799 = vmatpush.msrb.mxu1 %v1784_v38 }
 0x83b   : > { %v1639_v7 = vsub.f32 %v3026_v56, %v1636_v46  ;;  %v1782_v46 = vld [vmem:[%s2657_s26 + $0x40] sm:$0xff] }
 0x83c   : > { %1800 = vmatpush.msrb.mxu1 %v1783_v4 }
 0x83d   : > { %v1642_v60 = vmul.f32 %v1639_v7, %v1639_v7 }
 0x83e   : > { %1801 = vmatpush.msrb.mxu1 %v1782_v46 }
 0x83f   : > { %v1647_v5 = vsel %vm801_vm2, %v1642_v60, 0.0  ;;  %v1780_v60 = vld [vmem:[%s2657_s26 + $0x30] sm:$0xff] }
 0x840   : > { %1648 = vadd.xlane.f32.xlu0 %v1647_v5  ;;  %v1779_v5 = vld [vmem:[%s2657_s26 + $0x28] sm:$0xff] }
 0x871   : > { %v1634_v6 = vpop.xlane.xlu0 %1633 }
 0x872   : > { %v1637_v34 = vmul.f32 %v1634_v6, %v2768_v57  ;;  %v1778_v6 = vld [vmem:[%s2657_s26 + $0x20] sm:$0xff] }
 0x874   : > { %v3044_v8 = vsub.f32 %v3032_v0, %v1637_v34  ;;  %v1777_v34 = vld [vmem:[%s2657_s26 + $0x18] sm:$0xff] }
 0x876   : > { %v1643_v9 = vmul.f32 %v3044_v8, %v3044_v8 }
 0x878   : > { %v1650_v10 = vsel %vm801_vm2, %v1643_v9, 0.0  ;;  %v1775_v9 = vld [vmem:[%s2657_s26 + $0x8] sm:$0xff] }
 0x879   : > { %1651 = vadd.xlane.f32.xlu1 %v1650_v10  ;;  %v1774_v10 = vld [vmem:[%s2657_s26] sm:$0xff] }
 0x8ab   : > { %v1646_v18 = vpop.xlane.xlu1 %1645 }
 0x8ac   : > { %v1653_v17 = vmul.f32 %v1646_v18, %v2768_v57 }
 0x8ae   : > { %v1656_v12 = vadd.f32 1e-06, %v1653_v17 }
 0x8b0   : > { %2384 = vrsqrt.f32 %v1656_v12  ;;  %vm1665_vm1 = vweird.f32 %v1656_v12 }
 0x8b3   : > { %v1649_v19 = vpop.xlane.xlu0 %1648 }
 0x8b4   : > { %v1654_v20 = vmul.f32 %v1649_v19, %v2768_v57 }
 0x8b6   : > { %v2385_v21 = vpop.eup %2384  ;;  %v1657_v22 = vadd.f32 1e-06, %v1654_v20 }
 0x8b7   : > { %v1660_v15 = vmul.f32 %v2385_v21, %v1656_v12  ;;  %vm1666_vm0 = vweird.f32 %v2385_v21 }
 0x8b8   : > { %2386 = vrsqrt.f32 %v1657_v22  ;;  %vm1667_vm3 = vmor %vm1665_vm1, %vm1666_vm0  ;;  %vm1675_vm5 = vweird.f32 %v1657_v22 }
 0x8b9   : > { %v1661_v23 = vmul.f32 %v2385_v21, %v1660_v15 }
 0x8bb   : > { %v1662_v24 = vmul.f32 0.5, %v1661_v23 }
 0x8bd   : > { %v1663_v25 = vsub.f32 1.5, %v1662_v24 }
 0x8be   : > { %v2387_v26 = vpop.eup %2386 }
 0x8bf   : > { %v1664_v27 = vmul.f32 %v2385_v21, %v1663_v25  ;;  %v1670_v28 = vmul.f32 %v2387_v26, %v1657_v22  ;;  %vm1676_vm4 = vweird.f32 %v2387_v26 }
 0x8c0   : > { %vm1677_vm6 = vmor %vm1675_vm5, %vm1676_vm4 }
 0x8c1   : > { %v1668_v30 = vsel %vm1667_vm3, %v2385_v21, %v1664_v27  ;;  %v1671_v31 = vmul.f32 %v2387_v26, %v1670_v28 }
 0x8c2   : > { %v1689_v32 = vmul.f32 %v1668_v30, %v1638_v63 }
 0x8c3   : > { %v1672_v35 = vmul.f32 0.5, %v1671_v31 }
 0x8c4   : > { %v1695_v39 = vmul.f32 %v2324_v29, %v1689_v32 }
 0x8c5   : > { %v1673_v40 = vsub.f32 1.5, %v1672_v35 }
 0x8c6   : > { %v1701_v41 = vadd.f32 %v2325_v33, %v1695_v39 }
 0x8c7   : > { %v1674_v42 = vmul.f32 %v2387_v26, %v1673_v40 }
 0x8c8   : > { %2175 = vmatmul.msk.f32.vlgmr.msrb.gmra.mxu0 %vm801_vm2, %v1701_v41 }
 0x8c9   : > { %v1678_v43 = vsel %vm1677_vm6, %v2387_v26, %v1674_v42 }
 0x8ca   : > { %v1690_v44 = vmul.f32 %v1678_v43, %v1639_v7  ;;  %v1781_v7 = vld [vmem:[%s2657_s26 + $0x38] sm:$0xff] }
 0x8cb   : > { %1802 = vmatpush.msrb.mxu1 %v1781_v7 }
 0x8cc   : > { %v1696_v47 = vmul.f32 %v2324_v29, %v1690_v44 }
 0x8cd   : > { %1803 = vmatpush.msrb.mxu1 %v1780_v60 }
 0x8ce   : > { %v1702_v51 = vadd.f32 %v2325_v33, %v1696_v47 }
 0x8cf   : > { %1804 = vmatpush.msrb.mxu1 %v1779_v5 }
 0x8d0   : > { %2176 = vmatmul.msk.f32.gmra.mxu0 %vm801_vm2, %v1702_v51 }
 0x8d1   : > { %1805 = vmatpush.msrb.mxu1 %v1778_v6 }
 0x8d3   : > { %1806 = vmatpush.msrb.mxu1 %v1777_v34 }
 0x8ec   : > { %v1652_v54 = vpop.xlane.xlu1 %1651 }
 0x8ed   : > { %v1655_v55 = vmul.f32 %v1652_v54, %v2768_v57 }
 0x8ef   : > { %v1658_v37 = vadd.f32 1e-06, %v1655_v55 }
 0x8f1   : > { %2388 = vrsqrt.f32 %v1658_v37  ;;  %vm1685_vm8 = vweird.f32 %v1658_v37 }
 0x8f7   : > { %v2389_v45 = vpop.eup %2388 }
 0x8f8   : > { %v1680_v59 = vmul.f32 %v2389_v45, %v1658_v37  ;;  %vm1686_vm7 = vweird.f32 %v2389_v45 }
 0x8f9   : > { %vm1687_vm9 = vmor %vm1685_vm8, %vm1686_vm7 }
 0x8fa   : > { %v1681_v61 = vmul.f32 %v2389_v45, %v1680_v59 }
 0x8fc   : > { %v1682_v50 = vmul.f32 0.5, %v1681_v61 }
 0x8fe   : > { %v1683_v62 = vsub.f32 1.5, %v1682_v50 }
 0x900   : > { %v1684_v1 = vmul.f32 %v2389_v45, %v1683_v62 }
 0x902   : > { %v1688_v57 = vsel %vm1687_vm9, %v2389_v45, %v1684_v1 }
 0x903   : > { %v1691_v49 = vmul.f32 %v1688_v57, %v3044_v8  ;;  %v1776_v8 = vld [vmem:[%s2657_s26 + $0x10] sm:$0xff] }
 0x904   : > { %1807 = vmatpush.msrb.mxu1 %v1776_v8 }
 0x905   : > { %v1697_v2 = vmul.f32 %v2324_v29, %v1691_v49 }
 0x906   : > { %1808 = vmatpush.msrb.mxu1 %v1775_v9 }
 0x907   : > { %v1703_v63 = vadd.f32 %v2325_v33, %v1697_v2 }
 0x908   : > { %1809 = vmatpush.msrb.mxu1 %v1774_v10 }
 0x909   : > { %2177 = vmatmul.msk.f32.gmra.mxu0 %vm801_vm2, %v1703_v63 }
 0x945   : > { %v1738_v13 = vpop.f32.mrf.mxu0 }
 0x946   : > { %v1739_v14 = vadd.f32 %v2326_v11, %v1738_v13 }
 0x948   : > { %v1750_v16 = vmul.f32 0.044715, %v1739_v14  ;;  %v1747_v27 = vmul.f32 0.5, %v1739_v14 }
 0x94a   : > { %v1753_v18 = vmul.f32 %v1750_v16, %v1739_v14 }
 0x94c   : > { %v1756_v17 = vmul.f32 %v1753_v18, %v1739_v14 }
 0x94d   : > { %v1741_v12 = vpop.f32.mrf.mxu0 }
 0x94e   : > { %v1742_v19 = vadd.f32 %v2326_v11, %v1741_v12  ;;  %v1759_v20 = vadd.f32 %v1756_v17, %v1739_v14 }
 0x950   : > { %v1762_v21 = vmul.f32 0.7978846, %v1759_v20  ;;  %v1751_v22 = vmul.f32 0.044715, %v1742_v19  ;;  %v1748_v31 = vmul.f32 0.5, %v1742_v19 }
 0x952   : > { %2390 = vtanh.f32 %v1762_v21  ;;  %v1754_v15 = vmul.f32 %v1751_v22, %v1742_v19 }
 0x954   : > { %v1757_v23 = vmul.f32 %v1754_v15, %v1742_v19 }
 0x956   : > { %v1760_v24 = vadd.f32 %v1757_v23, %v1742_v19 }
 0x958   : > { %v2391_v25 = vpop.eup %2390  ;;  %v1763_v26 = vmul.f32 0.7978846, %v1760_v24 }
 0x959   : > { %v1768_v28 = vadd.f32 1.0, %v2391_v25 }
 0x95a   : > { %2392 = vtanh.f32 %v1763_v26 }
 0x95b   : > { %v1771_v29 = vmul.f32 %v1768_v28, %v1747_v27 }
 0x95d   : > { %1810 = vmatmul.f32.vlgmr.msrb.gmra.mxu1 %v1771_v29 }
 0x960   : > { %v2393_v30 = vpop.eup %2392 }
 0x961   : > { %v1769_v32 = vadd.f32 1.0, %v2393_v30 }
 0x963   : > { %v1772_v33 = vmul.f32 %v1769_v32, %v1748_v31 }
 0x965   : > { %1813 = vmatmul.f32.gmra.mxu1 %v1772_v33 }
 0x986   : > { %v1744_v35 = vpop.f32.mrf.mxu0 }
 0x987   : > { %v1745_v39 = vadd.f32 %v2326_v11, %v1744_v35 }
 0x989   : > { %v1752_v40 = vmul.f32 0.044715, %v1745_v39  ;;  %v1749_v51 = vmul.f32 0.5, %v1745_v39 }
 0x98b   : > { %v1755_v41 = vmul.f32 %v1752_v40, %v1745_v39 }
 0x98d   : > { %v1758_v42 = vmul.f32 %v1755_v41, %v1745_v39 }
 0x98f   : > { %v1761_v43 = vadd.f32 %v1758_v42, %v1745_v39 }
 0x991   : > { %v1764_v44 = vmul.f32 0.7978846, %v1761_v43 }
 0x993   : > { %2394 = vtanh.f32 %v1764_v44 }
 0x999   : > { %v2395_v47 = vpop.eup %2394 }
 0x99a   : > { %v1770_v52 = vadd.f32 1.0, %v2395_v47 }
 0x99c   : > { %v1773_v36 = vmul.f32 %v1770_v52, %v1749_v51 }
 0x99e   : > { %1816 = vmatmul.f32.gmra.mxu1 %v1773_v36 }
 0x9da   : > { %v1811_v54 = vpop.f32.mrf.mxu1 }
 0x9db   : > { %v1812_v55 = vadd.f32 %v2327_v53, %v1811_v54 }
 0x9dd   : > { %v1820_v58 = vadd.f32 %v1812_v55, %v3021_v48 }
 0x9df   : > { %1823 = vst.msk [vmem:[#allocation2] sm:$0xff] %vm801_vm2, %v1820_v58 }
 0x9e2   : > { %v1814_v37 = vpop.f32.mrf.mxu1 }
 0x9e3   : > { %v1815_v45 = vadd.f32 %v2327_v53, %v1814_v37 }
 0x9e5   : > { %v1821_v59 = vadd.f32 %v1815_v45, %v3026_v56 }
 0x9e7   : > { %1824 = vst.msk [vmem:[#allocation2 + $0x8] sm:$0xff] %vm801_vm2, %v1821_v59 }
 0xa1b   : > { %v1817_v61 = vpop.f32.mrf.mxu1 }
 0xa1c   : > { %v1818_v50 = vadd.f32 %v2327_v53, %v1817_v61  ;;  %1829 = sbr.rel (%p2178_p12) target bundleno = 2596 (0xa24), region = 88 }
 0xa1e   : > { %v1822_v62 = vadd.f32 %v1818_v50, %v3032_v0 }
 0xa20   : > { %1825 = vst.msk [vmem:[#allocation2 + $0x10] sm:$0xff] %vm801_vm2, %v1822_v62 }
 0xa21   : > { %1830 = vst.msk [vmem:[%s2663_s16] sm:$0xff] %vm801_vm2, %v1820_v58 }
 0xa22   : > { %1831 = vst.msk [vmem:[%s2663_s16 + $0x8] sm:$0xff] %vm801_vm2, %v1821_v59 }
 0xa23   : > { %1832 = vst.msk [vmem:[%s2663_s16 + $0x10] sm:$0xff] %vm801_vm2, %v1822_v62 }
 0xa24 PF: > { %p2179_p13 = scmp.ne.s32.totalorder %s2434_s20, 6 }
 0xa26   : > { %1836 = sbr.rel (%p2179_p13) target bundleno = 2606 (0xa2e), region = 92 }
 0xa2b   : > { %2180 = vst.msk [vmem:[%s2663_s16 + $0x18] sm:$0xff] %vm801_vm2, %v1820_v58 }
 0xa2c   : > { %2181 = vst.msk [vmem:[%s2663_s16 + $0x20] sm:$0xff] %vm801_vm2, %v1821_v59 }
 0xa2d   : > { %2182 = vst.msk [vmem:[%s2663_s16 + $0x28] sm:$0xff] %vm801_vm2, %v1822_v62 }
 0xa2e PF: > { %p2183_p0 = scmp.ne.s32.totalorder %s2434_s20, 9 }
 0xa30   : > { %1844 = sbr.rel (%p2183_p0) target bundleno = 2616 (0xa38), region = 96 }
 0xa35   : > { %2184 = vst.msk [vmem:[%s2663_s16 + $0x30] sm:$0xff] %vm801_vm2, %v1820_v58 }
 0xa36   : > { %2185 = vst.msk [vmem:[%s2663_s16 + $0x38] sm:$0xff] %vm801_vm2, %v1821_v59 }
 0xa37   : > { %2186 = vst.msk [vmem:[%s2663_s16 + $0x40] sm:$0xff] %vm801_vm2, %v1822_v62 }
 0xa38 PF: > { %1855 = sbr.rel (!%p2586_p6) target bundleno = 2634 (0xa4a), region = 100  ;;  %s3218_s23 = sld [smem:[#allocation5_spill]] (%p2586_p6)  ;;  %v1903_v48 = vld [vmem:[%s2663_s16] sm:$0xff] (%p2586_p6)  ;;  %v1905_v56 = vld [vmem:[%s2663_s16 + $0x8] sm:$0xff] (%p2586_p6)  ;;  %v1907_v0 = vld [vmem:[%s2663_s16 + $0x10] sm:$0xff] (%p2586_p6) }
 0xa39   : > { %s3219_s18 = sld [smem:[#allocation20_spill]] (%p2586_p6)  ;;  %v1909_v1 = vld [vmem:[%s2663_s16 + $0x18] sm:$0xff] (%p2586_p6)  ;;  %v1911_v57 = vld [vmem:[%s2663_s16 + $0x20] sm:$0xff] (%p2586_p6)  ;;  %v1913_v49 = vld [vmem:[%s2663_s16 + $0x28] sm:$0xff] (%p2586_p6) }
 0xa3d   : > { %v1917_v63 = vld [vmem:[%s2663_s16 + $0x38] sm:$0xff] }
 0xa3e   : > { %s2231_s20 = smul.u32 24, %s3218_s23  ;;  %v1919_v3 = vld [vmem:[%s2663_s16 + $0x40] sm:$0xff] }
 0xa3f   : > { %v1915_v2 = vld [vmem:[%s2663_s16 + $0x30] sm:$0xff] }
 0xa40   : > { %s1858_s21 = scalar_lea.vmem %s3219_s18, %s2231_s20 }
 0xa41   : > { %1904 = vst [vmem:[%s1858_s21] sm:$0xff] %v1903_v48 }
 0xa42   : > { %1906 = vst [vmem:[%s1858_s21 + $0x8] sm:$0xff] %v1905_v56 }
 0xa43   : > { %1908 = vst [vmem:[%s1858_s21 + $0x10] sm:$0xff] %v1907_v0 }
 0xa44   : > { %1910 = vst [vmem:[%s1858_s21 + $0x30] sm:$0xff] %v1909_v1 }
 0xa45   : > { %1912 = vst [vmem:[%s1858_s21 + $0x38] sm:$0xff] %v1911_v57 }
 0xa46   : > { %1914 = vst [vmem:[%s1858_s21 + $0x40] sm:$0xff] %v1913_v49 }
 0xa47   : > { %1916 = vst [vmem:[%s1858_s21 + $0x60] sm:$0xff] %v1915_v2 }
 0xa48   : > { %1918 = vst [vmem:[%s1858_s21 + $0x68] sm:$0xff] %v1917_v63 }
 0xa49   : > { %1920 = vst [vmem:[%s1858_s21 + $0x70] sm:$0xff] %v1919_v3 }
 0xa4a PF: > { %s3220_s2 = sld [smem:[#allocation8_spill]] }
 0xa4b   : > { %s3221_s18 = sld [smem:[#allocation4_spill]] }
 0xa4c   : > { %s3222_s19 = sld [smem:[#allocation12_spill]] }
 0xa4d   : > { %s3223_s20 = sld [smem:[#allocation6_spill]] }
 0xa4e   : > { %s3224_s21 = sld [smem:[#allocation7_spill]] }
 0xa4f   : > { %s3225_s22 = sld [smem:[#allocation9_spill]] }
 0xa50   : > { %s25_s24 = sadd.s32 1, %s3220_s2   ;;  %s3226_s23 = sld [smem:[#allocation11_spill]] }
 0xa51   : > { %p22_p1 = scmp.ge.s32.totalorder %s25_s24, 22  }
 0xa53   :  { %24 = sbr.rel (!%p22_p1) target bundleno = 11 (0xb), region = 202 }

// kernel: forward.3
= control target key start
LH: loop header
LB: loop body
LE: loop exit
PB: predicated region body
PF: predicated region fallthrough
CT: control target
= control target key end

     0   :  { %s2793_s28 = smov 0   ;;  %s2795_s29 = smov 0   ;;  %s3290_s0 = inlined_call_operand.vmem [shape: f32[3,2,24,32], index: 0, kind: input, shape index: {}]   ;;  %s3291_s1 = inlined_call_operand.vmem [shape: f32[2,1,16], index: 1, kind: input, shape index: {}]   ;;  %s3292_s2 = inlined_call_operand.vmem [shape: f32[16,16], index: 2, kind: input, shape index: {}]   ;;  %s3293_s3 = inlined_call_operand.vmem [shape: f32[1,16], index: 3, kind: input, shape index: {}]   ;;  %s3294_s4 = inlined_call_operand.vmem [shape: f32[16,16], index: 4, kind: input, shape index: {}]   ;;  %s3295_s5 = inlined_call_operand.vmem [shape: f32[1,16], index: 5, kind: input, shape index: {}]   ;;  %s3296_s6 = inlined_call_operand.vmem [shape: f32[3,32,16], index: 6, kind: input, shape index: {}]   ;;  %s3297_s7 = inlined_call_operand.vmem [shape: f32[3,1,16], index: 7, kind: input, shape index: {}]   ;;  %s3298_s8 = inlined_call_operand.vmem [shape: f32[3,16,48], index: 8, kind: input, shape index: {}]   ;;  %s3299_s9 = inlined_call_operand.vmem [shape: f32[3,1,48], index: 9, kind: input, shape index: {}]   ;;  %s3300_s10 = inlined_call_operand.vmem [shape: f32[3,16,16], index: 10, kind: input, shape index: {}]   ;;  %s3301_s11 = inlined_call_operand.vmem [shape: f32[3,1,16], index: 11, kind: input, shape index: {}]   ;;  %s3302_s12 = inlined_call_operand.vmem [shape: f32[3,1,16], index: 12, kind: input, shape index: {}]   ;;  %s3303_s13 = inlined_call_operand.vmem [shape: f32[3,1,16], index: 13, kind: input, shape index: {}]   ;;  %s3304_s14 = inlined_call_operand.vmem [shape: f32[3,16,32], index: 14, kind: input, shape index: {}]   ;;  %s3305_s15 = inlined_call_operand.vmem [shape: f32[3,1,32], index: 15, kind: input, shape index: {}]   ;;  %s3306_s16 = inlined_call_operand.vmem [shape: f32[3,32,16], index: 16, kind: input, shape index: {}]   ;;  %s3307_s17 = inlined_call_operand.vmem [shape: f32[3,1,16], index: 17, kind: input, shape index: {}]   ;;  %s3308_s18 = inlined_call_operand.vmem [shape: f32[3,1,16], index: 18, kind: input, shape index: {}]   ;;  %s3309_s19 = inlined_call_operand.vmem [shape: f32[3,1,16], index: 19, kind: input, shape index: {}]   ;;  %s3310_s20 = inlined_call_operand.vmem [shape: f32[16,64], index: 20, kind: input, shape index: {}]   ;;  %s3311_s21 = inlined_call_operand.vmem [shape: f32[1,64], index: 21, kind: input, shape index: {}]   ;;  %s3312_s22 = inlined_call_operand.vmem [shape: f32[2,16,64], index: 22, kind: output, shape index: {}]  }
   0x1   :  { %3320 = sst [smem:[#allocation9_spill]] %s3290_s0  ;;  %s2797_s30 = smov 0  }
   0x2   :  { %3321 = sst [smem:[#allocation10_spill]] %s3291_s1 }
   0x3   :  { %3322 = sst [smem:[#allocation11_spill]] %s3292_s2 }
   0x4   :  { %3323 = sst [smem:[#allocation12_spill]] %s3293_s3  ;;  %s2791_s3 = smov 0  }
   0x5   :  { %3324 = sst [smem:[#allocation13_spill]] %s3294_s4  ;;  %s2799_s4 = smov 0  }
   0x6   :  { %3325 = sst [smem:[#allocation14_spill]] %s3295_s5 }
   0x7   :  { %3326 = sst [smem:[#allocation15_spill]] %s3296_s6 }
   0x8   :  { %3327 = sst [smem:[#allocation16_spill]] %s3298_s8 }
   0x9   :  { %3328 = sst [smem:[#allocation17_spill]] %s3300_s10 }
   0xa   :  { %3329 = sst [smem:[#allocation18_spill]] %s3304_s14 }
   0xb   :  { %3330 = sst [smem:[#allocation19_spill]] %s3306_s16 }
   0xc   :  { %3331 = sst [smem:[#allocation20_spill]] %s3307_s17 }
   0xd   :  { %3332 = sst [smem:[#allocation21_spill]] %s3308_s18 }
   0xe   :  { %3333 = sst [smem:[#allocation22_spill]] %s3309_s19 }
   0xf   :  { %3334 = sst [smem:[#allocation23_spill]] %s3310_s20 }
  0x10   :  { %3335 = sst [smem:[#allocation24_spill]] %s3311_s21 }
  0x11   :  { %3336 = sst [smem:[#allocation25_spill]] %s3312_s22 }
  0x12 LB: > { %3337 = sst [smem:[#allocation3_spill]] %s2646_s3  ;;  %s41_s0 = sadd.s32 1, %s2654_s29  ;;  %s2662_s4 = sphi %s2799_s4, %s32_s4   ;;  %s2658_s30 = sphi %s2797_s30, %s3378_s30   ;;  %s2654_s29 = sphi %s2795_s29, %s3377_s29   ;;  %s2650_s28 = sphi %s2793_s28, %s3376_s28   ;;  %s2646_s3 = sphi %s2791_s3, %s3375_s3  }
  0x13   : > { %3338 = sst [smem:[#allocation4_spill]] %s2654_s29  ;;  %s44_s23 = sadd.s32 1, %s2658_s30 }
  0x14   : > { %3339 = sst [smem:[#allocation5_spill]] %s2658_s30  ;;  %p42_p0 = scmp.ge.s32.totalorder %s41_s0, 3 }
  0x15   : > { %3340 = sst [smem:[#allocation6_spill]] %s2662_s4  ;;  %p2372_p1 = scmp.ge.s32.totalorder %s2662_s4, 1 }
  0x16   : > { %p764_p2 = scmp.lt.s32.totalorder %s2662_s4, 7  ;;  %s3380_s0 = smov (%p42_p0, %s41_s0), 0 }
  0x17   : > { %3341 = sst [smem:[#allocation7_spill]] %s3380_s0  ;;  %s3382_s23 = smov (!%p42_p0, %s44_s23), %s2658_s30 }
  0x18   : > { %p765_p3 = pnand %p2372_p1, %p764_p2  ;;  %p46_p4 = scmp.ge.s32.totalorder %s3382_s23, 2 }
  0x19   : > { %p900_p5 = scmp.lt.s32.totalorder (!%p765_p3), %s2646_s3, 2  ;;  %s886_s1 = ssub.s32 (!%p765_p3), 2, %s2646_s3 }
  0x1a   : > { %s3384_s23 = smov (%p46_p4, %s3382_s23), 0  ;;  %768 = sbr.rel (%p765_p3) target bundleno = 2843 (0xb1b), region = 108 }
  0x1b   : > { %3342 = sst [smem:[#allocation8_spill]] %s3384_s23  ;;  %p887_p6 = scmp.lt.s32.totalorder (!%p765_p3), %s886_s1, 2 }
  0x1c   : > { %p889_p7 = scmp.lt.s32.totalorder (!%p765_p3), %s2650_s28, 1  ;;  %s3343_s2 = sld [smem:[#allocation15_spill]] (!%p765_p3) }
  0x1d   : > { %s3344_s8 = sld [smem:[#allocation16_spill]] (!%p765_p3) }
  0x1e   : > { %s3345_s10 = sld [smem:[#allocation17_spill]] (!%p765_p3) }
  0x1f   : > { %s2829_s5 = scalar_select %p900_p5, %s2646_s3, 2  ;;  %vm968_vm0 = vcmask 261120  }
  0x20   : > { %s3386_s1 = smov (!%p887_p6, %s886_s1), 2  ;;  %s3346_s14 = sld [smem:[#allocation18_spill]] }
  0x21   : > { %s2459_s24 = sshll.u32 %s2829_s5, 5  ;;  %s2460_s6 = sshll.u32 %s2829_s5, 4 }
  0x22   : > { %s904_s27 = scalar_lea.vmem %s3343_s2, %s2459_s24  ;;  %s3347_s16 = sld [smem:[#allocation19_spill]] }
  0x23   : > { %s2841_s30 = scalar_lea.vmem %s3344_s8, %s2460_s6  ;;  %v963_v0 = vld [vmem:[%s904_s27 + $0x18] sm:$0xff]  ;;  %v962_v1 = vld [vmem:[%s904_s27 + $0x10] sm:$0xff]  ;;  %v961_v2 = vld [vmem:[%s904_s27 + $0x8] sm:$0xff]  ;;  %s2479_s8 = smul.u32 6, %s3386_s1 }
  0x24   : > { %s2850_s22 = scalar_lea.vmem %s3345_s10, %s2460_s6  ;;  %2466 = vmatpush.msra.mxu2 %v963_v0  ;;  %990 = vmatpush.msra.mxu0 %v963_v0  ;;  %v960_v3 = vld [vmem:[%s904_s27] sm:$0xff]  ;;  %s3388_s28 = smov (!%p889_p7, %s2650_s28), 1 }
  0x25   : > { %2465 = vmatpush.msra.mxu1 %v963_v0  ;;  %s907_s27 = scalar_lea.vmem %s3297_s7, %s2829_s5  ;;  %s2478_s29 = smul.u32 3, %s3388_s28 }
  0x26   : > { %s2867_s10 = scalar_lea.vmem %s3346_s14, %s2460_s6  ;;  %2468 = vmatpush.msra.mxu2 %v962_v1  ;;  %991 = vmatpush.msra.mxu0 %v962_v1  ;;  %s3351_s4 = sld [smem:[#allocation10_spill]]  ;;  %v2532_v7 = vld [vmem:[%s907_s27] ss:$0 sm:$0xff] }
  0x27   : > { %2467 = vmatpush.msra.mxu1 %v962_v1  ;;  %s2464_s1 = sshll.u32 %s3388_s28, 4  ;;  %s893_s26 = sadd.s32 %s2479_s8, %s2478_s29 }
  0x28   : > { %s2876_s2 = scalar_lea.vmem %s3347_s16, %s2459_s24  ;;  %2470 = vmatpush.msra.mxu2 %v961_v2  ;;  %992 = vmatpush.msra.mxu0 %v961_v2  ;;  %s3352_s20 = sld [smem:[#allocation25_spill]] }
  0x29   : > { %2469 = vmatpush.msra.mxu1 %v961_v2  ;;  %s2373_s16 = sshll.u32 %s893_s26, 3  ;;  %s3353_s17 = sld [smem:[#allocation9_spill]] }
  0x2a   : > { %2472 = vmatpush.msra.mxu2 %v960_v3  ;;  %993 = vmatpush.msra.mxu0 %v960_v3 }
  0x2b   : > { %2471 = vmatpush.msra.mxu1 %v960_v3 }
  0x2c   : > { %s899_s25 = scalar_lea.vmem %s3351_s4, %s3388_s28  ;;  %s3354_s28 = sld [smem:[#allocation3_spill]] }
  0x2e   : > { %s2909_s14 = scalar_lea.vmem %s3352_s20, %s2464_s1 }
  0x2f   : > { %s895_s24 = scalar_lea.vmem %s3353_s17, %s2373_s16 }
  0x30   : > { %v959_v4 = vld [vmem:[%s895_s24 + $0x10] sm:$0xff]  ;;  %v957_v5 = vld [vmem:[%s895_s24] sm:$0xff]  ;;  %v958_v6 = vld [vmem:[%s895_s24 + $0x8] sm:$0xff] }
  0x31   : > { %2388 = vmatmul.msk.f32.vlgmr.msra.gmra.mxu2 %vm968_vm0, %v959_v4  ;;  %2386 = vmatmul.msk.f32.vlgmr.msra.gmra.mxu0 %vm968_vm0, %v957_v5 }
  0x32   : > { %2387 = vmatmul.msk.f32.vlgmr.msra.gmra.mxu1 %vm968_vm0, %v958_v6  ;;  %p2389_p8 = scmp.ne.s32.totalorder %s3354_s28, 0 }
  0x33   : > { %s3355_s18 = sld [smem:[#allocation11_spill]] (!%p2389_p8) }
  0x34   : > { %s3356_s8 = sld [smem:[#allocation13_spill]] (!%p2389_p8) }
  0x35   : > { %s3357_s6 = sld [smem:[#allocation12_spill]] (!%p2389_p8) }
  0x36   : > { %s3358_s26 = sld [smem:[#allocation14_spill]] (!%p2389_p8) }
  0xae   : > { %v995_v8 = vpop.f32.mrf.mxu0 }
  0xaf   : > { %v996_v9 = vadd.f32 %v2532_v7, %v995_v8  ;;  %v998_v10 = vpop.f32.mrf.mxu1 }
  0xb0   : > { %v999_v11 = vadd.f32 %v2532_v7, %v998_v10 }
  0xb1   : > { %1007 = sbr.rel (%p2389_p8) target bundleno = 323 (0x143), region = 112 }
  0xb4   : > { %v1001_v12 = vpop.f32.mrf.mxu2 }
  0xb5   : > { %v1002_v13 = vadd.f32 %v2532_v7, %v1001_v12 }
  0xb6   : > { %v1010_v14 = vld [vmem:[%s3355_s18 + $0x8] sm:$0xff]  ;;  %v1009_v15 = vld [vmem:[%s3355_s18] sm:$0xff]  ;;  %vm1012_vm1 = vcmask 130048  }
  0xb7   : > { %v1037_v16 = vld [vmem:[%s3356_s8 + $0x8] sm:$0xff]  ;;  %1030 = vmatpush.msra.mxu0 %v1010_v14  ;;  %v1008_v17 = vld [vmem:[%s899_s25] sm:$0x1] }
  0xb8   : > { %1053 = vmatpush.msra.mxu1 %v1037_v16  ;;  %v1036_v18 = vld [vmem:[%s3356_s8] sm:$0xff] }
  0xb9   : > { %1031 = vmatpush.msra.mxu0 %v1009_v15  ;;  %v1011_v19 = vld [vmem:[%s3357_s6] sm:$0x1] }
  0xba   : > { %1054 = vmatpush.msra.mxu1 %v1036_v18  ;;  %2390 = vmatmul.msk.f32.vlgmr.msra.gmra.mxu0 %vm1012_vm1, %v1008_v17  ;;  %v1038_v20 = vld [vmem:[%s3358_s26] sm:$0x1] }
  0xbb   : > { %2391 = vmatmul.msk.f32.vlgmr.msra.gmra.mxu1 %vm1012_vm1, %v1008_v17 }
 0x137   : > { %v1033_v21 = vpop.f32.mrf.mxu0 }
 0x138   : > { %v1056_v22 = vpop.f32.mrf.mxu1  ;;  %v1034_v23 = vadd.f32 %v1033_v21, %v1011_v19 }
 0x139   : > { %v1057_v24 = vadd.f32 %v1056_v22, %v1038_v20 }
 0x13a   : > { %v1059_v25 = vperm.slane %v1034_v23, 0 }
 0x13b   : > { %v1063_v26 = vperm.slane %v1057_v24, 0 }
 0x13c   : > { %v1060_v27 = vmul.f32 %v1059_v25, %v996_v9  ;;  %v1061_v28 = vmul.f32 %v1059_v25, %v999_v11  ;;  %v1062_v29 = vmul.f32 %v1059_v25, %v1002_v13 }
 0x13e   : > { %v1064_v30 = vadd.f32 %v1063_v26, %v1060_v27  ;;  %v1065_v31 = vadd.f32 %v1063_v26, %v1061_v28  ;;  %v1066_v32 = vadd.f32 %v1063_v26, %v1062_v29 }
 0x140   : > { %1067 = vst.msk [vmem:[#allocation2] sm:$0xff] %vm1012_vm1, %v1064_v30 }
 0x141   : > { %1068 = vst.msk [vmem:[#allocation2 + $0x8] sm:$0xff] %vm1012_vm1, %v1065_v31 }
 0x142   : > { %1069 = vst.msk [vmem:[#allocation2 + $0x10] sm:$0xff] %vm1012_vm1, %v1066_v32 }
 0x143 PF: > { %s3359_s25 = sld [smem:[#allocation3_spill]] }
 0x149   : > { %p2392_p9 = scmp.le.s32.totalorder %s3359_s25, 0 }
 0x14b   : > { %1073 = sbr.rel (%p2392_p9) target bundleno = 342 (0x156), region = 116 }
 0x150   : > { %v1074_v33 = vld [vmem:[#allocation2] sm:$0xff]  ;;  %vm1080_vm2 = vcmask 130048   ;;  %v1075_v34 = vld [vmem:[#allocation2 + $0x8] sm:$0xff]  ;;  %v1076_v35 = vld [vmem:[#allocation2 + $0x10] sm:$0xff] }
 0x151   : > { %v1077_v36 = vadd.f32 %v1074_v33, %v996_v9  ;;  %v1078_v37 = vadd.f32 %v1075_v34, %v999_v11  ;;  %v1079_v38 = vadd.f32 %v1076_v35, %v1002_v13 }
 0x153   : > { %1081 = vst.msk [vmem:[#allocation2] sm:$0xff] %vm1080_vm2, %v1077_v36 }
 0x154   : > { %1082 = vst.msk [vmem:[#allocation2 + $0x8] sm:$0xff] %vm1080_vm2, %v1078_v37 }
 0x155   : > { %1083 = vst.msk [vmem:[#allocation2 + $0x10] sm:$0xff] %vm1080_vm2, %v1079_v38 }
 0x156 PF: > { %v1088_v39 = vld [vmem:[%s2841_s30 + $0x8] sm:$0xff]  ;;  %v1087_v40 = vld [vmem:[%s2841_s30] sm:$0xff]  ;;  %vm1096_vm3 = vcmask 130048   ;;  %s3360_s28 = scalar_lea.vmem %s3299_s9, %s2829_s5  ;;  %s2664_s16 = smov 112   ;;  %vm1144_vm4 = vcmask 31744   ;;  %v1132_v54 = vlaneseq  ;;  %vm1189_vm6 = vcmask 195584  }
 0x157   : > { %1120 = vmatpush.msra.mxu0 %v1088_v39  ;;  %v2553_v44 = vld [vmem:[%s3360_s28] ss:$0 sm:$0xff]  ;;  %s2665_s17 = smov 96   ;;  %s2666_s19 = smov 108   ;;  %vm1411_vm7 = vcmask 1043456  }
 0x158   : > { %v2982_v55 = vand.u32 127, %v1132_v54  ;;  %s2667_s3 = smov 124   ;;  %s2668_s0 = smov 104   ;;  %v1090_v24 = vld [vmem:[%s2850_s22] sm:$0xff] }
 0x159   : > { %1121 = vmatpush.msra.mxu0 %v1087_v40  ;;  %s2669_s20 = smov 120   ;;  %s2670_s23 = smov 116   ;;  %v1401_v25 = vrot.slane %v1090_v24, 4 }
 0x15a   : > { %v2944_v41 = vld [vmem:[#allocation2] sm:$0xff]  ;;  %vm1134_vm5 = vcmp.lt.s32.totalorder %v2982_v55, 17  ;;  %s2671_s27 = smov 100   ;;  %s2672_s29 = smov 92  }
 0x15b   : > { %2393 = vmatmul.msk.f32.vlgmr.msra.gmra.mxu0 %vm1096_vm3, %v2944_v41  ;;  %v2948_v42 = vld [vmem:[#allocation2 + $0x8] sm:$0xff]  ;;  %s2673_s21 = smov 88   ;;  %s2674_s6 = smov 84  }
 0x15c   : > { %v2952_v43 = vld [vmem:[#allocation2 + $0x10] sm:$0xff]  ;;  %s3361_s1 = scalar_lea.vmem %s3301_s11, %s2829_s5  ;;  %s3363_s28 = scalar_lea.vmem %s3303_s13, %s2829_s5 }
 0x15d   : > { %s3369_s4 = sld [smem:[#allocation22_spill]] }
 0x163   : > { %2394 = vmatmul.msk.f32.gmra.mxu0 %vm1096_vm3, %v2948_v42 }
 0x16b   : > { %2395 = vmatmul.msk.f32.gmra.mxu0 %vm1096_vm3, %v2952_v43 }
 0x1d8   : > { %v1123_v45 = vpop.f32.mrf.mxu0 }
 0x1d9   : > { %v2961_v46 = vadd.f32 %v2553_v44, %v1123_v45 }
 0x1db   : > { %1138 = vrot.lane.b32.xlu1 %v2961_v46, %s2664_s16 }
 0x1e0   : > { %v1126_v47 = vpop.f32.mrf.mxu0 }
 0x1e1   : > { %v2967_v50 = vadd.f32 %v2553_v44, %v1126_v47 }
 0x1e8   : > { %v1129_v48 = vpop.f32.mrf.mxu0 }
 0x1e9   : > { %v2964_v49 = vadd.f32 %v2553_v44, %v1129_v48 }
 0x1eb   : > { %1142 = vrot.lane.b32.xlu0 %v2964_v49, %s2664_s16  ;;  %v2999_v4 = vpack.i.bf16 %v2967_v50, %v2964_v49 }
 0x1f3   : > { %1140 = vrot.lane.b32.xlu0 %v2967_v50, %s2664_s16 }
 0x24d   : > { %v1139_v53 = vpop.permute.xlu1 %1138 }
 0x25d   : > { %v1143_v51 = vpop.permute.xlu0 %1142 }
 0x25e   : > { %2396 = vmatpush.xpose.msk.msra.mxu1 %vm1144_vm4, %v1143_v51  ;;  %2473 = vmatpush.xpose.msk.msra.mxu3 %vm1144_vm4, %v1143_v51 }
 0x265   : > { %v1141_v52 = vpop.permute.xlu0 %1140 }
 0x266   : > { %2397 = vmatpush.xpose.msk.msra.mxu1 %vm1144_vm4, %v1141_v52  ;;  %2474 = vmatpush.xpose.msk.msra.mxu3 %vm1144_vm4, %v1141_v52 }
 0x26a   : > { %2398 = vmatpush.xpose.msk.msra.mxu1 %vm1144_vm4, %v1139_v53  ;;  %2475 = vmatpush.xpose.msk.msra.mxu3 %vm1144_vm4, %v1139_v53 }
 0x26d   : > { %2399 = vmatmul.msk.f32.vlgmr.msra.gmra.mxu1 %vm1144_vm4, %v2961_v46  ;;  %2400 = vmatmul.msk.f32.vlgmr.msra.gmra.mxu3 %vm1144_vm4, %v2967_v50 }
 0x26e   : > { %2418 = vmatpush.msk.msrb.mxu1 %vm1411_vm7, %v1090_v24 }
 0x275   : > { %2401 = vmatmul.msk.f32.gmra.mxu3 %vm1144_vm4, %v2964_v49 }
 0x2ea   : > { %v1174_v56 = vpop.f32.mrf.mxu1 }
 0x2eb   : > { %v1183_v57 = vmul.f32 0.5, %v1174_v56 }
 0x2ed   : > { %v1186_v58 = vsel %vm1134_vm5, %v1183_v57, -1e+30 }
 0x2ee   : > { %v1190_v59 = vsel %vm1189_vm6, %v1186_v58, -inf }
 0x2ef   : > { %1191 = vmax.xlane.f32.xlu1 %v1190_v59 }
 0x2f0   : > { %v1177_v60 = vpop.f32.mrf.mxu3 }
 0x2f1   : > { %v1184_v61 = vmul.f32 0.5, %v1177_v60 }
 0x2f3   : > { %v1187_v62 = vsel %vm1134_vm5, %v1184_v61, -1e+30 }
 0x2f4   : > { %v1193_v63 = vsel %vm1189_vm6, %v1187_v62, -inf }
 0x2f5   : > { %1194 = vmax.xlane.f32.xlu2 %v1193_v63 }
 0x2f8   : > { %v1180_v0 = vpop.f32.mrf.mxu3 }
 0x2f9   : > { %v1185_v1 = vmul.f32 0.5, %v1180_v0 }
 0x2fb   : > { %v1188_v2 = vsel %vm1134_vm5, %v1185_v1, -1e+30 }
 0x2fc   : > { %v1196_v3 = vsel %vm1189_vm6, %v1188_v2, -inf }
 0x2fd   : > { %1197 = vmax.xlane.f32.xlu2 %v1196_v3 }
 0x308   : > { %1223 = vrot.lane.b32.xlu1 %v2961_v46, %s2665_s17 }
 0x310   : > { %1275 = vrot.lane.b32.xlu1 %v2967_v50, %s2666_s19 }
 0x315   : > { %2534 = vrot.lane.b32.xlu2 %v2999_v4, %s2665_s17 }
 0x318   : > { %1267 = vrot.lane.b32.xlu1 %v2961_v46, %s2667_s3 }
 0x320   : > { %1487 = vrot.lane.b32.xlu1 %v2964_v49, %s2668_s0 }
 0x328   : > { %1485 = vrot.lane.b32.xlu1 %v2967_v50, %s2668_s0 }
 0x330   : > { %1477 = vrot.lane.b32.xlu1 %v2961_v46, %s2669_s20 }
 0x338   : > { %1479 = vrot.lane.b32.xlu1 %v2967_v50, %s2669_s20 }
 0x340   : > { %1653 = vrot.lane.b32.xlu1 %v2967_v50, %s2670_s23 }
 0x362   : > { %v1192_v5 = vpop.xlane.xlu1 %1191 }
 0x363   : > { %v1199_v6 = vsub.f32 %v1186_v58, %v1192_v5 }
 0x365   : > { %v1202_v7 = vmul.f32 1.442695, %v1199_v6 }
 0x367   : > { %2561 = vpow2.f32 %v1202_v7 }
 0x368   : > { %v1195_v8 = vpop.xlane.xlu2 %1194 }
 0x369   : > { %v1200_v9 = vsub.f32 %v1187_v62, %v1195_v8 }
 0x36b   : > { %v1204_v10 = vmul.f32 1.442695, %v1200_v9 }
 0x36d   : > { %v2562_v11 = vpop.eup %2561  ;;  %2563 = vpow2.f32 %v1204_v10 }
 0x36e   : > { %v1208_v12 = vsel %vm1189_vm6, %v2562_v11, 0.0 }
 0x36f   : > { %1209 = vadd.xlane.f32.xlu0 %v1208_v12 }
 0x370   : > { %v1198_v13 = vpop.xlane.xlu2 %1197 }
 0x371   : > { %v1201_v14 = vsub.f32 %v1188_v2, %v1198_v13 }
 0x373   : > { %v2564_v15 = vpop.eup %2563  ;;  %v1206_v16 = vmul.f32 1.442695, %v1201_v14 }
 0x374   : > { %v1211_v17 = vsel %vm1189_vm6, %v2564_v15, 0.0 }
 0x375   : > { %2565 = vpow2.f32 %v1206_v16  ;;  %1212 = vadd.xlane.f32.xlu2 %v1211_v17 }
 0x378   : > { %v2535_v18 = vpop.permute.xlu2 %2534 }
 0x379   : > { %v2536_v19 = vunpack.i.l.bf16 %v2535_v18  ;;  %v2537_v21 = vunpack.i.h.bf16 %v2535_v18 }
 0x37a   : > { %v1224_v23 = vpop.permute.xlu1 %1223 }
 0x37b   : > { %v2566_v20 = vpop.eup %2565  ;;  %1254 = vmatpush.msra.mxu2 %v2536_v19 }
 0x37c   : > { %v1214_v22 = vsel %vm1189_vm6, %v2566_v20, 0.0 }
 0x37d   : > { %1255 = vmatpush.msra.mxu2 %v2537_v21  ;;  %1215 = vadd.xlane.f32.xlu0 %v1214_v22 }
 0x37f   : > { %1256 = vmatpush.msra.mxu2 %v1224_v23 }
 0x381   : > { %2414 = vmatpush.msk.msrb.mxu2 %vm1411_vm7, %v1401_v25 }
 0x382   : > { %v1276_v33 = vpop.permute.xlu1 %1275 }
 0x38a   : > { %v1268_v38 = vpop.permute.xlu1 %1267 }
 0x38d   : > { %1273 = vrot.lane.b32.xlu2 %v2961_v46, %s2666_s19 }
 0x391   : > { %1277 = vrot.lane.b32.xlu0 %v2964_v49, %s2666_s19  ;;  %s3364_s19 = scalar_lea.vmem %s3305_s15, %s2829_s5 }
 0x392   : > { %v1488_v40 = vpop.permute.xlu1 %1487 }
 0x395   : > { %1661 = vrot.lane.b32.xlu2 %v2964_v49, %s2671_s27 }
 0x399   : > { %1269 = vrot.lane.b32.xlu0 %v2967_v50, %s2667_s3 }
 0x39a   : > { %v1486_v45 = vpop.permute.xlu1 %1485 }
 0x39d   : > { %1657 = vrot.lane.b32.xlu2 %v2961_v46, %s2671_s27 }
 0x3a1   : > { %1271 = vrot.lane.b32.xlu0 %v2964_v49, %s2667_s3 }
 0x3a5   : > { %1481 = vrot.lane.b32.xlu2 %v2964_v49, %s2669_s20 }
 0x3a9   : > { %1483 = vrot.lane.b32.xlu0 %v2961_v46, %s2668_s0  ;;  %s3365_s0 = sld [smem:[#allocation20_spill]] }
 0x3af   : > { %s3366_s20 = scalar_lea.vmem %s3365_s0, %s2829_s5 }
 0x3b1   : > { %1659 = vrot.lane.b32.xlu0 %v2967_v50, %s2671_s27  ;;  %v1478_v50 = vpop.permute.xlu1 %1477 }
 0x3b9   : > { %1651 = vrot.lane.b32.xlu0 %v2961_v46, %s2670_s23  ;;  %v1480_v52 = vpop.permute.xlu1 %1479 }
 0x3c1   : > { %1655 = vrot.lane.b32.xlu0 %v2964_v49, %s2670_s23  ;;  %v1654_v59 = vpop.permute.xlu1 %1653 }
 0x3e2   : > { %v1210_v26 = vpop.xlane.xlu0 %1209 }
 0x3e3   : > { %2567 = vrcp.f32 %v1210_v26 }
 0x3e8   : > { %v1213_v27 = vpop.xlane.xlu2 %1212 }
 0x3e9   : > { %v2568_v28 = vpop.eup %2567  ;;  %2569 = vrcp.f32 %v1213_v27 }
 0x3ea   : > { %v1220_v29 = vmul.f32 %v2568_v28, %v2562_v11 }
 0x3ec   : > { %2402 = vmatmul.msk.f32.vlgmr.msra.gmra.mxu2 %vm1189_vm6, %v1220_v29 }
 0x3ef   : > { %v2570_v30 = vpop.eup %2569 }
 0x3f0   : > { %v1274_v31 = vpop.permute.xlu2 %1273  ;;  %v1216_v32 = vpop.xlane.xlu0 %1215  ;;  %v1221_v34 = vmul.f32 %v2570_v30, %v2564_v15 }
 0x3f1   : > { %2571 = vrcp.f32 %v1216_v32 }
 0x3f4   : > { %2403 = vmatmul.msk.f32.gmra.mxu2 %vm1189_vm6, %v1221_v34 }
 0x3f7   : > { %v2572_v35 = vpop.eup %2571 }
 0x3f8   : > { %v1662_v36 = vpop.permute.xlu2 %1661  ;;  %v1222_v37 = vmul.f32 %v2572_v35, %v2566_v20 }
 0x3f9   : > { %2435 = vmatpush.xpose.msk.msra.mxu1 %vm1144_vm4, %v1662_v36 }
 0x3fc   : > { %2404 = vmatmul.msk.f32.gmra.mxu2 %vm1189_vm6, %v1222_v37 }
 0x400   : > { %v1658_v51 = vpop.permute.xlu2 %1657 }
 0x403   : > { %v1278_v39 = vpop.permute.xlu0 %1277 }
 0x404   : > { %2405 = vmatpush.xpose.msk.msrb.mxu3 %vm1144_vm4, %v1278_v39 }
 0x408   : > { %2406 = vmatpush.xpose.msk.msrb.mxu3 %vm1144_vm4, %v1276_v33  ;;  %v1482_v53 = vpop.permute.xlu2 %1481 }
 0x40b   : > { %v1270_v44 = vpop.permute.xlu0 %1269 }
 0x40c   : > { %2407 = vmatpush.xpose.msk.msrb.mxu3 %vm1144_vm4, %v1274_v31 }
 0x40f   : > { %2408 = vmatmul.msk.f32.vlgmr.msrb.gmra.mxu3 %vm1144_vm4, %v1268_v38 }
 0x410   : > { %2422 = vmatpush.xpose.msk.msra.mxu3 %vm1144_vm4, %v1488_v40 }
 0x413   : > { %v1272_v47 = vpop.permute.xlu0 %1271 }
 0x414   : > { %2423 = vmatpush.xpose.msk.msra.mxu3 %vm1144_vm4, %v1486_v45 }
 0x417   : > { %2409 = vmatmul.msk.f32.gmra.mxu3 %vm1144_vm4, %v1270_v44 }
 0x41b   : > { %v1484_v48 = vpop.permute.xlu0 %1483 }
 0x41c   : > { %2424 = vmatpush.xpose.msk.msra.mxu3 %vm1144_vm4, %v1484_v48 }
 0x41f   : > { %2410 = vmatmul.msk.f32.gmra.mxu3 %vm1144_vm4, %v1272_v47 }
 0x423   : > { %v1660_v49 = vpop.permute.xlu0 %1659 }
 0x424   : > { %2436 = vmatpush.xpose.msk.msra.mxu1 %vm1144_vm4, %v1660_v49 }
 0x427   : > { %2425 = vmatmul.msk.f32.vlgmr.msra.gmra.mxu3 %vm1144_vm4, %v1478_v50 }
 0x428   : > { %2437 = vmatpush.xpose.msk.msra.mxu1 %vm1144_vm4, %v1658_v51 }
 0x42b   : > { %v1652_v58 = vpop.permute.xlu0 %1651 }
 0x42f   : > { %2426 = vmatmul.msk.f32.gmra.mxu3 %vm1144_vm4, %v1480_v52 }
 0x433   : > { %v1656_v0 = vpop.permute.xlu0 %1655 }
 0x437   : > { %2427 = vmatmul.msk.f32.gmra.mxu3 %vm1144_vm4, %v1482_v53 }
 0x46f   : > { %v1258_v54 = vpop.f32.mrf.mxu2 }
 0x470   : > { %2419 = vmatmul.msk.f32.vlgmr.msrb.gmra.mxu1 %vm1144_vm4, %v1258_v54 }
 0x477   : > { %v1261_v56 = vpop.f32.mrf.mxu2 }
 0x478   : > { %2420 = vmatmul.msk.f32.gmra.mxu1 %vm1144_vm4, %v1261_v56 }
 0x47f   : > { %v1264_v57 = vpop.f32.mrf.mxu2 }
 0x480   : > { %2421 = vmatmul.msk.f32.gmra.mxu1 %vm1144_vm4, %v1264_v57 }
 0x488   : > { %2438 = vmatmul.msk.f32.vlgmr.msra.gmra.mxu1 %vm1144_vm4, %v1652_v58 }
 0x490   : > { %2439 = vmatmul.msk.f32.gmra.mxu1 %vm1144_vm4, %v1654_v59 }
 0x492   : > { %v1308_v60 = vpop.f32.mrf.mxu3 }
 0x493   : > { %v1317_v61 = vmul.f32 0.5, %v1308_v60 }
 0x495   : > { %v1320_v62 = vsel %vm1134_vm5, %v1317_v61, -1e+30 }
 0x496   : > { %v1323_v63 = vsel %vm1189_vm6, %v1320_v62, -inf }
 0x497   : > { %1324 = vmax.xlane.f32.xlu2 %v1323_v63 }
 0x498   : > { %2440 = vmatmul.msk.f32.gmra.mxu1 %vm1144_vm4, %v1656_v0 }
 0x49a   : > { %v1311_v1 = vpop.f32.mrf.mxu3 }
 0x49b   : > { %v1318_v2 = vmul.f32 0.5, %v1311_v1 }
 0x49d   : > { %v1321_v3 = vsel %vm1134_vm5, %v1318_v2, -1e+30 }
 0x49e   : > { %v1326_v5 = vsel %vm1189_vm6, %v1321_v3, -inf }
 0x49f   : > { %1327 = vmax.xlane.f32.xlu1 %v1326_v5 }
 0x4a2   : > { %v1314_v6 = vpop.f32.mrf.mxu3 }
 0x4a3   : > { %v1319_v7 = vmul.f32 0.5, %v1314_v6 }
 0x4a5   : > { %v1322_v8 = vsel %vm1134_vm5, %v1319_v7, -1e+30 }
 0x4a6   : > { %v1329_v9 = vsel %vm1189_vm6, %v1322_v8, -inf }
 0x4a7   : > { %1330 = vmax.xlane.f32.xlu0 %v1329_v9 }
 0x4aa   : > { %v1518_v10 = vpop.f32.mrf.mxu3 }
 0x4ab   : > { %v1527_v11 = vmul.f32 0.5, %v1518_v10 }
 0x4ad   : > { %v1530_v12 = vsel %vm1134_vm5, %v1527_v11, -1e+30 }
 0x4ae   : > { %v1533_v13 = vsel %vm1189_vm6, %v1530_v12, -inf }
 0x4af   : > { %1534 = vmax.xlane.f32.xlu2 %v1533_v13 }
 0x4b2   : > { %v1521_v14 = vpop.f32.mrf.mxu3 }
 0x4b3   : > { %v1528_v15 = vmul.f32 0.5, %v1521_v14 }
 0x4b5   : > { %v3077_v16 = vsel %vm1134_vm5, %v1528_v15, -1e+30 }
 0x4b6   : > { %v1536_v17 = vsel %vm1189_vm6, %v3077_v16, -inf }
 0x4b7   : > { %1537 = vmax.xlane.f32.xlu0 %v1536_v17 }
 0x4ba   : > { %v1524_v18 = vpop.f32.mrf.mxu3 }
 0x4bb   : > { %v1529_v19 = vmul.f32 0.5, %v1524_v18 }
 0x4bd   : > { %v3083_v20 = vsel %vm1134_vm5, %v1529_v19, -1e+30 }
 0x4be   : > { %v1539_v21 = vsel %vm1189_vm6, %v3083_v20, -inf }
 0x4bf   : > { %1540 = vmax.xlane.f32.xlu1 %v1539_v21 }
 0x4ed   : > { %v3087_v22 = vpop.f32.mrf.mxu1 }
 0x4f5   : > { %v3089_v23 = vpop.f32.mrf.mxu1 }
 0x4fd   : > { %v3091_v24 = vpop.f32.mrf.mxu1 }
 0x505   : > { %v1692_v25 = vpop.f32.mrf.mxu1 }
 0x506   : > { %v1701_v26 = vmul.f32 0.5, %v1692_v25 }
 0x508   : > { %v1704_v27 = vsel %vm1134_vm5, %v1701_v26, -1e+30 }
 0x509   : > { %v1707_v28 = vsel %vm1189_vm6, %v1704_v27, -inf }
 0x50a   : > { %v1325_v29 = vpop.xlane.xlu2 %1324  ;;  %1708 = vmax.xlane.f32.xlu1 %v1707_v28 }
 0x50b   : > { %v1332_v30 = vsub.f32 %v1320_v62, %v1325_v29 }
 0x50d   : > { %v1335_v31 = vmul.f32 1.442695, %v1332_v30  ;;  %v1695_v53 = vpop.f32.mrf.mxu1 }
 0x50e   : > { %v1702_v54 = vmul.f32 0.5, %v1695_v53 }
 0x50f   : > { %2573 = vpow2.f32 %v1335_v31 }
 0x510   : > { %v3117_v56 = vsel %vm1134_vm5, %v1702_v54, -1e+30 }
 0x511   : > { %v1710_v57 = vsel %vm1189_vm6, %v3117_v56, -inf }
 0x512   : > { %v1328_v32 = vpop.xlane.xlu1 %1327 }
 0x513   : > { %v1333_v33 = vsub.f32 %v1321_v3, %v1328_v32 }
 0x515   : > { %v3096_v34 = vpop.eup %2573  ;;  %v1337_v35 = vmul.f32 1.442695, %v1333_v33  ;;  %v1698_v58 = vpop.f32.mrf.mxu1 }
 0x516   : > { %v1341_v36 = vsel %vm1189_vm6, %v3096_v34, 0.0  ;;  %v1703_v59 = vmul.f32 0.5, %v1698_v58 }
 0x517   : > { %2575 = vpow2.f32 %v1337_v35  ;;  %1342 = vadd.xlane.f32.xlu2 %v1341_v36 }
 0x518   : > { %v3123_v60 = vsel %vm1134_vm5, %v1703_v59, -1e+30 }
 0x519   : > { %v1713_v61 = vsel %vm1189_vm6, %v3123_v60, -inf }
 0x51a   : > { %v1331_v37 = vpop.xlane.xlu0 %1330 }
 0x51b   : > { %v1334_v38 = vsub.f32 %v1322_v8, %v1331_v37 }
 0x51d   : > { %v3100_v39 = vpop.eup %2575  ;;  %v1339_v40 = vmul.f32 1.442695, %v1334_v38 }
 0x51e   : > { %v1344_v44 = vsel %vm1189_vm6, %v3100_v39, 0.0 }
 0x51f   : > { %2577 = vpow2.f32 %v1339_v40  ;;  %1345 = vadd.xlane.f32.xlu0 %v1344_v44 }
 0x522   : > { %v1535_v45 = vpop.xlane.xlu2 %1534 }
 0x523   : > { %v1542_v47 = vsub.f32 %v1530_v12, %v1535_v45  ;;  %2539 = vrot.lane.b32.xlu1 %v2999_v4, %s2672_s29 }
 0x525   : > { %v3105_v48 = vpop.eup %2577  ;;  %v1545_v49 = vmul.f32 1.442695, %v1542_v47 }
 0x526   : > { %v1347_v50 = vsel %vm1189_vm6, %v3105_v48, 0.0 }
 0x527   : > { %2579 = vpow2.f32 %v1545_v49  ;;  %1348 = vadd.xlane.f32.xlu0 %v1347_v50 }
 0x52a   : > { %v1538_v2 = vpop.xlane.xlu0 %1537 }
 0x52b   : > { %v1543_v55 = vsub.f32 %v3077_v16, %v1538_v2  ;;  %v1091_v2 = vld [vmem:[%s2850_s22 + $0x8] sm:$0xff] }
 0x52c   : > { %2431 = vmatpush.msk.msra.mxu2 %vm1411_vm7, %v1091_v2 }
 0x52d   : > { %v3109_v51 = vpop.eup %2579  ;;  %v1547_v6 = vmul.f32 1.442695, %v1543_v55 }
 0x52e   : > { %v1551_v52 = vsel %vm1189_vm6, %v3109_v51, 0.0 }
 0x52f   : > { %1356 = vrot.lane.b32.xlu2 %v2961_v46, %s2672_s29  ;;  %1552 = vadd.xlane.f32.xlu0 %v1551_v52  ;;  %s3367_s29 = sld [smem:[#allocation21_spill]] }
 0x532   : > { %v1541_v62 = vpop.xlane.xlu1 %1540 }
 0x543   : > { %2544 = vrot.lane.b32.xlu0 %v2999_v4, %s2673_s21 }
 0x558   : > { %1711 = vmax.xlane.f32.xlu2 %v1710_v57 }
 0x56d   : > { %1714 = vmax.xlane.f32.xlu0 %v1713_v61 }
 0x570   : > { %2549 = vrot.lane.b32.xlu2 %v2999_v4, %s2674_s6  ;;  %v1544_v4 = vsub.f32 %v3083_v20, %v1541_v62 }
 0x572   : > { %v1549_v8 = vmul.f32 1.442695, %v1544_v4 }
 0x57d   : > { %v1709_v63 = vpop.xlane.xlu1 %1708 }
 0x57e   : > { %v1716_v0 = vsub.f32 %v1704_v27, %v1709_v63 }
 0x580   : > { %v1719_v1 = vmul.f32 1.442695, %v1716_v0 }
 0x581   : > { %1566 = vrot.lane.b32.xlu0 %v2961_v46, %s2673_s21  ;;  %s3368_s21 = scalar_lea.vmem %s3367_s29, %s2829_s5 }
 0x582   : > { %2581 = vpow2.f32 %v1719_v1 }
 0x583   : > { %2583 = vpow2.f32 %v1547_v6 }
 0x588   : > { %v3131_v3 = vpop.eup %2581 }
 0x589   : > { %v1725_v5 = vsel %vm1189_vm6, %v3131_v3, 0.0  ;;  %v3136_v9 = vpop.eup %2583 }
 0x58a   : > { %1726 = vadd.xlane.f32.xlu1 %v1725_v5  ;;  %v1343_v7 = vpop.xlane.xlu2 %1342  ;;  %v1554_v14 = vsel %vm1189_vm6, %v3136_v9, 0.0 }
 0x58b   : > { %2585 = vrcp.f32 %v1343_v7 }
 0x58c   : > { %2587 = vpow2.f32 %v1549_v8 }
 0x591   : > { %v2586_v13 = vpop.eup %2585 }
 0x592   : > { %v1346_v10 = vpop.xlane.xlu0 %1345  ;;  %v1357_v16 = vpop.permute.xlu2 %1356  ;;  %v1353_v17 = vmul.f32 %v2586_v13, %v3096_v34 }
 0x593   : > { %2589 = vrcp.f32 %v1346_v10  ;;  %v2588_v18 = vpop.eup %2587 }
 0x594   : > { %v1557_v21 = vsel %vm1189_vm6, %v2588_v18, 0.0 }
 0x595   : > { %v2540_v11 = vpop.permute.xlu1 %2539 }
 0x596   : > { %v2541_v12 = vunpack.i.l.bf16 %v2540_v11  ;;  %v2542_v15 = vunpack.i.h.bf16 %v2540_v11 }
 0x598   : > { %1387 = vmatpush.msrb.mxu0 %v2541_v12 }
 0x599   : > { %1555 = vadd.xlane.f32.xlu2 %v1554_v14  ;;  %v2590_v20 = vpop.eup %2589 }
 0x59a   : > { %1388 = vmatpush.msrb.mxu0 %v2542_v15  ;;  %v1349_v19 = vpop.xlane.xlu0 %1348  ;;  %v1354_v25 = vmul.f32 %v2590_v20, %v3100_v39  ;;  %v2554_v20 = vld [vmem:[%s3361_s1] ss:$0 sm:$0xff]  ;;  %s3370_s1 = scalar_lea.vmem %s3369_s4, %s2829_s5 }
 0x59b   : > { %2591 = vrcp.f32 %v1349_v19 }
 0x59c   : > { %1389 = vmatpush.msrb.mxu0 %v1357_v16 }
 0x59d   : > { %2411 = vmatmul.msk.f32.vlgmr.msrb.gmra.mxu0 %vm1189_vm6, %v1353_v17 }
 0x5a1   : > { %1558 = vadd.xlane.f32.xlu2 %v1557_v21  ;;  %v2592_v26 = vpop.eup %2591 }
 0x5a2   : > { %v1355_v27 = vmul.f32 %v2592_v26, %v3105_v48  ;;  %v1553_v28 = vpop.xlane.xlu0 %1552 }
 0x5a3   : > { %1740 = vrot.lane.b32.xlu1 %v2961_v46, %s2674_s6 }
 0x5a5   : > { %2412 = vmatmul.msk.f32.gmra.mxu0 %vm1189_vm6, %v1354_v25 }
 0x5ad   : > { %2413 = vmatmul.msk.f32.gmra.mxu0 %vm1189_vm6, %v1355_v27 }
 0x5b5   : > { %v2545_v29 = vpop.permute.xlu0 %2544 }
 0x5b6   : > { %v2546_v30 = vunpack.i.l.bf16 %v2545_v29  ;;  %v2547_v31 = vunpack.i.h.bf16 %v2545_v29 }
 0x5b8   : > { %1597 = vmatpush.msra.mxu0 %v2546_v30 }
 0x5ba   : > { %1598 = vmatpush.msra.mxu0 %v2547_v31 }
 0x5cb   : > { %v1712_v32 = vpop.xlane.xlu2 %1711 }
 0x5cc   : > { %v1717_v33 = vsub.f32 %v3117_v56, %v1712_v32 }
 0x5ce   : > { %v1721_v34 = vmul.f32 1.442695, %v1717_v33 }
 0x5d0   : > { %2593 = vpow2.f32 %v1721_v34 }
 0x5d3   : > { %v2550_v46 = vpop.permute.xlu2 %2549 }
 0x5d4   : > { %v2551_v35 = vunpack.i.l.bf16 %v2550_v46  ;;  %v2552_v37 = vunpack.i.h.bf16 %v2550_v46 }
 0x5d6   : > { %v2594_v36 = vpop.eup %2593  ;;  %1771 = vmatpush.msrb.mxu3 %v2551_v35 }
 0x5d7   : > { %v1728_v38 = vsel %vm1189_vm6, %v2594_v36, 0.0 }
 0x5d8   : > { %1772 = vmatpush.msrb.mxu3 %v2552_v37  ;;  %1729 = vadd.xlane.f32.xlu0 %v1728_v38 }
 0x5e0   : > { %v1715_v39 = vpop.xlane.xlu0 %1714 }
 0x5e1   : > { %v1718_v40 = vsub.f32 %v3123_v60, %v1715_v39 }
 0x5e3   : > { %v1723_v44 = vmul.f32 1.442695, %v1718_v40 }
 0x5e5   : > { %2595 = vpow2.f32 %v1723_v44  ;;  %v2675_v44 = vmov 16.0  }
 0x5e6   : > { %2597 = vrcp.f32 %v1553_v28 }
 0x5eb   : > { %v2596_v45 = vpop.eup %2595 }
 0x5ec   : > { %v1731_v47 = vsel %vm1189_vm6, %v2596_v45, 0.0  ;;  %v2598_v48 = vpop.eup %2597 }
 0x5ed   : > { %1732 = vadd.xlane.f32.xlu2 %v1731_v47  ;;  %v1563_v49 = vmul.f32 %v2598_v48, %v3109_v51 }
 0x5f3   : > { %v1567_v50 = vpop.permute.xlu0 %1566 }
 0x5f4   : > { %1599 = vmatpush.msra.mxu0 %v1567_v50 }
 0x5f5   : > { %2428 = vmatmul.msk.f32.vlgmr.msra.gmra.mxu0 %vm1189_vm6, %v1563_v49 }
 0x5fd   : > { %v1727_v52 = vpop.xlane.xlu1 %1726 }
 0x5fe   : > { %2599 = vrcp.f32 %v1727_v52 }
 0x604   : > { %v2600_v54 = vpop.eup %2599 }
 0x605   : > { %v1737_v59 = vmul.f32 %v2600_v54, %v3131_v3  ;;  %v1784_v3 = vrot.slane %v1091_v2, 4  ;;  %v1921_v2 = vld [vmem:[%s2867_s10] sm:$0xff] }
 0x607   : > { %2444 = vmatpush.msk.msrb.mxu0 %vm1411_vm7, %v1784_v3 }
 0x60c   : > { %v1556_v53 = vpop.xlane.xlu2 %1555 }
 0x60d   : > { %2601 = vrcp.f32 %v1556_v53 }
 0x613   : > { %v2602_v56 = vpop.eup %2601 }
 0x614   : > { %v1559_v57 = vpop.xlane.xlu2 %1558  ;;  %v1564_v58 = vmul.f32 %v2602_v56, %v3136_v9 }
 0x615   : > { %2603 = vrcp.f32 %v1559_v57  ;;  %v1741_v60 = vpop.permute.xlu1 %1740 }
 0x616   : > { %2429 = vmatmul.msk.f32.gmra.mxu0 %vm1189_vm6, %v1564_v58  ;;  %1773 = vmatpush.msrb.mxu3 %v1741_v60 }
 0x617   : > { %2441 = vmatmul.msk.f32.vlgmr.msrb.gmra.mxu3 %vm1189_vm6, %v1737_v59 }
 0x61a   : > { %v1391_v51 = vpop.f32.mrf.mxu0 }
 0x61b   : > { %v2604_v61 = vpop.eup %2603  ;;  %2415 = vmatmul.msk.f32.vlgmr.msrb.gmra.mxu2 %vm1144_vm4, %v1391_v51 }
 0x61c   : > { %v1565_v62 = vmul.f32 %v2604_v61, %v2588_v18 }
 0x61e   : > { %2430 = vmatmul.msk.f32.gmra.mxu0 %vm1189_vm6, %v1565_v62 }
 0x622   : > { %v1394_v63 = vpop.f32.mrf.mxu0 }
 0x623   : > { %2416 = vmatmul.msk.f32.gmra.mxu2 %vm1144_vm4, %v1394_v63 }
 0x62a   : > { %v1397_v0 = vpop.f32.mrf.mxu0 }
 0x62b   : > { %2417 = vmatmul.msk.f32.gmra.mxu2 %vm1144_vm4, %v1397_v0 }
 0x64b   : > { %v1730_v1 = vpop.xlane.xlu0 %1729 }
 0x64c   : > { %2605 = vrcp.f32 %v1730_v1  ;;  %v1922_v1 = vld [vmem:[%s2867_s10 + $0x8] sm:$0xff]  ;;  %s3362_s10 = scalar_lea.vmem %s3302_s12, %s2829_s5  ;;  %s3371_s5 = sld [smem:[#allocation3_spill]] }
 0x64d   : > { %1950 = vmatpush.msrb.mxu2 %v1922_v1 }
 0x64f   : > { %1951 = vmatpush.msrb.mxu2 %v1921_v2 }
 0x652   : > { %v2606_v55 = vpop.eup %2605  ;;  %p2454_p10 = scmp.ne.s32.totalorder %s3371_s5, 2 }
 0x653   : > { %v1738_v5 = vmul.f32 %v2606_v55, %v2594_v36  ;;  %s3373_s17 = sld [smem:[#allocation24_spill]] (!%p2454_p10) }
 0x655   : > { %2442 = vmatmul.msk.f32.gmra.mxu3 %vm1189_vm6, %v1738_v5 }
 0x660   : > { %v1733_v6 = vpop.xlane.xlu2 %1732 }
 0x661   : > { %2607 = vrcp.f32 %v1733_v6 }
 0x662   : > { %2609 = vrcp.f32 %v2675_v44 }
 0x667   : > { %v2608_v4 = vpop.eup %2607 }
 0x668   : > { %v1739_v7 = vmul.f32 %v2608_v4, %v2596_v45  ;;  %v2610_v45 = vpop.eup %2609 }
 0x669   : > { %v1846_v47 = vmul.f32 16.0, %v2610_v45  ;;  %vm1850_vm8 = vweird.f32 %v2610_v45 }
 0x66a   : > { %2443 = vmatmul.msk.f32.gmra.mxu3 %vm1189_vm6, %v1739_v7 }
 0x672   : > { %v1601_v8 = vpop.f32.mrf.mxu0 }
 0x673   : > { %2432 = vmatmul.msk.f32.vlgmr.msra.gmra.mxu2 %vm1144_vm4, %v1601_v8 }
 0x693   : > { %v1604_v9 = vpop.f32.mrf.mxu0 }
 0x694   : > { %2433 = vmatmul.msk.f32.gmra.mxu2 %vm1144_vm4, %v1604_v9 }
 0x69a   : > { %v1775_v10 = vpop.f32.mrf.mxu3 }
 0x69b   : > { %v1607_v11 = vpop.f32.mrf.mxu0  ;;  %2445 = vmatmul.msk.f32.vlgmr.msrb.gmra.mxu0 %vm1144_vm4, %v1775_v10 }
 0x69c   : > { %2434 = vmatmul.msk.f32.gmra.mxu2 %vm1144_vm4, %v1607_v11  ;;  %v2555_v11 = vld [vmem:[%s3362_s10] ss:$0 sm:$0xff]  ;;  %s3372_s10 = sld [smem:[#allocation23_spill]] (!%p2454_p10) }
 0x69e   : > { %v1431_v14 = vpop.f32.mrf.mxu2 }
 0x69f   : > { %v1469_v18 = vadd.f32 %v3087_v22, %v1431_v14  ;;  %v2556_v14 = vld [vmem:[%s3363_s28] ss:$0 sm:$0xff] }
 0x6a6   : > { %v1434_v15 = vpop.f32.mrf.mxu2 }
 0x6a7   : > { %v1472_v30 = vadd.f32 %v3089_v23, %v1434_v15 }
 0x6ae   : > { %v1437_v16 = vpop.f32.mrf.mxu2 }
 0x6af   : > { %v1475_v36 = vadd.f32 %v3091_v24, %v1437_v16 }
 0x6d8   : > { %v1778_v12 = vpop.f32.mrf.mxu3 }
 0x6d9   : > { %2446 = vmatmul.msk.f32.gmra.mxu0 %vm1144_vm4, %v1778_v12 }
 0x6ed   : > { %v1781_v13 = vpop.f32.mrf.mxu3 }
 0x6ee   : > { %2447 = vmatmul.msk.f32.gmra.mxu0 %vm1144_vm4, %v1781_v13 }
 0x6f6   : > { %v1639_v17 = vpop.f32.mrf.mxu2 }
 0x6f7   : > { %v1648_v19 = vadd.f32 %v1639_v17, %v1469_v18 }
 0x717   : > { %v1642_v29 = vpop.f32.mrf.mxu2 }
 0x718   : > { %v1813_v21 = vpop.f32.mrf.mxu0  ;;  %v1649_v31 = vadd.f32 %v1642_v29, %v1472_v30 }
 0x719   : > { %v1822_v25 = vadd.f32 %v1813_v21, %v1648_v19 }
 0x71b   : > { %v1828_v26 = vadd.f32 %v2554_v20, %v1822_v25 }
 0x71d   : > { %v1831_v27 = vadd.f32 %v1828_v26, %v2944_v41 }
 0x71f   : > { %v1836_v28 = vsel %vm1096_vm3, %v1831_v27, 0.0  ;;  %v1645_v35 = vpop.f32.mrf.mxu2 }
 0x720   : > { %1837 = vadd.xlane.f32.xlu1 %v1836_v28  ;;  %v1650_v37 = vadd.f32 %v1645_v35, %v1475_v36  ;;  %v1968_v28 = vld [vmem:[%s2876_s2 + $0x18] sm:$0xff] }
 0x721   : > { %1994 = vmatpush.msrb.mxu1 %v1968_v28 }
 0x756   : > { %v1816_v32 = vpop.f32.mrf.mxu0 }
 0x757   : > { %v1823_v22 = vadd.f32 %v1816_v32, %v1649_v31 }
 0x759   : > { %v1829_v33 = vadd.f32 %v2554_v20, %v1823_v22 }
 0x75b   : > { %v1832_v34 = vadd.f32 %v1829_v33, %v2948_v42  ;;  %v1847_v42 = vsub.f32 1.0, %v1846_v47  ;;  %v1967_v47 = vld [vmem:[%s2876_s2 + $0x10] sm:$0xff] }
 0x75c   : > { %1995 = vmatpush.msrb.mxu1 %v1967_v47 }
 0x75d   : > { %v1839_v46 = vsel %vm1096_vm3, %v1832_v34, 0.0  ;;  %v1848_v48 = vmul.f32 %v2610_v45, %v1847_v42  ;;  %v1966_v42 = vld [vmem:[%s2876_s2 + $0x8] sm:$0xff] }
 0x75e   : > { %1840 = vadd.xlane.f32.xlu2 %v1839_v46  ;;  %1996 = vmatpush.msrb.mxu1 %v1966_v42 }
 0x75f   : > { %v1849_v49 = vadd.f32 %v2610_v45, %v1848_v48  ;;  %v1965_v48 = vld [vmem:[%s2876_s2] sm:$0xff] }
 0x760   : > { %1997 = vmatpush.msrb.mxu1 %v1965_v48 }
 0x761   : > { %v3188_v50 = vsel %vm1850_vm8, %v2610_v45, %v1849_v49  ;;  %v2557_v49 = vld [vmem:[%s3364_s19] ss:$0 sm:$0xff] }
 0x76b   : > { %v1819_v41 = vpop.f32.mrf.mxu0 }
 0x76c   : > { %v1824_v38 = vadd.f32 %v1819_v41, %v1650_v37 }
 0x76e   : > { %v1830_v39 = vadd.f32 %v2554_v20, %v1824_v38 }
 0x770   : > { %v1833_v40 = vadd.f32 %v1830_v39, %v2952_v43 }
 0x772   : > { %v1842_v23 = vsel %vm1096_vm3, %v1833_v40, 0.0 }
 0x773   : > { %1843 = vadd.xlane.f32.xlu0 %v1842_v23 }
 0x793   : > { %v1838_v24 = vpop.xlane.xlu1 %1837 }
 0x794   : > { %v1852_v52 = vmul.f32 %v3188_v50, %v1838_v24 }
 0x796   : > { %v1855_v53 = vsub.f32 %v1831_v27, %v1852_v52 }
 0x798   : > { %v1858_v54 = vmul.f32 %v1855_v53, %v1855_v53 }
 0x79a   : > { %v1861_v43 = vsel %vm1096_vm3, %v1858_v54, 0.0 }
 0x79b   : > { %1862 = vadd.xlane.f32.xlu2 %v1861_v43 }
 0x7d1   : > { %v1841_v56 = vpop.xlane.xlu2 %1840 }
 0x7d2   : > { %v1853_v57 = vmul.f32 %v3188_v50, %v1841_v56 }
 0x7d4   : > { %v1856_v58 = vsub.f32 %v1832_v34, %v1853_v57 }
 0x7d6   : > { %v1859_v59 = vmul.f32 %v1856_v58, %v1856_v58 }
 0x7d8   : > { %v1864_v60 = vsel %vm1096_vm3, %v1859_v59, 0.0 }
 0x7d9   : > { %1865 = vadd.xlane.f32.xlu0 %v1864_v60  ;;  %v2558_v60 = vld [vmem:[%s3366_s20] ss:$0 sm:$0xff] }
 0x7e6   : > { %v1844_v51 = vpop.xlane.xlu0 %1843 }
 0x7e7   : > { %v1854_v61 = vmul.f32 %v3188_v50, %v1844_v51 }
 0x7e9   : > { %v3195_v62 = vsub.f32 %v1833_v40, %v1854_v61 }
 0x7eb   : > { %v1860_v63 = vmul.f32 %v3195_v62, %v3195_v62 }
 0x7ed   : > { %v1867_v0 = vsel %vm1096_vm3, %v1860_v63, 0.0 }
 0x7ee   : > { %1868 = vadd.xlane.f32.xlu2 %v1867_v0 }
 0x80e   : > { %v1863_v55 = vpop.xlane.xlu2 %1862 }
 0x80f   : > { %v1870_v3 = vmul.f32 %v1863_v55, %v3188_v50 }
 0x811   : > { %v1873_v5 = vadd.f32 1e-05, %v1870_v3 }
 0x813   : > { %2611 = vrsqrt.f32 %v1873_v5  ;;  %vm1882_vm10 = vweird.f32 %v1873_v5 }
 0x819   : > { %v2612_v6 = vpop.eup %2611 }
 0x81a   : > { %v1877_v4 = vmul.f32 %v2612_v6, %v1873_v5  ;;  %vm1883_vm9 = vweird.f32 %v2612_v6 }
 0x81b   : > { %vm1884_vm11 = vmor %vm1882_vm10, %vm1883_vm9 }
 0x81c   : > { %v1878_v7 = vmul.f32 %v2612_v6, %v1877_v4 }
 0x81e   : > { %v1879_v8 = vmul.f32 0.5, %v1878_v7 }
 0x820   : > { %v1880_v9 = vsub.f32 1.5, %v1879_v8 }
 0x822   : > { %v1881_v10 = vmul.f32 %v2612_v6, %v1880_v9 }
 0x824   : > { %v1885_v12 = vsel %vm1884_vm11, %v2612_v6, %v1881_v10 }
 0x825   : > { %v1906_v13 = vmul.f32 %v1885_v12, %v1855_v53 }
 0x827   : > { %v1912_v15 = vmul.f32 %v2555_v11, %v1906_v13 }
 0x829   : > { %v1918_v16 = vadd.f32 %v2556_v14, %v1912_v15 }
 0x82b   : > { %2448 = vmatmul.msk.f32.vlgmr.msrb.gmra.mxu2 %vm1096_vm3, %v1918_v16 }
 0x84c   : > { %v1866_v17 = vpop.xlane.xlu0 %1865 }
 0x84d   : > { %v1871_v18 = vmul.f32 %v1866_v17, %v3188_v50 }
 0x84f   : > { %v1874_v19 = vadd.f32 1e-05, %v1871_v18 }
 0x851   : > { %2613 = vrsqrt.f32 %v1874_v19  ;;  %vm1892_vm13 = vweird.f32 %v1874_v19 }
 0x857   : > { %v2614_v20 = vpop.eup %2613 }
 0x858   : > { %v1887_v21 = vmul.f32 %v2614_v20, %v1874_v19  ;;  %vm1893_vm12 = vweird.f32 %v2614_v20 }
 0x859   : > { %vm1894_vm14 = vmor %vm1892_vm13, %vm1893_vm12 }
 0x85a   : > { %v1888_v25 = vmul.f32 %v2614_v20, %v1887_v21 }
 0x85c   : > { %v1889_v26 = vmul.f32 0.5, %v1888_v25 }
 0x85e   : > { %v1890_v27 = vsub.f32 1.5, %v1889_v26 }
 0x860   : > { %v1891_v29 = vmul.f32 %v2614_v20, %v1890_v27 }
 0x861   : > { %v1869_v30 = vpop.xlane.xlu2 %1868 }
 0x862   : > { %v1895_v31 = vsel %vm1894_vm14, %v2614_v20, %v1891_v29  ;;  %v1872_v32 = vmul.f32 %v1869_v30, %v3188_v50 }
 0x863   : > { %v1907_v22 = vmul.f32 %v1895_v31, %v1856_v58 }
 0x864   : > { %v1875_v33 = vadd.f32 1e-05, %v1872_v32 }
 0x865   : > { %v1913_v34 = vmul.f32 %v2555_v11, %v1907_v22 }
 0x866   : > { %2615 = vrsqrt.f32 %v1875_v33  ;;  %vm1902_vm1 = vweird.f32 %v1875_v33 }
 0x867   : > { %v1919_v46 = vadd.f32 %v2556_v14, %v1913_v34 }
 0x869   : > { %2449 = vmatmul.msk.f32.gmra.mxu2 %vm1096_vm3, %v1919_v46 }
 0x86c   : > { %v2616_v35 = vpop.eup %2615 }
 0x86d   : > { %v1897_v36 = vmul.f32 %v2616_v35, %v1875_v33  ;;  %vm1903_vm15 = vweird.f32 %v2616_v35  ;;  %v2559_v33 = vld [vmem:[%s3368_s21] ss:$0 sm:$0xff] }
 0x86e   : > { %vm1904_vm2 = vmor %vm1902_vm1, %vm1903_vm15 }
 0x86f   : > { %v1898_v37 = vmul.f32 %v2616_v35, %v1897_v36 }
 0x871   : > { %v1899_v41 = vmul.f32 0.5, %v1898_v37 }
 0x873   : > { %v1900_v38 = vsub.f32 1.5, %v1899_v41 }
 0x875   : > { %v1901_v39 = vmul.f32 %v2616_v35, %v1900_v38 }
 0x877   : > { %v1905_v40 = vsel %vm1904_vm2, %v2616_v35, %v1901_v39 }
 0x878   : > { %v1908_v23 = vmul.f32 %v1905_v40, %v3195_v62 }
 0x87a   : > { %v1914_v44 = vmul.f32 %v2555_v11, %v1908_v23 }
 0x87c   : > { %v1920_v45 = vadd.f32 %v2556_v14, %v1914_v44 }
 0x87e   : > { %2450 = vmatmul.msk.f32.gmra.mxu2 %vm1096_vm3, %v1920_v45 }
 0x8ae   : > { %v1953_v24 = vpop.f32.mrf.mxu2 }
 0x8af   : > { %v1954_v52 = vadd.f32 %v2557_v49, %v1953_v24 }
 0x8b1   : > { %v1962_v53 = vmax.f32 %v1954_v52, 0.0 }
 0x8b3   : > { %2451 = vmatmul.msk.f32.vlgmr.msrb.gmra.mxu1 %vm968_vm0, %v1962_v53 }
 0x8ec   : > { %v1956_v54 = vpop.f32.mrf.mxu2 }
 0x8ed   : > { %v1957_v43 = vadd.f32 %v2557_v49, %v1956_v54 }
 0x8ef   : > { %v1963_v56 = vmax.f32 %v1957_v43, 0.0 }
 0x8f1   : > { %2452 = vmatmul.msk.f32.gmra.mxu1 %vm968_vm0, %v1963_v56 }
 0x901   : > { %v1959_v57 = vpop.f32.mrf.mxu2 }
 0x902   : > { %v1960_v58 = vadd.f32 %v2557_v49, %v1959_v57 }
 0x904   : > { %v1964_v59 = vmax.f32 %v1960_v58, 0.0 }
 0x906   : > { %2453 = vmatmul.msk.f32.gmra.mxu1 %vm968_vm0, %v1964_v59 }
 0x930   : > { %v1999_v51 = vpop.f32.mrf.mxu1 }
 0x931   : > { %v2000_v61 = vadd.f32 %v2558_v60, %v1999_v51 }
 0x933   : > { %v2008_v62 = vadd.f32 %v2000_v61, %v1918_v16 }
 0x935   : > { %v2013_v63 = vsel %vm1096_vm3, %v2008_v62, 0.0 }
 0x936   : > { %2014 = vadd.xlane.f32.xlu0 %v2013_v63 }
 0x96e   : > { %v2002_v0 = vpop.f32.mrf.mxu1 }
 0x96f   : > { %v2003_v1 = vadd.f32 %v2558_v60, %v2002_v0 }
 0x971   : > { %v2009_v2 = vadd.f32 %v2003_v1, %v1919_v46  ;;  %v2560_v46 = vld [vmem:[%s3370_s1] ss:$0 sm:$0xff] }
 0x973   : > { %v2016_v55 = vsel %vm1096_vm3, %v2009_v2, 0.0 }
 0x974   : > { %2017 = vadd.xlane.f32.xlu2 %v2016_v55 }
 0x983   : > { %v2005_v3 = vpop.f32.mrf.mxu1 }
 0x984   : > { %v2006_v5 = vadd.f32 %v2558_v60, %v2005_v3 }
 0x986   : > { %v2010_v6 = vadd.f32 %v2006_v5, %v1920_v45 }
 0x988   : > { %v2019_v4 = vsel %vm1096_vm3, %v2010_v6, 0.0 }
 0x989   : > { %2020 = vadd.xlane.f32.xlu0 %v2019_v4 }
 0x9a9   : > { %v2015_v7 = vpop.xlane.xlu0 %2014 }
 0x9aa   : > { %v2022_v8 = vmul.f32 %v2015_v7, %v3188_v50 }
 0x9ac   : > { %v2025_v9 = vsub.f32 %v2008_v62, %v2022_v8 }
 0x9ae   : > { %v2028_v10 = vmul.f32 %v2025_v9, %v2025_v9 }
 0x9b0   : > { %v2031_v11 = vsel %vm1096_vm3, %v2028_v10, 0.0 }
 0x9b1   : > { %2032 = vadd.xlane.f32.xlu2 %v2031_v11 }
 0x9e7   : > { %v2018_v12 = vpop.xlane.xlu2 %2017 }
 0x9e8   : > { %v2023_v13 = vmul.f32 %v2018_v12, %v3188_v50 }
 0x9ea   : > { %v2026_v14 = vsub.f32 %v2009_v2, %v2023_v13 }
 0x9ec   : > { %v2029_v15 = vmul.f32 %v2026_v14, %v2026_v14 }
 0x9ee   : > { %v2034_v16 = vsel %vm1096_vm3, %v2029_v15, 0.0 }
 0x9ef   : > { %2035 = vadd.xlane.f32.xlu0 %v2034_v16 }
 0x9fc   : > { %v2021_v17 = vpop.xlane.xlu0 %2020 }
 0x9fd   : > { %v2024_v18 = vmul.f32 %v2021_v17, %v3188_v50 }
 0x9ff   : > { %v2027_v19 = vsub.f32 %v2010_v6, %v2024_v18 }
 0xa01   : > { %v2030_v20 = vmul.f32 %v2027_v19, %v2027_v19 }
 0xa03   : > { %v2037_v21 = vsel %vm1096_vm3, %v2030_v20, 0.0 }
 0xa04   : > { %2038 = vadd.xlane.f32.xlu1 %v2037_v21 }
 0xa24   : > { %v2033_v25 = vpop.xlane.xlu2 %2032 }
 0xa25   : > { %v2040_v26 = vmul.f32 %v2033_v25, %v3188_v50 }
 0xa27   : > { %v2043_v27 = vadd.f32 1e-05, %v2040_v26 }
 0xa29   : > { %2617 = vrsqrt.f32 %v2043_v27  ;;  %vm2052_vm4 = vweird.f32 %v2043_v27 }
 0xa2f   : > { %v2618_v28 = vpop.eup %2617 }
 0xa30   : > { %v2047_v29 = vmul.f32 %v2618_v28, %v2043_v27  ;;  %vm2053_vm0 = vweird.f32 %v2618_v28 }
 0xa31   : > { %vm2054_vm5 = vmor %vm2052_vm4, %vm2053_vm0 }
 0xa32   : > { %v2048_v30 = vmul.f32 %v2618_v28, %v2047_v29 }
 0xa34   : > { %v2049_v31 = vmul.f32 0.5, %v2048_v30 }
 0xa36   : > { %v2050_v32 = vsub.f32 1.5, %v2049_v31 }
 0xa38   : > { %v2051_v22 = vmul.f32 %v2618_v28, %v2050_v32 }
 0xa3a   : > { %v2055_v34 = vsel %vm2054_vm5, %v2618_v28, %v2051_v22 }
 0xa3b   : > { %v2076_v35 = vmul.f32 %v2055_v34, %v2025_v9 }
 0xa3d   : > { %v2082_v36 = vmul.f32 %v2559_v33, %v2076_v35 }
 0xa3f   : > { %v2088_v37 = vadd.f32 %v2560_v46, %v2082_v36 }
 0xa41   : > { %2091 = vst.msk [vmem:[#allocation2] sm:$0xff] %vm1096_vm3, %v2088_v37 }
 0xa62   : > { %v2036_v41 = vpop.xlane.xlu0 %2035 }
 0xa63   : > { %v2041_v38 = vmul.f32 %v2036_v41, %v3188_v50 }
 0xa65   : > { %v2044_v39 = vadd.f32 1e-05, %v2041_v38 }
 0xa67   : > { %2619 = vrsqrt.f32 %v2044_v39  ;;  %vm2062_vm7 = vweird.f32 %v2044_v39 }
 0xa6d   : > { %v2620_v40 = vpop.eup %2619 }
 0xa6e   : > { %v2057_v23 = vmul.f32 %v2620_v40, %v2044_v39  ;;  %vm2063_vm6 = vweird.f32 %v2620_v40 }
 0xa6f   : > { %vm2064_vm8 = vmor %vm2062_vm7, %vm2063_vm6 }
 0xa70   : > { %v2058_v44 = vmul.f32 %v2620_v40, %v2057_v23 }
 0xa72   : > { %v2059_v45 = vmul.f32 0.5, %v2058_v44 }
 0xa74   : > { %v2060_v47 = vsub.f32 1.5, %v2059_v45 }
 0xa76   : > { %v2061_v42 = vmul.f32 %v2620_v40, %v2060_v47 }
 0xa77   : > { %v2039_v48 = vpop.xlane.xlu1 %2038 }
 0xa78   : > { %v2065_v49 = vsel %vm2064_vm8, %v2620_v40, %v2061_v42  ;;  %v2042_v24 = vmul.f32 %v2039_v48, %v3188_v50 }
 0xa79   : > { %v2077_v52 = vmul.f32 %v2065_v49, %v2026_v14 }
 0xa7a   : > { %v2045_v53 = vadd.f32 1e-05, %v2042_v24 }
 0xa7b   : > { %v2083_v54 = vmul.f32 %v2559_v33, %v2077_v52 }
 0xa7c   : > { %2621 = vrsqrt.f32 %v2045_v53  ;;  %vm2072_vm10 = vweird.f32 %v2045_v53 }
 0xa7d   : > { %v2089_v43 = vadd.f32 %v2560_v46, %v2083_v54 }
 0xa7f   : > { %2092 = vst.msk [vmem:[#allocation2 + $0x8] sm:$0xff] %vm1096_vm3, %v2089_v43 }
 0xa82   : > { %v2622_v56 = vpop.eup %2621 }
 0xa83   : > { %v2067_v57 = vmul.f32 %v2622_v56, %v2045_v53  ;;  %vm2073_vm9 = vweird.f32 %v2622_v56 }
 0xa84   : > { %vm2074_vm11 = vmor %vm2072_vm10, %vm2073_vm9 }
 0xa85   : > { %v2068_v58 = vmul.f32 %v2622_v56, %v2067_v57 }
 0xa87   : > { %v2069_v59 = vmul.f32 0.5, %v2068_v58 }
 0xa89   : > { %v2070_v60 = vsub.f32 1.5, %v2069_v59 }
 0xa8b   : > { %v2071_v51 = vmul.f32 %v2622_v56, %v2070_v60 }
 0xa8d   : > { %v2075_v61 = vsel %vm2074_vm11, %v2622_v56, %v2071_v51 }
 0xa8e   : > { %v2078_v62 = vmul.f32 %v2075_v61, %v2027_v19 }
 0xa90   : > { %v2084_v63 = vmul.f32 %v2559_v33, %v2078_v62  ;;  %2097 = sbr.rel (%p2454_p10) target bundleno = 2843 (0xb1b), region = 120 }
 0xa92   : > { %v2090_v50 = vadd.f32 %v2560_v46, %v2084_v63 }
 0xa94   : > { %2093 = vst.msk [vmem:[#allocation2 + $0x10] sm:$0xff] %vm1096_vm3, %v2090_v50 }
 0xa95   : > { %v2099_v0 = vld [vmem:[%s3372_s10 + $0x8] sm:$0xff]  ;;  %v2098_v1 = vld [vmem:[%s3372_s10] sm:$0xff]  ;;  %vm2107_vm12 = vcmask 1046528   ;;  %v2108_v2 = vrot.slane %v2088_v37, 1  ;;  %v2109_v55 = vrot.slane %v2089_v43, 1  ;;  %v2111_v3 = vrot.slane %v2090_v50, 1 }
 0xa96   : > { %2131 = vmatpush.msra.mxu0 %v2099_v0  ;;  %2476 = vmatpush.msra.mxu1 %v2099_v0  ;;  %v2623_v4 = vld [vmem:[%s3373_s17] ss:$0 sm:$0xff]  ;;  %vm2140_vm13 = vcmask 523264  }
 0xa97   : > { %v2110_v5 = vsel %vm2107_vm12, %v2108_v2, %v2109_v55  ;;  %v2112_v6 = vsel %vm2107_vm12, %v2109_v55, %v2111_v3 }
 0xa98   : > { %2132 = vmatpush.msra.mxu0 %v2098_v1  ;;  %2477 = vmatpush.msra.mxu1 %v2098_v1 }
 0xa99   : > { %2455 = vmatmul.msk.f32.vlgmr.msra.gmra.mxu0 %vm1096_vm3, %v2110_v5  ;;  %2456 = vmatmul.msk.f32.vlgmr.msra.gmra.mxu1 %vm1096_vm3, %v2112_v6 }
 0xb16   : > { %v2134_v7 = vpop.f32.mrf.mxu0  ;;  %v2137_v8 = vpop.f32.mrf.mxu1 }
 0xb17   : > { %v2135_v9 = vadd.f32 %v2623_v4, %v2134_v7  ;;  %v2138_v10 = vadd.f32 %v2623_v4, %v2137_v8 }
 0xb19   : > { %2141 = vst.msk [vmem:[%s2909_s14] sm:$0xff] %vm2140_vm13, %v2135_v9 }
 0xb1a   : > { %2142 = vst.msk [vmem:[%s2909_s14 + $0x8] sm:$0xff] %vm2140_vm13, %v2138_v10 }
 0xb1b PF: > { %s3374_s19 = sld [smem:[#allocation6_spill]] }
 0xb1c   : > { %s3375_s3 = sld [smem:[#allocation4_spill]] }
 0xb1d   : > { %s3376_s28 = sld [smem:[#allocation5_spill]] }
 0xb1e   : > { %s3377_s29 = sld [smem:[#allocation7_spill]] }
 0xb1f   : > { %s3378_s30 = sld [smem:[#allocation8_spill]] }
 0xb21   : > { %s32_s4 = sadd.s32 1, %s3374_s19  }
 0xb22   : > { %p29_p11 = scmp.ge.s32.totalorder %s32_s4, 8  }
 0xb24   :  { %31 = sbr.rel (!%p29_p11) target bundleno = 18 (0x12), region = 195 }

</bundles_post_ra>
